<compile_context>
chip_gen: v7x
topology: tpu7x:2x2x1
jax: 0.10.0
libtpu: 0.0.40
codegen_flags: <defaults>
</compile_context>

<pallas_src>
import functools

import jax
import jax.numpy as jnp
from jax.experimental import pallas as pl
from jax.experimental.pallas import tpu as pltpu


# ---------------------------------------------------------------------------
# 3x3 conv on a zero-padded bf16 VMEM slab, as MXU matmuls (f32 accumulation)
# ---------------------------------------------------------------------------
def _conv3x3_matmul(slab_ref, w_ref, rows, W, C, per_tap):
    """slab_ref: (rows+2, W+2, C) bf16 scratch; w_ref: (9*C, Cout) bf16.

    Returns (rows*W, Cout) float32.
    per_tap=True  -> 9 accumulating matmuls with K=C   (wide-channel path)
    per_tap=False -> one folded im2col matmul with K=9C (tiny-Cin path)
    """
    if per_tap:
        acc = None
        t = 0
        for kh in range(3):
            for kw in range(3):
                tap = slab_ref[kh:kh + rows, kw:kw + W, :].reshape(rows * W, C)
                part = jnp.dot(tap, w_ref[t * C:(t + 1) * C, :],
                               preferred_element_type=jnp.float32)
                acc = part if acc is None else acc + part
                t += 1
        return acc
    taps = [slab_ref[kh:kh + rows, kw:kw + W, :]
            for kh in range(3) for kw in range(3)]
    pat = jnp.concatenate(taps, axis=-1).reshape(rows * W, 9 * C)
    return jnp.dot(pat, w_ref[...], preferred_element_type=jnp.float32)


# ---------------------------------------------------------------------------
# Fused kernel: [conv3x3 + BN(scale/bias) + ReLU] x 2 on one row tile
# ---------------------------------------------------------------------------
def _fused_conv_bn_relu_x2_kernel(xc_ref, xtop_ref, xbot_ref,
                                  w1_ref, sb1_ref, w2_ref, sb2_ref,
                                  o_ref, xpad_ref, mpad_ref,
                                  *, per_tap1, per_tap2):
    # xc_ref  : (1, TH, W, Cin)   bf16  core input rows of this tile
    # xtop_ref: (1, 2,  W, Cin)   bf16  2-row top halo (valid when r > 0)
    # xbot_ref: (1, 2,  W, Cin)   bf16  2-row bottom halo (valid when r < R-1)
    # w1_ref  : (9*Cin,  Cmid)    bf16  conv1 weights (3x3 taps folded into K)
    # sb1_ref : (2, Cmid)         f32   row0 = BN1 scale, row1 = BN1 bias
    # w2_ref  : (9*Cmid, Cout)    bf16
    # sb2_ref : (2, Cout)         f32
    # o_ref   : (1, TH, W, Cout)  bf16  output row tile
    # xpad_ref: (TH+4, W+2, Cin)  bf16  zero-bordered input slab   (scratch)
    # mpad_ref: (TH+2, W+2, Cmid) bf16  zero-bordered layer-1 slab (scratch)
    r = pl.program_id(1)
    num_r = pl.num_programs(1)

    _, TH, W, Cout = o_ref.shape
    Cin = xc_ref.shape[3]
    Cmid = mpad_ref.shape[2]
    bdt = xpad_ref.dtype

    # ---- stage input slab: zero only the border columns (every step, cheap),
    #      copy core rows, then halo rows (fetched or zeroed at edge tiles) ---
    zc = jnp.zeros((TH + 4, 1, Cin), bdt)
    xpad_ref[:, 0:1, :] = zc
    xpad_ref[:, W + 1:W + 2, :] = zc
    xpad_ref[2:TH + 2, 1:W + 1, :] = xc_ref[0]

    @pl.when(r > 0)
    def _():
        xpad_ref[0:2, 1:W + 1, :] = xtop_ref[0]

    @pl.when(r == 0)
    def _():
        xpad_ref[0:2, 1:W + 1, :] = jnp.zeros((2, W, Cin), bdt)

    @pl.when(r < num_r - 1)
    def _():
        xpad_ref[TH + 2:TH + 4, 1:W + 1, :] = xbot_ref[0]

    @pl.when(r == num_r - 1)
    def _():
        xpad_ref[TH + 2:TH + 4, 1:W + 1, :] = jnp.zeros((2, W, Cin), bdt)

    # ---- layer 1: conv3x3 + BN + ReLU over TH+2 intermediate rows ----------
    acc1 = _conv3x3_matmul(xpad_ref, w1_ref, TH + 2, W, Cin, per_tap1)
    y1 = jnp.maximum(acc1 * sb1_ref[0:1, :] + sb1_ref[1:2, :], 0.0)

    zcm = jnp.zeros((TH + 2, 1, Cmid), bdt)
    mpad_ref[:, 0:1, :] = zcm
    mpad_ref[:, W + 1:W + 2, :] = zcm
    mpad_ref[:, 1:W + 1, :] = y1.reshape(TH + 2, W, Cmid).astype(bdt)

    # intermediate rows that fall in conv2's zero-padding region must be 0
    # (NOT relu(bias) computed from zero inputs)
    @pl.when(r == 0)
    def _():
        mpad_ref[0:1, 1:W + 1, :] = jnp.zeros((1, W, Cmid), bdt)

    @pl.when(r == num_r - 1)
    def _():
        mpad_ref[TH + 1:TH + 2, 1:W + 1, :] = jnp.zeros((1, W, Cmid), bdt)

    # ---- layer 2: conv3x3 + BN + ReLU on the VMEM-resident intermediate ----
    acc2 = _conv3x3_matmul(mpad_ref, w2_ref, TH, W, Cmid, per_tap2)
    y2 = jnp.maximum(acc2 * sb2_ref[0:1, :] + sb2_ref[1:2, :], 0.0)
    o_ref[0] = y2.reshape(TH, W, Cout).astype(o_ref.dtype)


# ---------------------------------------------------------------------------
# Row-tile sizing from a lane-padding-aware VMEM footprint estimate
# ---------------------------------------------------------------------------
def _round_up(x, m):
    return ((x + m - 1) // m) * m


def _estimate_tile_vmem_bytes(TH, W, Cin, Cmid, Cout, per_tap1, per_tap2):
    lane = lambda c: _round_up(max(int(c), 1), 128)     # lane padding
    s16 = lambda s: _round_up(max(int(s), 1), 16)       # bf16 sublane padding
    s8 = lambda s: _round_up(max(int(s), 1), 8)         # f32 sublane padding
    bf, f32 = 2, 4
    xpad = (TH + 4) * s16(W + 2) * lane(Cin) * bf
    mpad = (TH + 2) * s16(W + 2) * lane(Cmid) * bf
    xin = 2 * (TH * s16(W) * lane(Cin) + 2 * 2 * s16(W) * lane(Cin)) * bf
    out = 2 * TH * s16(W) * lane(Cout) * bf
    wts = 2 * (s16(9 * Cin) * lane(Cmid) + s16(9 * Cmid) * lane(Cout)) * bf
    rows1, rows2 = (TH + 2) * W, TH * W
    acc = s8(rows1) * lane(Cmid) * f32 + s8(rows2) * lane(Cout) * f32
    pat = 0
    if not per_tap1:
        pat += s16(rows1) * lane(9 * Cin) * bf
    if not per_tap2:
        pat += s16(rows2) * lane(9 * Cmid) * bf
    return xpad + mpad + xin + out + wts + acc + pat


def _pick_row_tile(H, W, Cin, Cmid, Cout, per_tap1, per_tap2, row_tile=None,
                   vmem_budget_bytes=48 * 1024 * 1024, max_rows=128):
    if row_tile is not None:
        assert H % row_tile == 0, "row_tile must divide H"
        assert row_tile == H or row_tile % 2 == 0, "row_tile must be even or H"
        return row_tile
    even_divs = [d for d in range(2, min(H, max_rows) + 1, 2) if H % d == 0]
    for th in sorted(even_divs, reverse=True):
        if _estimate_tile_vmem_bytes(th, W, Cin, Cmid, Cout,
                                     per_tap1, per_tap2) <= vmem_budget_bytes:
            return th
    if even_divs:
        return even_divs[0]
    # TODO(synk): masked ragged last tile instead of a full-height fallback.
    return H


# ---------------------------------------------------------------------------
# Wrappers
# ---------------------------------------------------------------------------
def _prep_layer(p):
    w = p["w"]                                                  # (3,3,Cin,Cout)
    wf = w.reshape(-1, w.shape[-1]).astype(jnp.bfloat16)        # (9*Cin, Cout)
    sb = jnp.stack([p["scale"], p["bias"]]).astype(jnp.float32)  # (2, Cout)
    return wf, sb


def unetplus2d_down_nhwc(x_nhwc, params, row_tile=None, *,
                         out_dtype=jnp.bfloat16,
                         per_tap_min_channels=128,
                         force_per_tap=None,
                         vmem_limit_bytes=64 * 1024 * 1024,
                         vmem_budget_bytes=48 * 1024 * 1024):
    """Fused forward in NHWC. params = [layer1, layer2] (module default n=2)."""
    assert len(params) == 2, "fused kernel implements the module default n=2"
    N, H, W, Cin = x_nhwc.shape
    assert H >= 2, "H must be >= 2"
    Cmid = params[0]["w"].shape[-1]
    Cout = params[1]["w"].shape[-1]
    assert params[1]["w"].shape[2] == Cmid

    if force_per_tap is None:
        per_tap1 = Cin >= per_tap_min_channels
        per_tap2 = Cmid >= per_tap_min_channels
    else:
        per_tap1 = per_tap2 = bool(force_per_tap)

    TH = _pick_row_tile(H, W, Cin, Cmid, Cout, per_tap1, per_tap2,
                        row_tile=row_tile, vmem_budget_bytes=vmem_budget_bytes)
    R = H // TH

    w1f, sb1 = _prep_layer(params[0])
    w2f, sb2 = _prep_layer(params[1])
    x_lp = x_nhwc.astype(jnp.bfloat16)   # bf16 activations into the kernel

    # Halo BlockSpecs: 2-row blocks of the input, block index clamped at the
    # image boundaries (contents are ignored/zeroed in the kernel there).
    if R == 1:
        top_map = lambda n, r: (n, 0, 0, 0)
        bot_map = lambda n, r: (n, 0, 0, 0)
    else:
        th2 = TH // 2
        nblk2 = H // 2
        top_map = lambda n, r: (n, jnp.maximum(r * th2 - 1, 0), 0, 0)
        bot_map = lambda n, r: (n, jnp.minimum((r + 1) * th2, nblk2 - 1), 0, 0)

    kernel = functools.partial(_fused_conv_bn_relu_x2_kernel,
                               per_tap1=per_tap1, per_tap2=per_tap2)

    return pl.pallas_call(
        kernel,
        out_shape=jax.ShapeDtypeStruct((N, H, W, Cout), out_dtype),
        grid_spec=pltpu.PrefetchScalarGridSpec(
            num_scalar_prefetch=0,
            grid=(N, R),
            in_specs=[
                # core rows of this tile (streamed, not whole-image resident)
                pl.BlockSpec((1, TH, W, Cin), lambda n, r: (n, r, 0, 0)),
                # 2-row top / bottom halos
                pl.BlockSpec((1, 2, W, Cin), top_map),
                pl.BlockSpec((1, 2, W, Cin), bot_map),
                # TODO(synk): pl.Buffered(1) on these constant-index operands
                # to reclaim their double-buffer VMEM on v7x.
                pl.BlockSpec((9 * Cin, Cmid), lambda n, r: (0, 0)),
                pl.BlockSpec((2, Cmid), lambda n, r: (0, 0)),
                pl.BlockSpec((9 * Cmid, Cout), lambda n, r: (0, 0)),
                pl.BlockSpec((2, Cout), lambda n, r: (0, 0)),
            ],
            out_specs=pl.BlockSpec((1, TH, W, Cout), lambda n, r: (n, r, 0, 0)),
            scratch_shapes=[
                pltpu.VMEM((TH + 4, W + 2, Cin), jnp.bfloat16),
                pltpu.VMEM((TH + 2, W + 2, Cmid), jnp.bfloat16),
            ],
        ),
        compiler_params=pltpu.CompilerParams(
            dimension_semantics=("parallel", "parallel"),
            # Safe on every generation (<= v7x physical); raise to 96-128 MiB
            # on v5e/v6e via the wrapper argument for larger row tiles.
            vmem_limit_bytes=vmem_limit_bytes,
        ),
    )(x_lp, x_lp, x_lp, w1f, sb1, w2f, sb2)


@functools.partial(jax.jit,
                   static_argnames=("row_tile", "force_per_tap", "out_dtype"))
def unetplus2d_down_forward(x_nchw, params, row_tile=None, force_per_tap=None,
                            out_dtype=jnp.bfloat16):
    """Drop-in NCHW interface matching the PyTorch module's forward."""
    x = jnp.transpose(x_nchw, (0, 2, 3, 1))            # NCHW -> NHWC
    y = unetplus2d_down_nhwc(x, params, row_tile=row_tile,
                             force_per_tap=force_per_tap, out_dtype=out_dtype)
    return jnp.transpose(y, (0, 3, 1, 2))              # NHWC -> NCHW


# ---------------------------------------------------------------------------
# Parameter init (kaiming-style conv weights, eval-mode BN folded)
# ---------------------------------------------------------------------------
def init_unetplus2d_down(key, in_size, out_size, n=2, ks=3, eps=1e-5,
                         is_batchnorm=True):
    params = []
    cin = in_size
    for _ in range(n):
        key, kw, kg, kb = jax.random.split(key, 4)
        fan_in = cin * ks * ks
        std = (2.0 / fan_in) ** 0.5  # kaiming_normal, relu gain
        w = std * jax.random.normal(kw, (ks, ks, cin, out_size), jnp.float32)
        conv_bias = jnp.zeros((out_size,), jnp.float32)
        if is_batchnorm:
            gamma = 1.0 + 0.1 * jax.random.normal(kg, (out_size,), jnp.float32)
            beta = 0.1 * jax.random.normal(kb, (out_size,), jnp.float32)
            running_mean = jnp.zeros((out_size,), jnp.float32)
            running_var = jnp.ones((out_size,), jnp.float32)
            inv = gamma / jnp.sqrt(running_var + eps)
            scale = inv
            bias = (conv_bias - running_mean) * inv + beta
        else:
            scale = jnp.ones((out_size,), jnp.float32)
            bias = conv_bias
        params.append({"w": w, "scale": scale, "bias": bias})
        cin = out_size
    return params


# ---------------------------------------------------------------------------
# Pure-JAX reference (mirrors kernel numerics: bf16 in, f32 accum, bf16 out)
# ---------------------------------------------------------------------------
def _ref_forward_nhwc(x_nhwc, params, out_dtype=jnp.bfloat16):
    x = x_nhwc.astype(jnp.bfloat16).astype(jnp.float32)
    y = x
    for p in params:
        w = p["w"].astype(jnp.bfloat16).astype(jnp.float32)
        y = jax.lax.conv_general_dilated(
            x, w, window_strides=(1, 1), padding=((1, 1), (1, 1)),
            dimension_numbers=("NHWC", "HWIO", "NHWC"),
            preferred_element_type=jnp.float32)
        y = jnp.maximum(y * p["scale"][None, None, None, :]
                        + p["bias"][None, None, None, :], 0.0)
        x = y.astype(jnp.bfloat16).astype(jnp.float32)  # next layer's input
    return y.astype(out_dtype).astype(jnp.float32)


def _ref_forward_nchw(x_nchw, params, out_dtype=jnp.bfloat16):
    x = jnp.transpose(x_nchw, (0, 2, 3, 1))
    y = _ref_forward_nhwc(x, params, out_dtype=out_dtype)
    return jnp.transpose(y, (0, 3, 1, 2))


# ---------------------------------------------------------------------------
# Self-test
# ---------------------------------------------------------------------------
if __name__ == "__main__":
    root = jax.random.PRNGKey(0)

    def check(cfg_key, N, Cin, Cout, H, W, row_tile, force_per_tap=None):
        kp, kx = jax.random.split(cfg_key)
        params = init_unetplus2d_down(kp, Cin, Cout, n=2, ks=3)
        x = jax.random.normal(kx, (N, Cin, H, W), jnp.float32)
        out = jax.block_until_ready(
            unetplus2d_down_forward(x, params, row_tile=row_tile,
                                    force_per_tap=force_per_tap))
        ref = _ref_forward_nchw(x, params)
        assert out.shape == (N, Cout, H, W), out.shape
        out32 = out.astype(jnp.float32)
        err = float(jnp.max(jnp.abs(out32 - ref)))
        assert jnp.allclose(out32, ref, atol=2e-2, rtol=2e-2), err
        return err

    k1, k2, k3 = jax.random.split(root, 3)
    # 2 row tiles: exercises top + bottom edge tiles and the halo fetches
    check(k1, N=2, Cin=4, Cout=8, H=16, W=16, row_tile=8)
    # 3 row tiles: interior tile with both halos, odd Cin, folded im2col path
    check(k2, N=1, Cin=3, Cout=16, H=12, W=20, row_tile=4)
    # auto row tile (single-tile path) + forced per-tap accumulation path
    check(k3, N=2, Cin=4, Cout=8, H=16, W=16, row_tile=None,
          force_per_tap=True)

    print("KERNEL_OK")
</pallas_src>

<mosaic_0001>
module attributes {stable_mosaic.version = 11 : i64} {
  func.func @_fused_conv_bn_relu_x2_kernel(%arg0: i32, %arg1: i32, %arg2: memref<1x8x16x4xbf16, #tpu.memory_space<vmem>>, %arg3: memref<1x2x16x4xbf16, #tpu.memory_space<vmem>>, %arg4: memref<1x2x16x4xbf16, #tpu.memory_space<vmem>>, %arg5: memref<36x8xbf16, #tpu.memory_space<vmem>>, %arg6: memref<2x8xf32, #tpu.memory_space<vmem>>, %arg7: memref<72x8xbf16, #tpu.memory_space<vmem>>, %arg8: memref<2x8xf32, #tpu.memory_space<vmem>>, %arg9: memref<1x8x16x8xbf16, #tpu.memory_space<vmem>>, %arg10: memref<12x18x4xbf16, #tpu.memory_space<vmem>>, %arg11: memref<10x18x8xbf16, #tpu.memory_space<vmem>>) attributes {dimension_semantics = [#tpu.dimension_semantics<parallel>, #tpu.dimension_semantics<parallel>], iteration_bounds = array<i64: 2, 2>, scalar_prefetch = 0 : i64, scratch_operands = 2 : i64, tpu.core_type = #tpu.core_type<tc>, window_params = [{transform_indices = @transform_0, window_bounds = array<i64: 1, 8, 16, 4>}, {transform_indices = @transform_1, window_bounds = array<i64: 1, 2, 16, 4>}, {transform_indices = @transform_2, window_bounds = array<i64: 1, 2, 16, 4>}, {pipeline_mode = #tpu.pipeline_mode<synchronous>, transform_indices = @transform_3, window_bounds = array<i64: 36, 8>}, {pipeline_mode = #tpu.pipeline_mode<synchronous>, transform_indices = @transform_4, window_bounds = array<i64: 2, 8>}, {pipeline_mode = #tpu.pipeline_mode<synchronous>, transform_indices = @transform_5, window_bounds = array<i64: 72, 8>}, {pipeline_mode = #tpu.pipeline_mode<synchronous>, transform_indices = @transform_6, window_bounds = array<i64: 2, 8>}, {transform_indices = @transform_7, window_bounds = array<i64: 1, 8, 16, 8>}]} {
    %cst = arith.constant 0.000000e+00 : bf16
    %0 = vector.broadcast %cst : bf16 to vector<12x1x4xbf16>
    %c0 = arith.constant 0 : index
    %c0_0 = arith.constant 0 : index
    %c0_1 = arith.constant 0 : index
    %1 = vector.load %arg10[%c0, %c0_0, %c0_1] : memref<12x18x4xbf16, #tpu.memory_space<vmem>>, vector<12x1x4xbf16>
    tpu.vector_store %arg10[%c0, %c0_0, %c0_1], %0 {strides = array<i32>} : memref<12x18x4xbf16, #tpu.memory_space<vmem>>, vector<12x1x4xbf16>,
    %c0_2 = arith.constant 0 : index
    %c17 = arith.constant 17 : index
    %c0_3 = arith.constant 0 : index
    %2 = vector.load %arg10[%c0_2, %c17, %c0_3] : memref<12x18x4xbf16, #tpu.memory_space<vmem>>, vector<12x1x4xbf16>
    tpu.vector_store %arg10[%c0_2, %c17, %c0_3], %0 {strides = array<i32>} : memref<12x18x4xbf16, #tpu.memory_space<vmem>>, vector<12x1x4xbf16>,
    %c0_4 = arith.constant 0 : index
    %c0_5 = arith.constant 0 : index
    %c0_6 = arith.constant 0 : index
    %c0_7 = arith.constant 0 : index
    %3 = vector.load %arg2[%c0_4, %c0_5, %c0_6, %c0_7] : memref<1x8x16x4xbf16, #tpu.memory_space<vmem>>, vector<1x8x16x4xbf16>
    %4 = vector.shape_cast %3 : vector<1x8x16x4xbf16> to vector<8x16x4xbf16>
    %c2 = arith.constant 2 : index
    %c1 = arith.constant 1 : index
    %c0_8 = arith.constant 0 : index
    %5 = vector.load %arg10[%c2, %c1, %c0_8] : memref<12x18x4xbf16, #tpu.memory_space<vmem>>, vector<8x16x4xbf16>
    tpu.vector_store %arg10[%c2, %c1, %c0_8], %4 {strides = array<i32>} : memref<12x18x4xbf16, #tpu.memory_space<vmem>>, vector<8x16x4xbf16>,
    %c0_i32 = arith.constant 0 : i32
    %6 = arith.cmpi sgt, %arg1, %c0_i32 : i32
    %7 = arith.extui %6 : i1 to i32
    %c0_i32_9 = arith.constant 0 : i32
    %8 = arith.cmpi ne, %7, %c0_i32_9 : i32
    scf.if %8 {
      %c0_103 = arith.constant 0 : index
      %c0_104 = arith.constant 0 : index
      %c0_105 = arith.constant 0 : index
      %c0_106 = arith.constant 0 : index
      %77 = vector.load %arg3[%c0_103, %c0_104, %c0_105, %c0_106] : memref<1x2x16x4xbf16, #tpu.memory_space<vmem>>, vector<1x2x16x4xbf16>
      %78 = vector.shape_cast %77 : vector<1x2x16x4xbf16> to vector<2x16x4xbf16>
      %c0_107 = arith.constant 0 : index
      %c1_108 = arith.constant 1 : index
      %c0_109 = arith.constant 0 : index
      %79 = vector.load %arg10[%c0_107, %c1_108, %c0_109] : memref<12x18x4xbf16, #tpu.memory_space<vmem>>, vector<2x16x4xbf16>
      tpu.vector_store %arg10[%c0_107, %c1_108, %c0_109], %78 {strides = array<i32>} : memref<12x18x4xbf16, #tpu.memory_space<vmem>>, vector<2x16x4xbf16>,
    } else {
    }
    %c0_i32_10 = arith.constant 0 : i32
    %9 = arith.cmpi eq, %arg1, %c0_i32_10 : i32
    %10 = arith.extui %9 : i1 to i32
    %c0_i32_11 = arith.constant 0 : i32
    %11 = arith.cmpi ne, %10, %c0_i32_11 : i32
    scf.if %11 {
      %cst_103 = arith.constant 0.000000e+00 : bf16
      %77 = vector.broadcast %cst_103 : bf16 to vector<2x16x4xbf16>
      %c0_104 = arith.constant 0 : index
      %c1_105 = arith.constant 1 : index
      %c0_106 = arith.constant 0 : index
      %78 = vector.load %arg10[%c0_104, %c1_105, %c0_106] : memref<12x18x4xbf16, #tpu.memory_space<vmem>>, vector<2x16x4xbf16>
      tpu.vector_store %arg10[%c0_104, %c1_105, %c0_106], %77 {strides = array<i32>} : memref<12x18x4xbf16, #tpu.memory_space<vmem>>, vector<2x16x4xbf16>,
    } else {
    }
    %c1_i32 = arith.constant 1 : i32
    %12 = arith.cmpi slt, %arg1, %c1_i32 : i32
    %13 = arith.extui %12 : i1 to i32
    %c0_i32_12 = arith.constant 0 : i32
    %14 = arith.cmpi ne, %13, %c0_i32_12 : i32
    scf.if %14 {
      %c0_103 = arith.constant 0 : index
      %c0_104 = arith.constant 0 : index
      %c0_105 = arith.constant 0 : index
      %c0_106 = arith.constant 0 : index
      %77 = vector.load %arg4[%c0_103, %c0_104, %c0_105, %c0_106] : memref<1x2x16x4xbf16, #tpu.memory_space<vmem>>, vector<1x2x16x4xbf16>
      %78 = vector.shape_cast %77 : vector<1x2x16x4xbf16> to vector<2x16x4xbf16>
      %c10 = arith.constant 10 : index
      %c1_107 = arith.constant 1 : index
      %c0_108 = arith.constant 0 : index
      %79 = vector.load %arg10[%c10, %c1_107, %c0_108] : memref<12x18x4xbf16, #tpu.memory_space<vmem>>, vector<2x16x4xbf16>
      tpu.vector_store %arg10[%c10, %c1_107, %c0_108], %78 {strides = array<i32>} : memref<12x18x4xbf16, #tpu.memory_space<vmem>>, vector<2x16x4xbf16>,
    } else {
    }
    %c1_i32_13 = arith.constant 1 : i32
    %15 = arith.cmpi eq, %arg1, %c1_i32_13 : i32
    %16 = arith.extui %15 : i1 to i32
    %c0_i32_14 = arith.constant 0 : i32
    %17 = arith.cmpi ne, %16, %c0_i32_14 : i32
    scf.if %17 {
      %cst_103 = arith.constant 0.000000e+00 : bf16
      %77 = vector.broadcast %cst_103 : bf16 to vector<2x16x4xbf16>
      %c10 = arith.constant 10 : index
      %c1_104 = arith.constant 1 : index
      %c0_105 = arith.constant 0 : index
      %78 = vector.load %arg10[%c10, %c1_104, %c0_105] : memref<12x18x4xbf16, #tpu.memory_space<vmem>>, vector<2x16x4xbf16>
      tpu.vector_store %arg10[%c10, %c1_104, %c0_105], %77 {strides = array<i32>} : memref<12x18x4xbf16, #tpu.memory_space<vmem>>, vector<2x16x4xbf16>,
    } else {
    }
    %c0_15 = arith.constant 0 : index
    %c0_16 = arith.constant 0 : index
    %c0_17 = arith.constant 0 : index
    %18 = vector.load %arg10[%c0_15, %c0_16, %c0_17] : memref<12x18x4xbf16, #tpu.memory_space<vmem>>, vector<10x16x4xbf16>
    %c0_18 = arith.constant 0 : index
    %c1_19 = arith.constant 1 : index
    %c0_20 = arith.constant 0 : index
    %19 = vector.load %arg10[%c0_18, %c1_19, %c0_20] : memref<12x18x4xbf16, #tpu.memory_space<vmem>>, vector<10x16x4xbf16>
    %c0_21 = arith.constant 0 : index
    %c2_22 = arith.constant 2 : index
    %c0_23 = arith.constant 0 : index
    %20 = vector.load %arg10[%c0_21, %c2_22, %c0_23] : memref<12x18x4xbf16, #tpu.memory_space<vmem>>, vector<10x16x4xbf16>
    %c1_24 = arith.constant 1 : index
    %c0_25 = arith.constant 0 : index
    %c0_26 = arith.constant 0 : index
    %21 = vector.load %arg10[%c1_24, %c0_25, %c0_26] : memref<12x18x4xbf16, #tpu.memory_space<vmem>>, vector<10x16x4xbf16>
    %c1_27 = arith.constant 1 : index
    %c1_28 = arith.constant 1 : index
    %c0_29 = arith.constant 0 : index
    %22 = vector.load %arg10[%c1_27, %c1_28, %c0_29] : memref<12x18x4xbf16, #tpu.memory_space<vmem>>, vector<10x16x4xbf16>
    %c1_30 = arith.constant 1 : index
    %c2_31 = arith.constant 2 : index
    %c0_32 = arith.constant 0 : index
    %23 = vector.load %arg10[%c1_30, %c2_31, %c0_32] : memref<12x18x4xbf16, #tpu.memory_space<vmem>>, vector<10x16x4xbf16>
    %c2_33 = arith.constant 2 : index
    %c0_34 = arith.constant 0 : index
    %c0_35 = arith.constant 0 : index
    %24 = vector.load %arg10[%c2_33, %c0_34, %c0_35] : memref<12x18x4xbf16, #tpu.memory_space<vmem>>, vector<10x16x4xbf16>
    %c2_36 = arith.constant 2 : index
    %c1_37 = arith.constant 1 : index
    %c0_38 = arith.constant 0 : index
    %25 = vector.load %arg10[%c2_36, %c1_37, %c0_38] : memref<12x18x4xbf16, #tpu.memory_space<vmem>>, vector<10x16x4xbf16>
    %c2_39 = arith.constant 2 : index
    %c2_40 = arith.constant 2 : index
    %c0_41 = arith.constant 0 : index
    %26 = vector.load %arg10[%c2_39, %c2_40, %c0_41] : memref<12x18x4xbf16, #tpu.memory_space<vmem>>, vector<10x16x4xbf16>
    %27 = tpu.concatenate %18, %19, %20, %21, %22, %23, %24, %25, %26 in 2 : vector<10x16x4xbf16>, vector<10x16x4xbf16>, vector<10x16x4xbf16>, vector<10x16x4xbf16>, vector<10x16x4xbf16>, vector<10x16x4xbf16>, vector<10x16x4xbf16>, vector<10x16x4xbf16>, vector<10x16x4xbf16> -> vector<10x16x36xbf16>
    %28 = vector.shape_cast %27 : vector<10x16x36xbf16> to vector<160x36xbf16>
    %c0_42 = arith.constant 0 : index
    %c0_43 = arith.constant 0 : index
    %29 = vector.load %arg5[%c0_42, %c0_43] : memref<36x8xbf16, #tpu.memory_space<vmem>>, vector<36x8xbf16>
    %cst_44 = arith.constant dense<0.000000e+00> : vector<160x8xf32>
    %30 = tpu.matmul %28, %29, %cst_44 {dimension_numbers = #tpu.dot_dimension_numbers<[1], [0], [0], [1], [0, 0, 1, 1], [], []>} : vector<160x36xbf16>, vector<36x8xbf16>, vector<160x8xf32> -> vector<160x8xf32>
    %c0_45 = arith.constant 0 : index
    %c0_46 = arith.constant 0 : index
    %31 = vector.load %arg6[%c0_45, %c0_46] : memref<2x8xf32, #tpu.memory_space<vmem>>, vector<1x8xf32>
    %32 = vector.broadcast %31 : vector<1x8xf32> to vector<160x8xf32>
    %33 = arith.mulf %30, %32 : vector<160x8xf32>
    %c1_47 = arith.constant 1 : index
    %c0_48 = arith.constant 0 : index
    %34 = vector.load %arg6[%c1_47, %c0_48] : memref<2x8xf32, #tpu.memory_space<vmem>>, vector<1x8xf32>
    %35 = vector.broadcast %34 : vector<1x8xf32> to vector<160x8xf32>
    %36 = arith.addf %33, %35 : vector<160x8xf32>
    %cst_49 = arith.constant 0.000000e+00 : f32
    %37 = vector.broadcast %cst_49 : f32 to vector<160x8xf32>
    %38 = arith.maximumf %36, %37 : vector<160x8xf32>
    %cst_50 = arith.constant 0.000000e+00 : bf16
    %39 = vector.broadcast %cst_50 : bf16 to vector<10x1x8xbf16>
    %c0_51 = arith.constant 0 : index
    %c0_52 = arith.constant 0 : index
    %c0_53 = arith.constant 0 : index
    %40 = vector.load %arg11[%c0_51, %c0_52, %c0_53] : memref<10x18x8xbf16, #tpu.memory_space<vmem>>, vector<10x1x8xbf16>
    tpu.vector_store %arg11[%c0_51, %c0_52, %c0_53], %39 {strides = array<i32>} : memref<10x18x8xbf16, #tpu.memory_space<vmem>>, vector<10x1x8xbf16>,
    %c0_54 = arith.constant 0 : index
    %c17_55 = arith.constant 17 : index
    %c0_56 = arith.constant 0 : index
    %41 = vector.load %arg11[%c0_54, %c17_55, %c0_56] : memref<10x18x8xbf16, #tpu.memory_space<vmem>>, vector<10x1x8xbf16>
    tpu.vector_store %arg11[%c0_54, %c17_55, %c0_56], %39 {strides = array<i32>} : memref<10x18x8xbf16, #tpu.memory_space<vmem>>, vector<10x1x8xbf16>,
    %42 = vector.shape_cast %38 : vector<160x8xf32> to vector<10x16x8xf32>
    %43 = arith.truncf %42 : vector<10x16x8xf32> to vector<10x16x8xbf16>
    %c0_57 = arith.constant 0 : index
    %c1_58 = arith.constant 1 : index
    %c0_59 = arith.constant 0 : index
    %44 = vector.load %arg11[%c0_57, %c1_58, %c0_59] : memref<10x18x8xbf16, #tpu.memory_space<vmem>>, vector<10x16x8xbf16>
    tpu.vector_store %arg11[%c0_57, %c1_58, %c0_59], %43 {strides = array<i32>} : memref<10x18x8xbf16, #tpu.memory_space<vmem>>, vector<10x16x8xbf16>,
    %c0_i32_60 = arith.constant 0 : i32
    %45 = arith.cmpi eq, %arg1, %c0_i32_60 : i32
    %46 = arith.extui %45 : i1 to i32
    %c0_i32_61 = arith.constant 0 : i32
    %47 = arith.cmpi ne, %46, %c0_i32_61 : i32
    scf.if %47 {
      %cst_103 = arith.constant 0.000000e+00 : bf16
      %77 = vector.broadcast %cst_103 : bf16 to vector<1x16x8xbf16>
      %c0_104 = arith.constant 0 : index
      %c1_105 = arith.constant 1 : index
      %c0_106 = arith.constant 0 : index
      %78 = vector.load %arg11[%c0_104, %c1_105, %c0_106] : memref<10x18x8xbf16, #tpu.memory_space<vmem>>, vector<1x16x8xbf16>
      tpu.vector_store %arg11[%c0_104, %c1_105, %c0_106], %77 {strides = array<i32>} : memref<10x18x8xbf16, #tpu.memory_space<vmem>>, vector<1x16x8xbf16>,
    } else {
    }
    %c1_i32_62 = arith.constant 1 : i32
    %48 = arith.cmpi eq, %arg1, %c1_i32_62 : i32
    %49 = arith.extui %48 : i1 to i32
    %c0_i32_63 = arith.constant 0 : i32
    %50 = arith.cmpi ne, %49, %c0_i32_63 : i32
    scf.if %50 {
      %cst_103 = arith.constant 0.000000e+00 : bf16
      %77 = vector.broadcast %cst_103 : bf16 to vector<1x16x8xbf16>
      %c9 = arith.constant 9 : index
      %c1_104 = arith.constant 1 : index
      %c0_105 = arith.constant 0 : index
      %78 = vector.load %arg11[%c9, %c1_104, %c0_105] : memref<10x18x8xbf16, #tpu.memory_space<vmem>>, vector<1x16x8xbf16>
      tpu.vector_store %arg11[%c9, %c1_104, %c0_105], %77 {strides = array<i32>} : memref<10x18x8xbf16, #tpu.memory_space<vmem>>, vector<1x16x8xbf16>,
    } else {
    }
    %c0_64 = arith.constant 0 : index
    %c0_65 = arith.constant 0 : index
    %c0_66 = arith.constant 0 : index
    %51 = vector.load %arg11[%c0_64, %c0_65, %c0_66] : memref<10x18x8xbf16, #tpu.memory_space<vmem>>, vector<8x16x8xbf16>
    %c0_67 = arith.constant 0 : index
    %c1_68 = arith.constant 1 : index
    %c0_69 = arith.constant 0 : index
    %52 = vector.load %arg11[%c0_67, %c1_68, %c0_69] : memref<10x18x8xbf16, #tpu.memory_space<vmem>>, vector<8x16x8xbf16>
    %c0_70 = arith.constant 0 : index
    %c2_71 = arith.constant 2 : index
    %c0_72 = arith.constant 0 : index
    %53 = vector.load %arg11[%c0_70, %c2_71, %c0_72] : memref<10x18x8xbf16, #tpu.memory_space<vmem>>, vector<8x16x8xbf16>
    %c1_73 = arith.constant 1 : index
    %c0_74 = arith.constant 0 : index
    %c0_75 = arith.constant 0 : index
    %54 = vector.load %arg11[%c1_73, %c0_74, %c0_75] : memref<10x18x8xbf16, #tpu.memory_space<vmem>>, vector<8x16x8xbf16>
    %c1_76 = arith.constant 1 : index
    %c1_77 = arith.constant 1 : index
    %c0_78 = arith.constant 0 : index
    %55 = vector.load %arg11[%c1_76, %c1_77, %c0_78] : memref<10x18x8xbf16, #tpu.memory_space<vmem>>, vector<8x16x8xbf16>
    %c1_79 = arith.constant 1 : index
    %c2_80 = arith.constant 2 : index
    %c0_81 = arith.constant 0 : index
    %56 = vector.load %arg11[%c1_79, %c2_80, %c0_81] : memref<10x18x8xbf16, #tpu.memory_space<vmem>>, vector<8x16x8xbf16>
    %c2_82 = arith.constant 2 : index
    %c0_83 = arith.constant 0 : index
    %c0_84 = arith.constant 0 : index
    %57 = vector.load %arg11[%c2_82, %c0_83, %c0_84] : memref<10x18x8xbf16, #tpu.memory_space<vmem>>, vector<8x16x8xbf16>
    %c2_85 = arith.constant 2 : index
    %c1_86 = arith.constant 1 : index
    %c0_87 = arith.constant 0 : index
    %58 = vector.load %arg11[%c2_85, %c1_86, %c0_87] : memref<10x18x8xbf16, #tpu.memory_space<vmem>>, vector<8x16x8xbf16>
    %c2_88 = arith.constant 2 : index
    %c2_89 = arith.constant 2 : index
    %c0_90 = arith.constant 0 : index
    %59 = vector.load %arg11[%c2_88, %c2_89, %c0_90] : memref<10x18x8xbf16, #tpu.memory_space<vmem>>, vector<8x16x8xbf16>
    %60 = tpu.concatenate %51, %52, %53, %54, %55, %56, %57, %58, %59 in 2 : vector<8x16x8xbf16>, vector<8x16x8xbf16>, vector<8x16x8xbf16>, vector<8x16x8xbf16>, vector<8x16x8xbf16>, vector<8x16x8xbf16>, vector<8x16x8xbf16>, vector<8x16x8xbf16>, vector<8x16x8xbf16> -> vector<8x16x72xbf16>
    %61 = vector.shape_cast %60 : vector<8x16x72xbf16> to vector<128x72xbf16>
    %c0_91 = arith.constant 0 : index
    %c0_92 = arith.constant 0 : index
    %62 = vector.load %arg7[%c0_91, %c0_92] : memref<72x8xbf16, #tpu.memory_space<vmem>>, vector<72x8xbf16>
    %cst_93 = arith.constant dense<0.000000e+00> : vector<128x8xf32>
    %63 = tpu.matmul %61, %62, %cst_93 {dimension_numbers = #tpu.dot_dimension_numbers<[1], [0], [0], [1], [0, 0, 1, 1], [], []>} : vector<128x72xbf16>, vector<72x8xbf16>, vector<128x8xf32> -> vector<128x8xf32>
    %c0_94 = arith.constant 0 : index
    %c0_95 = arith.constant 0 : index
    %64 = vector.load %arg8[%c0_94, %c0_95] : memref<2x8xf32, #tpu.memory_space<vmem>>, vector<1x8xf32>
    %65 = vector.broadcast %64 : vector<1x8xf32> to vector<128x8xf32>
    %66 = arith.mulf %63, %65 : vector<128x8xf32>
    %c1_96 = arith.constant 1 : index
    %c0_97 = arith.constant 0 : index
    %67 = vector.load %arg8[%c1_96, %c0_97] : memref<2x8xf32, #tpu.memory_space<vmem>>, vector<1x8xf32>
    %68 = vector.broadcast %67 : vector<1x8xf32> to vector<128x8xf32>
    %69 = arith.addf %66, %68 : vector<128x8xf32>
    %cst_98 = arith.constant 0.000000e+00 : f32
    %70 = vector.broadcast %cst_98 : f32 to vector<128x8xf32>
    %71 = arith.maximumf %69, %70 : vector<128x8xf32>
    %72 = vector.shape_cast %71 : vector<128x8xf32> to vector<8x16x8xf32>
    %73 = arith.truncf %72 : vector<8x16x8xf32> to vector<8x16x8xbf16>
    %c0_99 = arith.constant 0 : index
    %c0_100 = arith.constant 0 : index
    %c0_101 = arith.constant 0 : index
    %c0_102 = arith.constant 0 : index
    %74 = vector.load %arg9[%c0_99, %c0_100, %c0_101, %c0_102] : memref<1x8x16x8xbf16, #tpu.memory_space<vmem>>, vector<1x8x16x8xbf16>
    %75 = vector.shape_cast %74 : vector<1x8x16x8xbf16> to vector<8x16x8xbf16>
    %76 = vector.shape_cast %73 : vector<8x16x8xbf16> to vector<1x8x16x8xbf16>
    tpu.vector_store %arg9[%c0_99, %c0_100, %c0_101, %c0_102], %76 {strides = array<i32>} : memref<1x8x16x8xbf16, #tpu.memory_space<vmem>>, vector<1x8x16x8xbf16>,
    return
  }
  func.func @transform_0(%arg0: i32, %arg1: i32) -> (i32, i32, i32, i32) {
    %c0_i32 = arith.constant 0 : i32
    %c0_i32_0 = arith.constant 0 : i32
    %c0_i32_1 = arith.constant 0 : i32
    return %arg0, %arg1, %c0_i32, %c0_i32_0 : i32, i32, i32, i32
  }
  func.func @transform_1(%arg0: i32, %arg1: i32) -> (i32, i32, i32, i32) {
    %c4_i32 = arith.constant 4 : i32
    %0 = arith.muli %arg1, %c4_i32 : i32
    %c1_i32 = arith.constant 1 : i32
    %1 = arith.subi %0, %c1_i32 : i32
    %c0_i32 = arith.constant 0 : i32
    %2 = arith.maxsi %1, %c0_i32 : i32
    %c0_i32_0 = arith.constant 0 : i32
    %c0_i32_1 = arith.constant 0 : i32
    %c0_i32_2 = arith.constant 0 : i32
    return %arg0, %2, %c0_i32_0, %c0_i32_1 : i32, i32, i32, i32
  }
  func.func @transform_2(%arg0: i32, %arg1: i32) -> (i32, i32, i32, i32) {
    %c1_i32 = arith.constant 1 : i32
    %0 = arith.addi %arg1, %c1_i32 : i32
    %c4_i32 = arith.constant 4 : i32
    %1 = arith.muli %0, %c4_i32 : i32
    %c7_i32 = arith.constant 7 : i32
    %2 = arith.minsi %1, %c7_i32 : i32
    %c0_i32 = arith.constant 0 : i32
    %c0_i32_0 = arith.constant 0 : i32
    %c0_i32_1 = arith.constant 0 : i32
    return %arg0, %2, %c0_i32, %c0_i32_0 : i32, i32, i32, i32
  }
  func.func @transform_3(%arg0: i32, %arg1: i32) -> (i32, i32) {
    %c0_i32 = arith.constant 0 : i32
    %c0_i32_0 = arith.constant 0 : i32
    %c0_i32_1 = arith.constant 0 : i32
    return %c0_i32, %c0_i32_0 : i32, i32
  }
  func.func @transform_4(%arg0: i32, %arg1: i32) -> (i32, i32) {
    %c0_i32 = arith.constant 0 : i32
    %c0_i32_0 = arith.constant 0 : i32
    %c0_i32_1 = arith.constant 0 : i32
    return %c0_i32, %c0_i32_0 : i32, i32
  }
  func.func @transform_5(%arg0: i32, %arg1: i32) -> (i32, i32) {
    %c0_i32 = arith.constant 0 : i32
    %c0_i32_0 = arith.constant 0 : i32
    %c0_i32_1 = arith.constant 0 : i32
    return %c0_i32, %c0_i32_0 : i32, i32
  }
  func.func @transform_6(%arg0: i32, %arg1: i32) -> (i32, i32) {
    %c0_i32 = arith.constant 0 : i32
    %c0_i32_0 = arith.constant 0 : i32
    %c0_i32_1 = arith.constant 0 : i32
    return %c0_i32, %c0_i32_0 : i32, i32
  }
  func.func @transform_7(%arg0: i32, %arg1: i32) -> (i32, i32, i32, i32) {
    %c0_i32 = arith.constant 0 : i32
    %c0_i32_0 = arith.constant 0 : i32
    %c0_i32_1 = arith.constant 0 : i32
    return %arg0, %arg1, %c0_i32, %c0_i32_0 : i32, i32, i32, i32
  }
}

</mosaic_0001>

<bundles_post_ra>
// kernel: unetplus2d_down_forward.1
= control target key start
LH: loop header
LB: loop body
LE: loop exit
PB: predicated region body
PF: predicated region fallthrough
CT: control target
= control target key end

     0   :  { %s7286_s0 = inlined_call_operand.hbm [shape: bf16[2,16,16,4], index: 0, kind: input, shape index: {}, may-alias: {0,1,2}]   ;;  %s7287_s1 = inlined_call_operand.hbm [shape: bf16[2,16,16,4], index: 1, kind: input, shape index: {}, may-alias: {0,1,2}]   ;;  %s7288_s2 = inlined_call_operand.hbm [shape: bf16[2,16,16,4], index: 2, kind: input, shape index: {}, may-alias: {0,1,2}]   ;;  %s7289_s3 = inlined_call_operand.hbm [shape: bf16[36,8], index: 3, kind: input, shape index: {}]   ;;  %s7290_s4 = inlined_call_operand.hbm [shape: f32[2,8], index: 4, kind: input, shape index: {}]   ;;  %s7291_s5 = inlined_call_operand.hbm [shape: bf16[72,8], index: 5, kind: input, shape index: {}]   ;;  %s7292_s6 = inlined_call_operand.hbm [shape: f32[2,8], index: 6, kind: input, shape index: {}]   ;;  %s7293_s7 = inlined_call_operand.hbm [shape: bf16[2,16,16,8], index: 7, kind: output, shape index: {}]  }
   0x1   :  { %7326 = sst [smem:[#allocation37_spill]] %s7286_s0 }
   0x2   :  { %7327 = sst [smem:[#allocation38_spill]] %s7287_s1 }
   0x3   :  { %7328 = sst [smem:[#allocation39_spill]] %s7288_s2 }
   0x4   :  { %7329 = sst [smem:[#allocation40_spill]] %s7289_s3 }
   0x5   :  { %7330 = sst [smem:[#allocation41_spill]] %s7290_s4 }
   0x6   :  { %7331 = sst [smem:[#allocation42_spill]] %s7291_s5 }
   0x7   :  { %7332 = sst [smem:[#allocation43_spill]] %s7292_s6 }
   0x8   :  { %7333 = sst [smem:[#allocation44_spill]] %s7293_s7 }
   0x9   :  { %12 = vsyncpa [#allocation5], 0 }
   0xa   :  { %14 = vsyncpa [#allocation5 + $0x1], 0 }
   0xb   :  { %15 = vsyncpa [#allocation8], 0 }
   0xc   :  { %17 = vsyncpa [#allocation8 + $0x1], 0 }
   0xd   :  { %18 = vsyncpa [#allocation11], 0 }
   0xe   :  { %19 = vsyncpa [#allocation14], 0 }
   0xf   :  { %20 = vsyncpa [#allocation6], 0 }
  0x10   :  { %22 = vsyncpa [#allocation6 + $0x1], 0  ;;  %s5520_s24 = smov 0   ;;  %s5522_s25 = smov 0  }
  0x11   :  { %s5524_s26 = smov 0   ;;  %s5526_s27 = smov 0  }
  0x12   :  { %s5528_s28 = smov 0   ;;  %s5530_s29 = smov 0  }
  0x13   :  { %s5532_s30 = smov 0   ;;  %s5534_s8 = smov 0  }
  0x14   :  { %s5536_s9 = smov 0   ;;  %s5538_s10 = smov 0  }
  0x15   :  { %s5540_s11 = smov 0   ;;  %s5542_s12 = smov 0  }
  0x16   :  { %s5544_s13 = smov 0   ;;  %s5546_s14 = smov 0  }
  0x17 LB: > { %7334 = sst [smem:[#allocation23_spill]] %s5400_s24  ;;  %s5591_s15 = sadd.s32 4294967295, %s5452_s14   ;;  %s5452_s14 = sphi %s5546_s14, %s28_s14   ;;  %s5448_s13 = sphi %s5544_s13, %s7432_s13   ;;  %s5444_s12 = sphi %s5542_s12, %s7431_s12   ;;  %s5440_s11 = sphi %s5540_s11, %s7430_s11   ;;  %s5436_s10 = sphi %s5538_s10, %s7429_s10   ;;  %s5432_s9 = sphi %s5536_s9, %s7439_s9   ;;  %s5428_s8 = sphi %s5534_s8, %s7438_s8   ;;  %s5424_s30 = sphi %s5532_s30, %s7437_s30   ;;  %s5420_s29 = sphi %s5530_s29, %s7436_s29   ;;  %s5416_s28 = sphi %s5528_s28, %s7435_s28   ;;  %s5412_s27 = sphi %s5526_s27, %s7434_s27   ;;  %s5408_s26 = sphi %s5524_s26, %s7433_s26   ;;  %s5404_s25 = sphi %s5522_s25, %s7426_s25   ;;  %s5400_s24 = sphi %s5520_s24, %s7425_s24  }
  0x18   : > { %7335 = sst [smem:[#allocation24_spill]] %s5404_s25  ;;  %p4323_p0 = scmp.ge.s32.totalorder %s5452_s14, 1 }
  0x19   : > { %7336 = sst [smem:[#allocation25_spill]] %s5408_s26  ;;  %p7298_p1 = scmp.eq.s32.totalorder %s5591_s15, 0 }
  0x1a   : > { %7337 = sst [smem:[#allocation26_spill]] %s5416_s28  ;;  %p257_p2 = scmp.lt.s32.totalorder %s5452_s14, 5 }
  0x1b   : > { %7338 = sst [smem:[#allocation27_spill]] %s5436_s10  ;;  %s5454_s17 = smov [#allocation10]  }
  0x1c   : > { %7339 = sst [smem:[#allocation28_spill]] %s5440_s11  ;;  %p5596_p3 = pnand %p4323_p0, %p257_p2 }
  0x1d   : > { %7340 = sst [smem:[#allocation29_spill]] %s5444_s12  ;;  %s269_s18 = sshll.u32 %s5454_s17, 4  ;;  %s270_s18 = int_to_ptr.vmem [resolvable:$true] %s269_s18 }
  0x1e   : > { %7341 = sst [smem:[#allocation30_spill]] %s5448_s13  ;;  %p4747_p4 = pneg %p5596_p3 }
  0x1f   : > { %s7342_s16 = scalar_select %p5596_p3, 1, 0 }
  0x20   : > { %p5604_p5 = pnand %p4747_p4, %p7298_p1  ;;  %s5455_s20 = smov [#allocation13]  }
  0x21   : > { %7343 = sst [smem:[#allocation31_spill]] %s7342_s16  ;;  %s293_s21 = sshll.u32 %s5455_s20, 4  ;;  %s5608_s21 = int_to_ptr.vmem [resolvable:$true] %s293_s21 }
  0x22   : > { %s7344_s19 = scalar_select %p5604_p5, 1, 0 }
  0x23   : > { %s7345_s3 = sld [smem:[#allocation40_spill]]  ;;  %p5618_p7 = pneg %p5604_p5 }
  0x29   : > { %s5088_s7 = scalar_lea.hbm %s7345_s3, 320 }
  0x2a   : > { %p5089_p6 = scmp.ne.s32.totalorder %s7345_s3, %s5088_s7  ;;  %p5095_p10 = scmp.lt.u32.totalorder %s5088_s7, %s7345_s3 }
  0x2c   : > { %p5091_p8 = pnand %p5618_p7, %p5089_p6 }
  0x2e   : > { %p5092_p9 = pneg %p5091_p8 }
  0x30   : > { %p5097_p11 = pnand %p5095_p10, %p5092_p9 }
  0x32   : > { %5100 = shalt.err (!%p5097_p11)
}
  0x33   : > { %s5101_s22 = scalar_lea.vmem %s270_s18, 320  ;;  %p5109_p2 = scmp.lt.s32.totalorder %s270_s18, %s270_s18 }
  0x34   : > { %p5102_p12 = scmp.ne.s32.totalorder %s270_s18, %s5101_s22  ;;  %p5110_p4 = scmp.lt.s32.totalorder %s5101_s22, %s5101_s22 }
  0x36   : > { %p5104_p13 = pnand %p5102_p12, %p5618_p7  ;;  %p5111_p1 = por %p5110_p4, %p5109_p2 }
  0x38   : > { %p5105_p0 = pneg %p5104_p13 }
  0x3a   : > { %p5112_p3 = pnand %p5111_p1, %p5105_p0 }
  0x3c   : > { %5115 = shalt.err (!%p5112_p3)
}
  0x3d   : > { %s7303_s10 = smov 64   ;;  %s7305_s11 = smov 4  }
  0x3e   : > { %4750 = dma.hbm_to_vmem [thread:$0]  (!%p5604_p5), %s7345_s3, 320, %s270_s18, [#allocation11], %s7303_s10, %s7303_s10, %s7305_s11  }
  0x3f   : > { %s7347_s5 = sld [smem:[#allocation42_spill]] }
  0x45   : > { %s5116_s2 = scalar_lea.hbm %s7347_s5, 576 }
  0x46   : > { %p5117_p1 = scmp.ne.s32.totalorder %s7347_s5, %s5116_s2  ;;  %p5123_p8 = scmp.lt.u32.totalorder %s5116_s2, %s7347_s5 }
  0x48   : > { %p5119_p3 = pnand %p5117_p1, %p5618_p7 }
  0x4a   : > { %p5120_p6 = pneg %p5119_p3 }
  0x4c   : > { %p5125_p9 = pnand %p5123_p8, %p5120_p6 }
  0x4e   : > { %5128 = shalt.err (!%p5125_p9)
}
  0x4f   : > { %s5129_s18 = scalar_lea.vmem %s5608_s21, 576  ;;  %p5137_p13 = scmp.lt.s32.totalorder %s5608_s21, %s5608_s21 }
  0x50   : > { %p5130_p10 = scmp.ne.s32.totalorder %s5608_s21, %s5129_s18  ;;  %p5138_p0 = scmp.lt.s32.totalorder %s5129_s18, %s5129_s18 }
  0x52   : > { %p5132_p11 = pnand %p5130_p10, %p5618_p7  ;;  %p5139_p2 = por %p5138_p0, %p5137_p13 }
  0x54   : > { %p5133_p12 = pneg %p5132_p11 }
  0x56   : > { %p5140_p4 = pnand %p5139_p2, %p5133_p12 }
  0x58   : > { %5143 = shalt.err (!%p5140_p4)
}
  0x59   : > { %4756 = dma.hbm_to_vmem [thread:$0]  (!%p5604_p5), %s7347_s5, 576, %s5608_s21, [#allocation14], %s7303_s10, %s7303_s10, %s7305_s11  }
  0x5a   : > { %s37_s25 = sadd.s32 1, %s5444_s12  ;;  %s40_s26 = sadd.s32 1, %s5448_s13 }
  0x5b   : > { %p38_p1 = scmp.ge.s32.totalorder %s37_s25, 2  ;;  %p7317_p3 = scmp.eq.s32.totalorder %s5452_s14, 0 }
  0x5c   : > { %s4317_s7 = sshll.u32 %s5444_s12, 2  ;;  %s85_s16 = sadd.s32 1, %s5420_s29 }
  0x5d   : > { %s7441_s25 = smov (%p38_p1, %s37_s25), 0  ;;  %s7443_s26 = smov (!%p38_p1, %s40_s26), %s5448_s13 }
  0x5e   : > { %7348 = sst [smem:[#allocation32_spill]] %s7441_s25  ;;  %s45_s23 = ssub.s32 %s5444_s12, %s7441_s25 }
  0x5f   : > { %s4318_s20 = sadd.s32 4294967295, %s4317_s7  ;;  %p42_p6 = scmp.ge.s32.totalorder %s7443_s26, 2 }
  0x60   : > { %p74_p8 = scmp.gt.s32.totalorder %s4318_s20, 0  ;;  %s4319_s21 = sshll.u32 %s7441_s25, 2 }
  0x61   : > { %p92_p9 = scmp.ne.s32.totalorder %s5420_s29, %s5416_s28  ;;  %s7445_s26 = smov (%p42_p6, %s7443_s26), 0 }
  0x62   : > { %7349 = sst [smem:[#allocation33_spill]] %s7445_s26  ;;  %s7447_s20 = smov (!%p74_p8, %s4318_s20), 0 }
  0x63   : > { %s5680_s22 = ssub.s32 %s5448_s13, %s7445_s26  ;;  %s4320_s18 = sadd.s32 4294967295, %s4319_s21 }
  0x64   : > { %7350 = sst [smem:[#allocation34_spill]] %s5680_s22  ;;  %s5683_s2 = sor.u32 %s45_s23, %s5680_s22 }
  0x65   : > { %p78_p10 = scmp.gt.s32.totalorder %s4320_s18, 0  ;;  %p5688_p12 = por %p92_p9, %p7317_p3 }
  0x66   : > { %p98_p13 = scmp.ne.s32.totalorder %s5416_s28, %s5412_s27  ;;  %s5694_s10 = sadd.s32 4, %s4317_s7 }
  0x67   : > { %s7449_s18 = smov (!%p78_p10, %s4320_s18), 0  ;;  %7352 = sst [smem:[#allocation35_spill]] %s5694_s10 }
  0x68   : > { %s81_s11 = ssub.s32 %s7447_s20, %s7449_s18  ;;  %p7353_p2 = scmp.eq.s32.totalorder %s5591_s15, 0 }
  0x69   : > { %s82_s23 = sor.u32 %s81_s11, %s5680_s22  ;;  %s5704_s5 = sadd.s32 4, %s4319_s21 }
  0x6a   : > { %p5700_p4 = por %p98_p13, %p7353_p2  ;;  %p83_p1 = scmp.eq.s32.totalorder %s82_s23, 0 }
  0x6b   : > { %p7316_p8 = scmp.lt.s32.totalorder %s5452_s14, 4  ;;  %s5712_s7 = sshll.u32 %s5448_s13, 5 }
  0x6c   : > { %s7354_s3 = scalar_select %p5700_p4, 1, 0 }
  0x6d   : > { %s5709_s27 = scalar_select %p83_p1, %s5420_s29, %s85_s16  }
  0x6e   : > { %7355 = sst [smem:[#allocation36_spill]] %s7354_s3  ;;  %s342_s18 = sand.u32 1, %s5452_s14  }
  0x6f   : > { %s344_s11 = sand.u32 1, %s5420_s29   ;;  %s4602_s25 = sshll.u32 %s7447_s20, 2 }
  0x70   : > { %s4334_s26 = sshll.u32 %s344_s11, 4  ;;  %s357_s28 = sadd.s32 %s4602_s25, %s5712_s7 }
  0x71   : > { %s4340_s22 = sshll.u32 %s357_s28, 6  ;;  %s346_s3 = scalar_lea.vmem [#allocation7], %s4334_s26 }
  0x72   : > { %s360_s23 = sshll.u32 %s346_s3, 4  ;;  %s7356_s1 = sld [smem:[#allocation38_spill]]  ;;  %s5722_s23 = int_to_ptr.vmem [resolvable:$true] %s360_s23 }
  0x73   : > { %p5728_p9 = pnand %p7316_p8, %p5688_p12  ;;  %s5458_s3 = smov [#allocation12]  }
  0x74   : > { %s283_s28 = sshll.u32 %s5458_s3, 4  ;;  %s5734_s0 = scalar_lea.sflag [#allocation8], %s342_s18  ;;  %s5732_s28 = int_to_ptr.vmem [resolvable:$true] %s283_s28 }
  0x75   : > { %p5146_p13 = pneg %p5728_p9 }
  0x78   : > { %s5720_s21 = scalar_lea.hbm %s7356_s1, %s4340_s22  ;;  %s5149_s20 = scalar_lea.hbm %s7356_s1, 4096 }
  0x79   : > { %s5144_s10 = scalar_lea.hbm %s5720_s21, 256  ;;  %p5150_p12 = scmp.lt.u32.totalorder %s5720_s21, %s7356_s1 }
  0x7a   : > { %p5145_p10 = scmp.ne.s32.totalorder %s5720_s21, %s5144_s10  ;;  %p5151_p6 = scmp.lt.u32.totalorder %s5149_s20, %s5144_s10 }
  0x7b   : > { %p5153_p8 = scmp.lt.u32.totalorder %s5144_s10, %s5720_s21 }
  0x7c   : > { %p5147_p2 = pnand %p5146_p13, %p5145_p10  ;;  %p5152_p0 = por %p5151_p6, %p5150_p12 }
  0x7e   : > { %p5148_p1 = pneg %p5147_p2  ;;  %p5154_p3 = por %p5153_p8, %p5152_p0 }
  0x80   : > { %p5155_p11 = pnand %p5154_p3, %p5148_p1 }
  0x82   : > { %5158 = shalt.err (!%p5155_p11)
}
  0x83   : > { %s5159_s18 = scalar_lea.vmem %s5722_s23, 256  ;;  %s5459_s11 = smov [#allocation7]  }
  0x84   : > { %p5160_p10 = scmp.ne.s32.totalorder %s5722_s23, %s5159_s18  ;;  %s5164_s3 = sshll.u32 %s5459_s11, 4  ;;  %s5165_s3 = int_to_ptr.vmem [resolvable:$false] %s5164_s3 }
  0x85   : > { %s5166_s25 = scalar_lea.vmem %s5165_s3, 512  ;;  %p5167_p5 = scmp.lt.s32.totalorder %s5722_s23, %s5165_s3 }
  0x86   : > { %p5162_p2 = pnand %p5160_p10, %p5146_p13  ;;  %p5168_p6 = scmp.lt.s32.totalorder %s5166_s25, %s5159_s18 }
  0x88   : > { %p5163_p4 = pneg %p5162_p2  ;;  %p5169_p12 = por %p5168_p6, %p5167_p5 }
  0x8a   : > { %p5170_p0 = pnand %p5169_p12, %p5163_p4 }
  0x8c   : > { %5173 = shalt.err (!%p5170_p0)
}
  0x8d   : > { %s7358_s10 = smov 4   ;;  %s7359_s26 = smov 64  }
  0x8e   : > { %4766 = dma.hbm_to_vmem [thread:$0]  (!%p5728_p9), %s5720_s21, 256, %s5722_s23, %s5734_s0, %s7359_s26, %s7359_s26, %s7358_s10  }
  0x8f   : > { %s7360_s4 = sld [smem:[#allocation41_spill]] }
  0x95   : > { %s5174_s24 = scalar_lea.hbm %s7360_s4, 32 }
  0x96   : > { %p5175_p5 = scmp.ne.s32.totalorder %s7360_s4, %s5174_s24  ;;  %p5181_p4 = scmp.lt.u32.totalorder %s5174_s24, %s7360_s4 }
  0x98   : > { %p5177_p3 = pnand %p5175_p5, %p5618_p7 }
  0x9a   : > { %p5178_p11 = pneg %p5177_p3 }
  0x9c   : > { %p5183_p8 = pnand %p5181_p4, %p5178_p11 }
  0x9e   : > { %5186 = shalt.err (!%p5183_p8)
}
  0x9f   : > { %s5187_s23 = scalar_lea.vmem %s5732_s28, 32  ;;  %p5195_p10 = scmp.lt.s32.totalorder %s5732_s28, %s5732_s28 }
  0xa0   : > { %p5188_p9 = scmp.ne.s32.totalorder %s5732_s28, %s5187_s23  ;;  %p5196_p2 = scmp.lt.s32.totalorder %s5187_s23, %s5187_s23 }
  0xa2   : > { %p5190_p13 = pnand %p5188_p9, %p5618_p7  ;;  %p5197_p6 = por %p5196_p2, %p5195_p10 }
  0xa4   : > { %p5191_p1 = pneg %p5190_p13 }
  0xa6   : > { %p5198_p12 = pnand %p5197_p6, %p5191_p1 }
  0xa8   : > { %5201 = shalt.err (!%p5198_p12)
}
  0xa9   : > { %p7361_p0 = scmp.ne.s32.totalorder %s7344_s19, 0  ;;  %s5460_s20 = smov [#allocation15]  }
  0xaa   : > { %s307_s22 = sshll.u32 %s5460_s20, 4  ;;  %s7362_s6 = sld [smem:[#allocation43_spill]]  ;;  %s308_s22 = int_to_ptr.vmem [resolvable:$true] %s307_s22 }
  0xab   : > { %4753 = dma.hbm_to_vmem [thread:$0]  (!%p7361_p0), %s7360_s4, 32, %s5732_s28, [#allocation11]  }
  0xb0   : > { %s5202_s3 = scalar_lea.hbm %s7362_s6, 32 }
  0xb1   : > { %p5203_p5 = scmp.ne.s32.totalorder %s7362_s6, %s5202_s3  ;;  %p5209_p4 = scmp.lt.u32.totalorder %s5202_s3, %s7362_s6 }
  0xb3   : > { %p5205_p3 = pnand %p5203_p5, %p5618_p7 }
  0xb5   : > { %p5206_p11 = pneg %p5205_p3 }
  0xb7   : > { %p5211_p8 = pnand %p5209_p4, %p5206_p11 }
  0xb9   : > { %5214 = shalt.err (!%p5211_p8)
}
  0xba   : > { %s5215_s28 = scalar_lea.vmem %s308_s22, 32  ;;  %p5223_p10 = scmp.lt.s32.totalorder %s308_s22, %s308_s22 }
  0xbb   : > { %p5216_p9 = scmp.ne.s32.totalorder %s308_s22, %s5215_s28  ;;  %p5224_p2 = scmp.lt.s32.totalorder %s5215_s28, %s5215_s28 }
  0xbd   : > { %p5218_p13 = pnand %p5216_p9, %p5618_p7  ;;  %p5225_p6 = por %p5224_p2, %p5223_p10 }
  0xbf   : > { %p5219_p1 = pneg %p5218_p13 }
  0xc1   : > { %p5226_p12 = pnand %p5225_p6, %p5219_p1 }
  0xc3   : > { %5229 = shalt.err (!%p5226_p12)
}
  0xc4   : > { %4759 = dma.hbm_to_vmem [thread:$0]  (!%p7361_p0), %s7362_s6, 32, %s308_s22, [#allocation14]  }
  0xc5   : > { %s4316_s1 = sadd.s32 4294967294, %s5452_s14   ;;  %s49_s19 = sadd.s32 1, %s5432_s9 }
  0xc6   : > { %p7363_p7 = scmp.eq.s32.totalorder %s5683_s2, 0  ;;  %p56_p5 = scmp.ne.s32.totalorder %s5432_s9, %s5428_s8 }
  0xc7   : > { %p62_p3 = scmp.ne.s32.totalorder %s5428_s8, %s5424_s30  ;;  %p244_p11 = scmp.eq.s32.totalorder %s5591_s15, 3 }
  0xc8   : > { %s5811_s17 = scalar_select %p7363_p7, %s5432_s9, %s49_s19  }
  0xc9   : > { %p250_p4 = scmp.eq.s32.totalorder %s4316_s1, 3  ;;  %p7364_p8 = scmp.eq.s32.totalorder %s5452_s14, 0 }
  0xca   : > { %p7366_p13 = scmp.eq.s32.totalorder %s5591_s15, 0  ;;  %p5830_p0 = por %p244_p11, %p56_p5 }
  0xcb   : > { %p5820_p9 = por %p7364_p8, %p56_p5  ;;  %p5834_p10 = por %p250_p4, %p62_p3 }
  0xcc   : > { %p5826_p1 = por %p7366_p13, %p62_p3  ;;  %s318_s11 = sand.u32 1, %s5432_s9  }
  0xcd   : > { %s7368_s2 = scalar_select %p5830_p0, 1, 0 }
  0xce   : > { %s7369_s22 = scalar_select %p5834_p10, 1, 0 }
  0xcf   : > { %s4601_s3 = sshll.u32 %s5444_s12, 4  ;;  %s4329_s16 = sshll.u32 %s318_s11, 6 }
  0xd0   : > { %s329_s18 = sadd.s32 %s4601_s3, %s5712_s7  ;;  %s322_s28 = scalar_lea.vmem [#allocation4], %s4329_s16 }
  0xd1   : > { %s4333_s23 = sshll.u32 %s329_s18, 6  ;;  %s332_s21 = sshll.u32 %s322_s28, 4  ;;  %s5846_s21 = int_to_ptr.vmem [resolvable:$true] %s332_s21 }
  0xd2   : > { %s7370_s19 = sld [smem:[#allocation37_spill]]  ;;  %p7371_p2 = scmp.lt.s32.totalorder %s5452_s14, 4 }
  0xd3   : > { %s5856_s3 = scalar_lea.sflag [#allocation5], %s318_s11 }
  0xd4   : > { %p5852_p6 = pnand %p7371_p2, %p5820_p9 }
  0xd6   : > { %p5232_p7 = pneg %p5852_p6 }
  0xd8   : > { %s5844_s4 = scalar_lea.hbm %s7370_s19, %s4333_s23  ;;  %s5235_s20 = scalar_lea.hbm %s7370_s19, 4096 }
  0xd9   : > { %s5230_s16 = scalar_lea.hbm %s5844_s4, 1024  ;;  %p5236_p11 = scmp.lt.u32.totalorder %s5844_s4, %s7370_s19 }
  0xda   : > { %p5231_p12 = scmp.ne.s32.totalorder %s5844_s4, %s5230_s16  ;;  %p5237_p4 = scmp.lt.u32.totalorder %s5235_s20, %s5230_s16 }
  0xdb   : > { %p5239_p9 = scmp.lt.u32.totalorder %s5230_s16, %s5844_s4 }
  0xdc   : > { %p5233_p5 = pnand %p5232_p7, %p5231_p12  ;;  %p5238_p8 = por %p5237_p4, %p5236_p11 }
  0xde   : > { %p5234_p3 = pneg %p5233_p5  ;;  %p5240_p13 = por %p5239_p9, %p5238_p8 }
  0xe0   : > { %p5241_p2 = pnand %p5240_p13, %p5234_p3 }
  0xe2   : > { %5244 = shalt.err (!%p5241_p2)
}
  0xe3   : > { %s5245_s11 = scalar_lea.vmem %s5846_s21, 1024  ;;  %s5461_s1 = smov [#allocation4]  }
  0xe4   : > { %p5246_p12 = scmp.ne.s32.totalorder %s5846_s21, %s5245_s11  ;;  %s5250_s18 = sshll.u32 %s5461_s1, 4  ;;  %s5251_s18 = int_to_ptr.vmem [resolvable:$false] %s5250_s18 }
  0xe5   : > { %s5252_s23 = scalar_lea.vmem %s5251_s18, 2048  ;;  %p5253_p0 = scmp.lt.s32.totalorder %s5846_s21, %s5251_s18 }
  0xe6   : > { %p5248_p5 = pnand %p5246_p12, %p5232_p7  ;;  %p5254_p11 = scmp.lt.s32.totalorder %s5252_s23, %s5245_s11 }
  0xe8   : > { %p5249_p10 = pneg %p5248_p5  ;;  %p5255_p4 = por %p5254_p11, %p5253_p0 }
  0xea   : > { %p5256_p8 = pnand %p5255_p4, %p5249_p10 }
  0xec   : > { %5259 = shalt.err (!%p5256_p8)
}
  0xed   : > { %s7373_s16 = sld [smem:[#allocation35_spill]]  ;;  %s7374_s20 = sld [smem:[#allocation25_spill]] }
  0xee   : > { %s7375_s28 = sld [smem:[#allocation24_spill]]  ;;  %s7376_s25 = sld [smem:[#allocation23_spill]] }
  0xef   : > { %s7377_s11 = sld [smem:[#allocation34_spill]]  ;;  %p7379_p10 = scmp.lt.s32.totalorder %s5704_s5, 7 }
  0xf0   : > { %4763 = dma.hbm_to_vmem [thread:$0]  (!%p5852_p6), %s5844_s4, 1024, %s5846_s21, %s5856_s3, %s7359_s26, %s7359_s26, %s7358_s10  }
  0xf1   : > { %s7453_s5 = smov (!%p7379_p10, %s5704_s5), 7  ;;  %p7380_p9 = scmp.eq.s32.totalorder %s5452_s14, 0 }
  0xf2   : > { %p7382_p12 = scmp.eq.s32.totalorder %s5591_s15, 0  ;;  %p7385_p6 = scmp.lt.s32.totalorder %s5452_s14, 4 }
  0xf3   : > { %p7378_p0 = scmp.lt.s32.totalorder %s7373_s16, 7  ;;  %s121_s6 = sadd.s32 1, %s7374_s20 }
  0xf4   : > { %p128_p7 = scmp.ne.s32.totalorder %s7374_s20, %s7375_s28  ;;  %p134_p3 = scmp.ne.s32.totalorder %s7375_s28, %s7376_s25 }
  0xf5   : > { %s7451_s16 = smov (!%p7378_p0, %s7373_s16), 7  ;;  %s372_s21 = sand.u32 1, %s7374_s20  }
  0xf6   : > { %s117_s1 = ssub.s32 %s7451_s16, %s7453_s5  ;;  %p5901_p13 = por %p128_p7, %p7380_p9 }
  0xf7   : > { %s118_s18 = sor.u32 %s117_s1, %s7377_s11  ;;  %p5907_p5 = por %p134_p3, %p7382_p12 }
  0xf8   : > { %p119_p2 = scmp.eq.s32.totalorder %s118_s18, 0  ;;  %s4605_s3 = sshll.u32 %s7451_s16, 2 }
  0xf9   : > { %s7383_s4 = scalar_select %p5907_p5, 1, 0 }
  0xfa   : > { %s7455_s20 = smov (!%p119_p2, %s7374_s20), %s121_s6  ;;  %s4341_s5 = sshll.u32 %s372_s21, 4 }
  0xfb   : > { %s385_s19 = sadd.s32 %s4605_s3, %s5712_s7  ;;  %s7384_s1 = sld [smem:[#allocation39_spill]] }
  0xfc   : > { %s4346_s28 = sshll.u32 %s385_s19, 6  ;;  %s374_s18 = scalar_lea.vmem [#allocation9], %s4341_s5 }
  0xfd   : > { %s388_s12 = sshll.u32 %s374_s18, 4  ;;  %p5927_p11 = pnand %p7385_p6, %p5901_p13  ;;  %s5921_s12 = int_to_ptr.vmem [resolvable:$true] %s388_s12 }
  0xff   : > { %p5262_p8 = pneg %p5927_p11 }
 0x101   : > { %s5919_s13 = scalar_lea.hbm %s7384_s1, %s4346_s28  ;;  %s5265_s21 = scalar_lea.hbm %s7384_s1, 4096 }
 0x102   : > { %s5260_s7 = scalar_lea.hbm %s5919_s13, 256  ;;  %p5266_p7 = scmp.lt.u32.totalorder %s5919_s13, %s7384_s1 }
 0x103   : > { %p5261_p4 = scmp.ne.s32.totalorder %s5919_s13, %s5260_s7  ;;  %p5267_p3 = scmp.lt.u32.totalorder %s5265_s21, %s5260_s7 }
 0x104   : > { %p5269_p13 = scmp.lt.u32.totalorder %s5260_s7, %s5919_s13 }
 0x105   : > { %p5263_p0 = pnand %p5262_p8, %p5261_p4  ;;  %p5268_p9 = por %p5267_p3, %p5266_p7 }
 0x107   : > { %p5264_p10 = pneg %p5263_p0  ;;  %p5270_p2 = por %p5269_p13, %p5268_p9 }
 0x109   : > { %p5271_p12 = pnand %p5270_p2, %p5264_p10 }
 0x10b   : > { %5274 = shalt.err (!%p5271_p12)
}
 0x10c   : > { %s5275_s5 = scalar_lea.vmem %s5921_s12, 256  ;;  %s5462_s28 = smov [#allocation9]  }
 0x10d   : > { %p5276_p6 = scmp.ne.s32.totalorder %s5921_s12, %s5275_s5  ;;  %s5280_s25 = sshll.u32 %s5462_s28, 4  ;;  %s5281_s25 = int_to_ptr.vmem [resolvable:$false] %s5280_s25 }
 0x10e   : > { %s5282_s11 = scalar_lea.vmem %s5281_s25, 512  ;;  %p5283_p5 = scmp.lt.s32.totalorder %s5921_s12, %s5281_s25 }
 0x10f   : > { %p5278_p4 = pnand %p5276_p6, %p5262_p8  ;;  %p5284_p7 = scmp.lt.s32.totalorder %s5282_s11, %s5275_s5 }
 0x111   : > { %p5279_p0 = pneg %p5278_p4  ;;  %p5285_p3 = por %p5284_p7, %p5283_p5 }
 0x113   : > { %p5286_p9 = pnand %p5285_p3, %p5279_p0 }
 0x115   : > { %5289 = shalt.err (!%p5286_p9)
}
 0x116   : > { %4769 = dma.hbm_to_vmem [thread:$0]  (!%p5927_p11), %s5919_s13, 256, %s5921_s12, %s5734_s0, %s7359_s26, %s7359_s26, %s7358_s10  }
 0x117   : > { %s7387_s18 = sld [smem:[#allocation31_spill]] }
 0x11d   : > { %p7388_p8 = scmp.ne.s32.totalorder %s7387_s18, 0 }
 0x11e   : > { %s5963_s7 = sand.u32 (!%p7388_p8), 1, %s5428_s8  }
 0x11f   : > { %400 = sbr.rel (%p7388_p8) target bundleno = 1441 (0x5a1), region = 48  ;;  %s4348_s19 = sshll.u32 (!%p7388_p8), %s5963_s7, 6 }
 0x120   : > { %s403_s6 = scalar_lea.sflag (!%p7388_p8), [#allocation5], %s5963_s7  ;;  %s5969_s16 = scalar_lea.vmem (!%p7388_p8), [#allocation4], %s4348_s19 }
 0x126   : > { %5375 = dma.done.wait (%p5826_p1), %s403_s6, 1024  }
 0x127   : > { %5377 = vsyncadd (%p5826_p1), %s403_s6, 4294966272  ;;  %s7389_s12 = sld [smem:[#allocation26_spill]]  ;;  %s7390_s13 = sld [smem:[#allocation36_spill]] }
 0x128   : > { %s411_s0 = sand.u32 1, %s5591_s15  }
 0x129   : > { %s412_s21 = scalar_lea.sflag [#allocation8], %s411_s0 }
 0x12d   : > { %s413_s10 = sand.u32 1, %s7389_s12   ;;  %p7391_p5 = scmp.ne.s32.totalorder %s7390_s13, 0 }
 0x12e   : > { %s4349_s26 = sshll.u32 %s413_s10, 4 }
 0x12f   : > { %s5977_s23 = scalar_lea.vmem [#allocation7], %s4349_s26 }
 0x130   : > { %5379 = dma.done.wait (%p7391_p5), %s412_s21, 256  }
 0x131   : > { %5381 = vsyncadd (%p7391_p5), %s412_s21, 4294967040  ;;  %s7392_s3 = sld [smem:[#allocation24_spill]]  ;;  %p7393_p1 = scmp.ne.s32.totalorder %s7383_s4, 0 }
 0x137   : > { %s422_s5 = sand.u32 1, %s7392_s3  }
 0x138   : > { %s4350_s28 = sshll.u32 %s422_s5, 4 }
 0x139   : > { %s5984_s24 = scalar_lea.vmem [#allocation9], %s4350_s28 }
 0x13a   : > { %5383 = dma.done.wait (%p7393_p1), %s412_s21, 256  }
 0x13b   : > { %5385 = vsyncadd (%p7393_p1), %s412_s21, 4294967040  ;;  %p7394_p11 = scmp.eq.s32.totalorder %s5591_s15, 0 }
 0x13d   : > { %5387 = dma.done.wait (%p7394_p11), [#allocation11], 352   ;;  %p7395_p10 = pmov %p7394_p11 }
 0x13f   : > { %5389 = vsyncadd (%p7395_p10), [#allocation11], 4294966944  ;;  %p7396_p13 = pmov %p7395_p10 }
 0x140   : > { %p7397_p2 = pmov %p7395_p10 }
 0x141   : > { %5391 = dma.done.wait (%p7396_p13), [#allocation14], 608  }
 0x142   : > { %5393 = vsyncadd (%p7397_p2), [#allocation14], 4294966688  ;;  %vm494_vm0 = vcmask 24576   ;;  %vm495_vm1 = vsmask.f32 256  ;;  %vm750_vm5 = vcmask 27648  }
 0x143   : > { %vm6000_vm2 = vmand %vm494_vm0, %vm495_vm1  ;;  %vm533_vm3 = vsmask.f32 7938  ;;  %v503_v1 = vld [vmem:[#allocation2 + $0x18] sm:$0x1]  ;;  %v506_v2 = vld [vmem:[#allocation2 + $0x24] sm:$0x1] }
 0x144   : > { %v509_v3 = vld [vmem:[#allocation2 + $0x30] sm:$0x1]  ;;  %v504_v4 = vsel %vm6000_vm2, 0, %v503_v1  ;;  %v507_v5 = vsel %vm6000_vm2, 0, %v506_v2  ;;  %v512_v7 = vld [vmem:[#allocation2 + $0x3c] sm:$0x1]  ;;  %vm6014_vm4 = vmand %vm494_vm0, %vm533_vm3 }
 0x145   : > { %v510_v6 = vsel %vm6000_vm2, 0, %v509_v3  ;;  %505 = vst [vmem:[#allocation2 + $0x18] sm:$0x1] %v504_v4  ;;  %508 = vst [vmem:[#allocation2 + $0x24] sm:$0x1] %v507_v5  ;;  %v513_v8 = vsel %vm6000_vm2, 0, %v512_v7 }
 0x146   : > { %511 = vst [vmem:[#allocation2 + $0x30] sm:$0x1] %v510_v6  ;;  %v515_v9 = vld [vmem:[#allocation2 + $0x48] sm:$0x1]  ;;  %v518_v10 = vld [vmem:[#allocation2 + $0x54] sm:$0x1]  ;;  %vm6064_vm7 = vmand %vm750_vm5, %vm533_vm3 }
 0x147   : > { %514 = vst [vmem:[#allocation2 + $0x3c] sm:$0x1] %v513_v8  ;;  %v516_v12 = vsel %vm6000_vm2, 0, %v515_v9  ;;  %v519_v13 = vsel %vm6000_vm2, 0, %v518_v10  ;;  %v521_v14 = vld [vmem:[#allocation2 + $0x60] sm:$0x1] }
 0x148   : > { %v524_v15 = vld [vmem:[#allocation2 + $0x6c] sm:$0x1]  ;;  %517 = vst [vmem:[#allocation2 + $0x48] sm:$0x1] %v516_v12  ;;  %520 = vst [vmem:[#allocation2 + $0x54] sm:$0x1] %v519_v13 }
 0x149   : > { %v522_v16 = vsel %vm6000_vm2, 0, %v521_v14  ;;  %v525_v17 = vsel %vm6000_vm2, 0, %v524_v15  ;;  %v541_v18 = vld [vmem:[#allocation2 + $0x20] sm:$0x1]  ;;  %v544_v19 = vld [vmem:[#allocation2 + $0x2c] sm:$0x1] }
 0x14a   : > { %523 = vst [vmem:[#allocation2 + $0x60] sm:$0x1] %v522_v16  ;;  %526 = vst [vmem:[#allocation2 + $0x6c] sm:$0x1] %v525_v17  ;;  %v542_v20 = vsel %vm6014_vm4, 0, %v541_v18  ;;  %v545_v21 = vsel %vm6014_vm4, 0, %v544_v19 }
 0x14b   : > { %v547_v22 = vld [vmem:[#allocation2 + $0x38] sm:$0x1]  ;;  %v550_v23 = vld [vmem:[#allocation2 + $0x44] sm:$0x1]  ;;  %543 = vst [vmem:[#allocation2 + $0x20] sm:$0x1] %v542_v20 }
 0x14c   : > { %546 = vst [vmem:[#allocation2 + $0x2c] sm:$0x1] %v545_v21  ;;  %v548_v24 = vsel %vm6014_vm4, 0, %v547_v22  ;;  %v551_v25 = vsel %vm6014_vm4, 0, %v550_v23  ;;  %v553_v26 = vld [vmem:[#allocation2 + $0x50] sm:$0x1] }
 0x14d   : > { %v556_v27 = vld [vmem:[#allocation2 + $0x5c] sm:$0x1]  ;;  %549 = vst [vmem:[#allocation2 + $0x38] sm:$0x1] %v548_v24  ;;  %552 = vst [vmem:[#allocation2 + $0x44] sm:$0x1] %v551_v25 }
 0x14e   : > { %v554_v28 = vsel %vm6014_vm4, 0, %v553_v26  ;;  %v557_v29 = vsel %vm6014_vm4, 0, %v556_v27  ;;  %v559_v30 = vld [vmem:[#allocation2 + $0x68] sm:$0x1]  ;;  %v562_v31 = vld [vmem:[#allocation2 + $0x74] sm:$0x1] }
 0x14f   : > { %555 = vst [vmem:[#allocation2 + $0x50] sm:$0x1] %v554_v28  ;;  %558 = vst [vmem:[#allocation2 + $0x5c] sm:$0x1] %v557_v29  ;;  %v560_v32 = vsel %vm6014_vm4, 0, %v559_v30  ;;  %v563_v33 = vsel %vm6014_vm4, 0, %v562_v31 }
 0x150   : > { %v497_v34 = vld [vmem:[#allocation2] sm:$0x1]  ;;  %v500_v35 = vld [vmem:[#allocation2 + $0xc] sm:$0x1]  ;;  %561 = vst [vmem:[#allocation2 + $0x68] sm:$0x1] %v560_v32 }
 0x151   : > { %564 = vst [vmem:[#allocation2 + $0x74] sm:$0x1] %v563_v33  ;;  %v498_v36 = vsel %vm6000_vm2, 0, %v497_v34  ;;  %v501_v37 = vsel %vm6000_vm2, 0, %v500_v35  ;;  %v527_v38 = vld [vmem:[#allocation2 + $0x78] sm:$0x1] }
 0x152   : > { %v530_v39 = vld [vmem:[#allocation2 + $0x84] sm:$0x1]  ;;  %499 = vst [vmem:[#allocation2] sm:$0x1] %v498_v36  ;;  %502 = vst [vmem:[#allocation2 + $0xc] sm:$0x1] %v501_v37 }
 0x153   : > { %v528_v40 = vsel %vm6000_vm2, 0, %v527_v38  ;;  %v531_v41 = vsel %vm6000_vm2, 0, %v530_v39  ;;  %v535_v42 = vld [vmem:[#allocation2 + $0x8] sm:$0x1]  ;;  %v538_v43 = vld [vmem:[#allocation2 + $0x14] sm:$0x1] }
 0x154   : > { %529 = vst [vmem:[#allocation2 + $0x78] sm:$0x1] %v528_v40  ;;  %532 = vst [vmem:[#allocation2 + $0x84] sm:$0x1] %v531_v41  ;;  %v536_v44 = vsel %vm6014_vm4, 0, %v535_v42  ;;  %v539_v45 = vsel %vm6014_vm4, 0, %v538_v43 }
 0x155   : > { %v565_v46 = vld [vmem:[#allocation2 + $0x80] sm:$0x1]  ;;  %v568_v47 = vld [vmem:[#allocation2 + $0x8c] sm:$0x1]  ;;  %537 = vst [vmem:[#allocation2 + $0x8] sm:$0x1] %v536_v44 }
 0x156   : > { %540 = vst [vmem:[#allocation2 + $0x14] sm:$0x1] %v539_v45  ;;  %v566_v48 = vsel %vm6014_vm4, 0, %v565_v46  ;;  %v569_v49 = vsel %vm6014_vm4, 0, %v568_v47  ;;  %v571_v50 = vld [vmem:[%s5969_s16] sm:$0xf] }
 0x157   : > { %567 = vst [vmem:[#allocation2 + $0x80] sm:$0x1] %v566_v48  ;;  %570 = vst [vmem:[#allocation2 + $0x8c] sm:$0x1] %v569_v49  ;;  %v590_v51 = vshrl.u32 %v571_v50, 16  ;;  %v593_v52 = vshll.u32 %v571_v50, 16 }
 0x158   : > { %v572_v53 = vld [vmem:[%s5969_s16 + $0x4] sm:$0xf]  ;;  %vm587_vm6 = vsmask.f32 4368  ;;  %v752_v54 = vld [vmem:[#allocation2 + $0x18] sm:$0xf] }
 0x159   : > { %v598_v55 = vshrl.u32 %v572_v53, 16  ;;  %v601_v56 = vshll.u32 %v572_v53, 16  ;;  %v573_v57 = vld [vmem:[%s5969_s16 + $0x8] sm:$0xf]  ;;  %v592_v58 = vrot.slane %v590_v51, 7  ;;  %vm6070_vm8 = vmor %vm495_vm1, %vm587_vm6  ;;  %s6144_s15 = scalar_lea.vmem [#allocation16], %s4348_s19 }
 0x15a   : > { %v607_v59 = vshrl.u32 %v573_v57, 16  ;;  %v610_v60 = vshll.u32 %v573_v57, 16  ;;  %v574_v61 = vld [vmem:[%s5969_s16 + $0xc] sm:$0xf]  ;;  %v757_v1 = vld [vmem:[#allocation2 + $0x20] sm:$0x1] }
 0x15b   : > { %v600_v63 = vrot.slane %v598_v55, 7  ;;  %v615_v2 = vshrl.u32 %v574_v61, 16  ;;  %v618_v3 = vshll.u32 %v574_v61, 16  ;;  %v595_v4 = vor.u32 %v593_v52, %v592_v58  ;;  %v760_v8 = vld [vmem:[#allocation2 + $0x24] sm:$0xf]  ;;  %s7406_s4 = sld [smem:[#allocation27_spill]] }
 0x15c   : > { %v596_v6 = vrot.slane %v592_v58, 4  ;;  %v609_v7 = vrot.slane %v607_v59, 7  ;;  %v575_v9 = vld [vmem:[%s5969_s16 + $0x10] sm:$0xf]  ;;  %v576_v14 = vld [vmem:[%s5969_s16 + $0x14] sm:$0xf] }
 0x15d   : > { %v603_v10 = vor.u32 %v601_v56, %v600_v63  ;;  %v605_v11 = vrot.slane %v600_v63, 4  ;;  %v617_v12 = vrot.slane %v615_v2, 7  ;;  %v624_v13 = vshrl.u32 %v575_v9, 16  ;;  %v764_v18 = vld [vmem:[#allocation2 + $0x2c] sm:$0x1] }
 0x15e   : > { %v753_v15 = vsel %vm6064_vm7, %v595_v4, %v752_v54  ;;  %v612_v16 = vor.u32 %v610_v60, %v609_v7  ;;  %v613_v17 = vrot.slane %v609_v7, 4  ;;  %v627_v19 = vshll.u32 %v575_v9, 16  ;;  %v577_v20 = vld [vmem:[%s5969_s16 + $0x18] sm:$0xf]  ;;  %v578_v25 = vld [vmem:[%s5969_s16 + $0x1c] sm:$0xf] }
 0x15f   : > { %754 = vst [vmem:[#allocation2 + $0x18] sm:$0xf] %v753_v15  ;;  %v604_v21 = vsel %vm6070_vm8, %v596_v6, %v603_v10  ;;  %v758_v22 = vsel %vm6000_vm2, %v605_v11, %v757_v1  ;;  %v620_v23 = vor.u32 %v618_v3, %v617_v12  ;;  %v622_v24 = vrot.slane %v617_v12, 4  ;;  %v767_v32 = vld [vmem:[#allocation2 + $0x30] sm:$0xf] }
 0x160   : > { %756 = vst.msk [vmem:[#allocation2 + $0x1c] sm:$0xf] %vm750_vm5, %v604_v21  ;;  %759 = vst [vmem:[#allocation2 + $0x20] sm:$0x1] %v758_v22  ;;  %v761_v26 = vsel %vm6064_vm7, %v612_v16, %v760_v8  ;;  %v626_v27 = vrot.slane %v624_v13, 7  ;;  %v632_v28 = vshrl.u32 %v576_v14, 16 }
 0x161   : > { %v635_v29 = vshll.u32 %v576_v14, 16  ;;  %762 = vst [vmem:[#allocation2 + $0x24] sm:$0xf] %v761_v26  ;;  %v621_v30 = vsel %vm6070_vm8, %v613_v17, %v620_v23  ;;  %v765_v31 = vsel %vm6000_vm2, %v622_v24, %v764_v18  ;;  %v641_v33 = vshrl.u32 %v577_v20, 16  ;;  %v579_v35 = vld [vmem:[%s5969_s16 + $0x20] sm:$0xf] }
 0x162   : > { %v644_v34 = vshll.u32 %v577_v20, 16  ;;  %763 = vst.msk [vmem:[#allocation2 + $0x28] sm:$0xf] %vm750_vm5, %v621_v30  ;;  %766 = vst [vmem:[#allocation2 + $0x2c] sm:$0x1] %v765_v31  ;;  %v629_v36 = vor.u32 %v627_v19, %v626_v27  ;;  %v630_v37 = vrot.slane %v626_v27, 4 }
 0x163   : > { %v634_v38 = vrot.slane %v632_v28, 7  ;;  %v649_v39 = vshrl.u32 %v578_v25, 16  ;;  %v580_v40 = vld [vmem:[%s5969_s16 + $0x24] sm:$0xf]  ;;  %v771_v41 = vld [vmem:[#allocation2 + $0x38] sm:$0x1] }
 0x164   : > { %v643_v42 = vrot.slane %v641_v33, 7  ;;  %v652_v43 = vshll.u32 %v578_v25, 16  ;;  %v658_v44 = vshrl.u32 %v579_v35, 16  ;;  %v661_v45 = vshll.u32 %v579_v35, 16  ;;  %v774_v49 = vld [vmem:[#allocation2 + $0x3c] sm:$0xf] }
 0x165   : > { %v768_v46 = vsel %vm6064_vm7, %v629_v36, %v767_v32  ;;  %v637_v47 = vor.u32 %v635_v29, %v634_v38  ;;  %v639_v48 = vrot.slane %v634_v38, 4  ;;  %v651_v50 = vrot.slane %v649_v39, 7  ;;  %v778_v51 = vld [vmem:[#allocation2 + $0x44] sm:$0x1]  ;;  %v581_v56 = vld [vmem:[%s5969_s16 + $0x28] sm:$0xf] }
 0x166   : > { %769 = vst [vmem:[#allocation2 + $0x30] sm:$0xf] %v768_v46  ;;  %v646_v52 = vor.u32 %v644_v34, %v643_v42  ;;  %v647_v53 = vrot.slane %v643_v42, 4  ;;  %v660_v54 = vrot.slane %v658_v44, 7  ;;  %v666_v55 = vshrl.u32 %v580_v40, 16  ;;  %p4356_p12 = scmp.le.s32.totalorder %s7406_s4, 0 }
 0x167   : > { %v638_v57 = vsel %vm6070_vm8, %v630_v37, %v637_v47  ;;  %v772_v58 = vsel %vm6000_vm2, %v639_v48, %v771_v41  ;;  %v654_v59 = vor.u32 %v652_v43, %v651_v50  ;;  %v656_v60 = vrot.slane %v651_v50, 4  ;;  %v781_v61 = vld [vmem:[#allocation2 + $0x48] sm:$0xf]  ;;  %v582_v63 = vld [vmem:[%s5969_s16 + $0x2c] sm:$0xf] }
 0x168   : > { %770 = vst.msk [vmem:[#allocation2 + $0x34] sm:$0xf] %vm750_vm5, %v638_v57  ;;  %773 = vst [vmem:[#allocation2 + $0x38] sm:$0x1] %v772_v58  ;;  %v775_v1 = vsel %vm6064_vm7, %v646_v52, %v774_v49  ;;  %v663_v2 = vor.u32 %v661_v45, %v660_v54  ;;  %v664_v3 = vrot.slane %v660_v54, 4  ;;  %v668_v4 = vrot.slane %v666_v55, 7 }
 0x169   : > { %v583_v6 = vld [vmem:[%s5969_s16 + $0x30] sm:$0xf]  ;;  %776 = vst [vmem:[#allocation2 + $0x3c] sm:$0xf] %v775_v1  ;;  %v655_v7 = vsel %vm6070_vm8, %v647_v53, %v654_v59  ;;  %v779_v8 = vsel %vm6000_vm2, %v656_v60, %v778_v51  ;;  %v669_v9 = vshll.u32 %v580_v40, 16  ;;  %v675_v11 = vshrl.u32 %v581_v56, 16 }
 0x16a   : > { %v785_v10 = vld [vmem:[#allocation2 + $0x50] sm:$0x1]  ;;  %v584_v12 = vld [vmem:[%s5969_s16 + $0x34] sm:$0xf]  ;;  %777 = vst.msk [vmem:[#allocation2 + $0x40] sm:$0xf] %vm750_vm5, %v655_v7  ;;  %v782_v13 = vsel %vm6064_vm7, %v663_v2, %v781_v61 }
 0x16b   : > { %780 = vst [vmem:[#allocation2 + $0x44] sm:$0x1] %v779_v8  ;;  %v673_v14 = vrot.slane %v668_v4, 4  ;;  %v678_v15 = vshll.u32 %v581_v56, 16  ;;  %v683_v16 = vshrl.u32 %v582_v63, 16  ;;  %v671_v17 = vor.u32 %v669_v9, %v668_v4 }
 0x16c   : > { %783 = vst [vmem:[#allocation2 + $0x48] sm:$0xf] %v782_v13  ;;  %v677_v18 = vrot.slane %v675_v11, 7  ;;  %v788_v19 = vld [vmem:[#allocation2 + $0x54] sm:$0xf]  ;;  %v686_v20 = vshll.u32 %v582_v63, 16 }
 0x16d   : > { %v692_v21 = vshrl.u32 %v583_v6, 16  ;;  %v786_v22 = vsel %vm6000_vm2, %v673_v14, %v785_v10  ;;  %v685_v23 = vrot.slane %v683_v16, 7  ;;  %v695_v24 = vshll.u32 %v583_v6, 16  ;;  %v585_v26 = vld [vmem:[%s5969_s16 + $0x38] sm:$0xf] }
 0x16e   : > { %v700_v25 = vshrl.u32 %v584_v12, 16  ;;  %v672_v27 = vsel %vm6070_vm8, %v664_v3, %v671_v17  ;;  %787 = vst [vmem:[#allocation2 + $0x50] sm:$0x1] %v786_v22  ;;  %v680_v28 = vor.u32 %v678_v15, %v677_v18  ;;  %v681_v29 = vrot.slane %v677_v18, 4  ;;  %v792_v30 = vld [vmem:[#allocation2 + $0x5c] sm:$0x1] }
 0x16f   : > { %v694_v31 = vrot.slane %v692_v21, 7  ;;  %v795_v32 = vld [vmem:[#allocation2 + $0x60] sm:$0xf]  ;;  %784 = vst.msk [vmem:[#allocation2 + $0x4c] sm:$0xf] %vm750_vm5, %v672_v27  ;;  %v688_v33 = vor.u32 %v686_v20, %v685_v23  ;;  %v690_v34 = vrot.slane %v685_v23, 4 }
 0x170   : > { %v702_v35 = vrot.slane %v700_v25, 7  ;;  %v703_v36 = vshll.u32 %v584_v12, 16  ;;  %v586_v37 = vld [vmem:[%s5969_s16 + $0x3c] sm:$0xf]  ;;  %v789_v38 = vsel %vm6064_vm7, %v680_v28, %v788_v19  ;;  %v799_v41 = vld [vmem:[#allocation2 + $0x68] sm:$0x1] }
 0x171   : > { %v697_v39 = vor.u32 %v695_v24, %v694_v31  ;;  %v698_v40 = vrot.slane %v694_v31, 4  ;;  %v709_v42 = vshrl.u32 %v585_v26, 16  ;;  %790 = vst [vmem:[#allocation2 + $0x54] sm:$0xf] %v789_v38  ;;  %v689_v43 = vsel %vm6070_vm8, %v681_v29, %v688_v33  ;;  %v802_v53 = vld [vmem:[#allocation2 + $0x6c] sm:$0xf] }
 0x172   : > { %v793_v44 = vsel %vm6000_vm2, %v690_v34, %v792_v30  ;;  %v705_v45 = vor.u32 %v703_v36, %v702_v35  ;;  %v707_v46 = vrot.slane %v702_v35, 4  ;;  %791 = vst.msk [vmem:[#allocation2 + $0x58] sm:$0xf] %vm750_vm5, %v689_v43  ;;  %v712_v49 = vshll.u32 %v585_v26, 16  ;;  %v806_v58 = vld [vmem:[#allocation2 + $0x74] sm:$0x1] }
 0x173   : > { %794 = vst [vmem:[#allocation2 + $0x5c] sm:$0x1] %v793_v44  ;;  %v796_v47 = vsel %vm6064_vm7, %v697_v39, %v795_v32  ;;  %v711_v48 = vrot.slane %v709_v42, 7  ;;  %v717_v50 = vshrl.u32 %v586_v37, 16  ;;  %v720_v54 = vshll.u32 %v586_v37, 16 }
 0x174   : > { %797 = vst [vmem:[#allocation2 + $0x60] sm:$0xf] %v796_v47  ;;  %v706_v51 = vsel %vm6070_vm8, %v698_v40, %v705_v45  ;;  %v800_v52 = vsel %vm6000_vm2, %v707_v46, %v799_v41  ;;  %812 = sbr.rel (%p4356_p12) target bundleno = 386 (0x182), region = 80  ;;  %v813_v2 = vld [vmem:[%s5977_s23] sm:$0xf] (!%p4356_p12) }
 0x175   : > { %798 = vst.msk [vmem:[#allocation2 + $0x64] sm:$0xf] %vm750_vm5, %v706_v51  ;;  %801 = vst [vmem:[#allocation2 + $0x68] sm:$0x1] %v800_v52  ;;  %v714_v55 = vor.u32 %v712_v49, %v711_v48  ;;  %v715_v56 = vrot.slane %v711_v48, 4  ;;  %v719_v57 = vrot.slane %v717_v50, 7 }
 0x176   : > { %v814_v3 = vld [vmem:[%s5977_s23 + $0x4] sm:$0xf] (!%p4356_p12)  ;;  %v818_v4 = vshrl.u32 (!%p4356_p12), %v813_v2, 16  ;;  %v821_v6 = vshll.u32 (!%p4356_p12), %v813_v2, 16  ;;  %v815_v9 = vld [vmem:[%s5977_s23 + $0x8] sm:$0xf] (!%p4356_p12) }
 0x177   : > { %v803_v59 = vsel %vm6064_vm7, %v714_v55, %v802_v53  ;;  %v722_v60 = vor.u32 %v720_v54, %v719_v57  ;;  %v724_v61 = vrot.slane %v719_v57, 4  ;;  %v826_v7 = vshrl.u32 (!%p4356_p12), %v814_v3, 16  ;;  %v816_v10 = vld [vmem:[%s5977_s23 + $0xc] sm:$0xf] (!%p4356_p12)  ;;  %v857_v12 = vld [vmem:[#allocation2] sm:$0xf] (!%p4356_p12) }
 0x178   : > { %804 = vst [vmem:[#allocation2 + $0x6c] sm:$0xf] %v803_v59  ;;  %v829_v8 = vshll.u32 (!%p4356_p12), %v814_v3, 16  ;;  %v820_v11 = vrot.slane (!%p4356_p12), %v818_v4, 7  ;;  %v835_v14 = vshrl.u32 (!%p4356_p12), %v815_v9, 16  ;;  %v838_v16 = vshll.u32 (!%p4356_p12), %v815_v9, 16 }
 0x179   : > { %v723_v63 = vsel %vm6070_vm8, %v715_v56, %v722_v60  ;;  %v807_v1 = vsel %vm6000_vm2, %v724_v61, %v806_v58  ;;  %v828_v13 = vrot.slane (!%p4356_p12), %v826_v7, 7  ;;  %v861_v15 = vld [vmem:[#allocation2 + $0x8] sm:$0x1] (!%p4356_p12)  ;;  %v843_v17 = vshrl.u32 (!%p4356_p12), %v816_v10, 16  ;;  %v864_v28 = vld [vmem:[#allocation2 + $0xc] sm:$0xf] (!%p4356_p12) }
 0x17a   : > { %805 = vst.msk [vmem:[#allocation2 + $0x70] sm:$0xf] %vm750_vm5, %v723_v63  ;;  %808 = vst [vmem:[#allocation2 + $0x74] sm:$0x1] %v807_v1  ;;  %v846_v18 = vshll.u32 (!%p4356_p12), %v816_v10, 16  ;;  %v823_v19 = vor.u32 (!%p4356_p12), %v821_v6, %v820_v11  ;;  %v824_v20 = vrot.slane (!%p4356_p12), %v820_v11, 4 }
 0x17b   : > { %v831_v21 = vor.u32 %v829_v8, %v828_v13  ;;  %v833_v22 = vrot.slane %v828_v13, 4  ;;  %v837_v23 = vrot.slane %v835_v14, 7  ;;  %v845_v24 = vrot.slane %v843_v17, 7  ;;  %v868_v29 = vld [vmem:[#allocation2 + $0x14] sm:$0x1] }
 0x17c   : > { %v858_v25 = vsel %vm6064_vm7, %v823_v19, %v857_v12 }
 0x17d   : > { %v832_v26 = vsel %vm6070_vm8, %v824_v20, %v831_v21  ;;  %v862_v27 = vsel %vm6000_vm2, %v833_v22, %v861_v15  ;;  %859 = vst [vmem:[#allocation2] sm:$0xf] %v858_v25  ;;  %v840_v30 = vor.u32 %v838_v16, %v837_v23  ;;  %v841_v31 = vrot.slane %v837_v23, 4 }
 0x17e   : > { %860 = vst.msk [vmem:[#allocation2 + $0x4] sm:$0xf] %vm750_vm5, %v832_v26  ;;  %863 = vst [vmem:[#allocation2 + $0x8] sm:$0x1] %v862_v27  ;;  %v848_v32 = vor.u32 %v846_v18, %v845_v24  ;;  %v850_v33 = vrot.slane %v845_v24, 4 }
 0x17f   : > { %v865_v34 = vsel %vm6064_vm7, %v840_v30, %v864_v28 }
 0x180   : > { %v849_v35 = vsel %vm6070_vm8, %v841_v31, %v848_v32  ;;  %v869_v36 = vsel %vm6000_vm2, %v850_v33, %v868_v29  ;;  %866 = vst [vmem:[#allocation2 + $0xc] sm:$0xf] %v865_v34 }
 0x181   : > { %867 = vst.msk [vmem:[#allocation2 + $0x10] sm:$0xf] %vm750_vm5, %v849_v35  ;;  %870 = vst [vmem:[#allocation2 + $0x14] sm:$0x1] %v869_v36 }
 0x182 PF: > { %s7407_s25 = sld [smem:[#allocation27_spill]] }
 0x188   : > { %p4357_p6 = scmp.ne.s32.totalorder %s7407_s25, 0 }
 0x189   : > { %v875_v37 = vld [vmem:[#allocation2] sm:$0xf] (!%p4357_p6)  ;;  %v879_v38 = vld [vmem:[#allocation2 + $0x8] sm:$0x1] (!%p4357_p6)  ;;  %v5463_v40 = vmov (!%p4357_p6), 0  }
 0x18a   : > { %874 = sbr.rel (%p4357_p6) target bundleno = 401 (0x191), region = 84  ;;  %v876_v39 = vsel (!%p4357_p6), %vm6064_vm7, 0, %v875_v37  ;;  %878 = vst.msk [vmem:[#allocation2 + $0x4] sm:$0xf] (!%p4357_p6), %vm750_vm5, %v5463_v40  ;;  %885 = vst.msk [vmem:[#allocation2 + $0x10] sm:$0xf] (!%p4357_p6), %vm750_vm5, %v5463_v40 }
 0x18b   : > { %v880_v41 = vsel (!%p4357_p6), %vm6000_vm2, 0, %v879_v38  ;;  %v882_v42 = vld [vmem:[#allocation2 + $0xc] sm:$0xf] (!%p4357_p6)  ;;  %v886_v43 = vld [vmem:[#allocation2 + $0x14] sm:$0x1] (!%p4357_p6) }
 0x18c   : > { %877 = vst [vmem:[#allocation2] sm:$0xf] (!%p4357_p6), %v876_v39  ;;  %881 = vst [vmem:[#allocation2 + $0x8] sm:$0x1] (!%p4357_p6), %v880_v41  ;;  %v883_v44 = vsel (!%p4357_p6), %vm6064_vm7, 0, %v882_v42  ;;  %v887_v45 = vsel (!%p4357_p6), %vm6000_vm2, 0, %v886_v43 }
 0x18d   : > { %884 = vst [vmem:[#allocation2 + $0xc] sm:$0xf] (!%p4357_p6), %v883_v44  ;;  %888 = vst [vmem:[#allocation2 + $0x14] sm:$0x1] (!%p4357_p6), %v887_v45 }
 0x191 PF: > { %s7408_s11 = sld [smem:[#allocation27_spill]] }
 0x197   : > { %p4358_p4 = scmp.ge.s32.totalorder %s7408_s11, 1 }
 0x198   : > { %v893_v46 = vld [vmem:[%s5984_s24] sm:$0xf] (!%p4358_p4)  ;;  %v894_v47 = vld [vmem:[%s5984_s24 + $0x4] sm:$0xf] (!%p4358_p4)  ;;  %v895_v52 = vld [vmem:[%s5984_s24 + $0x8] sm:$0xf] (!%p4358_p4) }
 0x199   : > { %892 = sbr.rel (%p4358_p4) target bundleno = 420 (0x1a4), region = 88  ;;  %v898_v48 = vshrl.u32 (!%p4358_p4), %v893_v46, 16  ;;  %v901_v49 = vshll.u32 (!%p4358_p4), %v893_v46, 16  ;;  %v906_v50 = vshrl.u32 (!%p4358_p4), %v894_v47, 16  ;;  %v909_v51 = vshll.u32 (!%p4358_p4), %v894_v47, 16 }
 0x19a   : > { %v896_v53 = vld [vmem:[%s5984_s24 + $0xc] sm:$0xf] (!%p4358_p4)  ;;  %v938_v55 = vld [vmem:[#allocation2 + $0x78] sm:$0xf] (!%p4358_p4)  ;;  %v915_v57 = vshrl.u32 (!%p4358_p4), %v895_v52, 16  ;;  %v918_v59 = vshll.u32 (!%p4358_p4), %v895_v52, 16 }
 0x19b   : > { %v900_v54 = vrot.slane (!%p4358_p4), %v898_v48, 7  ;;  %v908_v56 = vrot.slane (!%p4358_p4), %v906_v50, 7  ;;  %v942_v58 = vld [vmem:[#allocation2 + $0x80] sm:$0x1] (!%p4358_p4)  ;;  %v923_v60 = vshrl.u32 (!%p4358_p4), %v896_v53, 16  ;;  %v926_v61 = vshll.u32 (!%p4358_p4), %v896_v53, 16 }
 0x19c   : > { %v917_v4 = vrot.slane (!%p4358_p4), %v915_v57, 7  ;;  %v945_v10 = vld [vmem:[#allocation2 + $0x84] sm:$0xf] (!%p4358_p4)  ;;  %v949_v11 = vld [vmem:[#allocation2 + $0x8c] sm:$0x1] (!%p4358_p4) }
 0x19d   : > { %v903_v63 = vor.u32 (!%p4358_p4), %v901_v49, %v900_v54  ;;  %v904_v1 = vrot.slane (!%p4358_p4), %v900_v54, 4  ;;  %v911_v2 = vor.u32 (!%p4358_p4), %v909_v51, %v908_v56  ;;  %v913_v3 = vrot.slane (!%p4358_p4), %v908_v56, 4 }
 0x19e   : > { %v925_v6 = vrot.slane (!%p4358_p4), %v923_v60, 7  ;;  %v920_v12 = vor.u32 (!%p4358_p4), %v918_v59, %v917_v4  ;;  %v921_v13 = vrot.slane (!%p4358_p4), %v917_v4, 4 }
 0x19f   : > { %v939_v7 = vsel (!%p4358_p4), %vm6064_vm7, %v903_v63, %v938_v55  ;;  %v912_v8 = vsel (!%p4358_p4), %vm6070_vm8, %v904_v1, %v911_v2  ;;  %v943_v9 = vsel (!%p4358_p4), %vm6000_vm2, %v913_v3, %v942_v58 }
 0x1a0   : > { %940 = vst [vmem:[#allocation2 + $0x78] sm:$0xf] %v939_v7  ;;  %941 = vst.msk [vmem:[#allocation2 + $0x7c] sm:$0xf] %vm750_vm5, %v912_v8  ;;  %v928_v14 = vor.u32 %v926_v61, %v925_v6  ;;  %v930_v15 = vrot.slane %v925_v6, 4  ;;  %v946_v16 = vsel %vm6064_vm7, %v920_v12, %v945_v10 }
 0x1a1   : > { %944 = vst [vmem:[#allocation2 + $0x80] sm:$0x1] %v943_v9  ;;  %947 = vst [vmem:[#allocation2 + $0x84] sm:$0xf] %v946_v16 }
 0x1a2   : > { %v929_v17 = vsel %vm6070_vm8, %v921_v13, %v928_v14  ;;  %v950_v18 = vsel %vm6000_vm2, %v930_v15, %v949_v11 }
 0x1a3   : > { %948 = vst.msk [vmem:[#allocation2 + $0x88] sm:$0xf] %vm750_vm5, %v929_v17  ;;  %951 = vst [vmem:[#allocation2 + $0x8c] sm:$0x1] %v950_v18 }
 0x1a4 PF: > { %s7409_s18 = sld [smem:[#allocation27_spill]] }
 0x1aa   : > { %p4359_p0 = scmp.ne.s32.totalorder %s7409_s18, 1 }
 0x1ab   : > { %v957_v19 = vld [vmem:[#allocation2 + $0x78] sm:$0xf] (!%p4359_p0)  ;;  %v961_v20 = vld [vmem:[#allocation2 + $0x80] sm:$0x1] (!%p4359_p0)  ;;  %v5464_v22 = vmov (!%p4359_p0), 0  }
 0x1ac   : > { %955 = sbr.rel (%p4359_p0) target bundleno = 435 (0x1b3), region = 92  ;;  %v958_v21 = vsel (!%p4359_p0), %vm6064_vm7, 0, %v957_v19  ;;  %960 = vst.msk [vmem:[#allocation2 + $0x7c] sm:$0xf] (!%p4359_p0), %vm750_vm5, %v5464_v22  ;;  %967 = vst.msk [vmem:[#allocation2 + $0x88] sm:$0xf] (!%p4359_p0), %vm750_vm5, %v5464_v22 }
 0x1ad   : > { %v962_v23 = vsel (!%p4359_p0), %vm6000_vm2, 0, %v961_v20  ;;  %v964_v24 = vld [vmem:[#allocation2 + $0x84] sm:$0xf] (!%p4359_p0)  ;;  %v968_v25 = vld [vmem:[#allocation2 + $0x8c] sm:$0x1] (!%p4359_p0) }
 0x1ae   : > { %959 = vst [vmem:[#allocation2 + $0x78] sm:$0xf] (!%p4359_p0), %v958_v21  ;;  %963 = vst [vmem:[#allocation2 + $0x80] sm:$0x1] (!%p4359_p0), %v962_v23  ;;  %v965_v26 = vsel (!%p4359_p0), %vm6064_vm7, 0, %v964_v24  ;;  %v969_v27 = vsel (!%p4359_p0), %vm6000_vm2, 0, %v968_v25 }
 0x1af   : > { %966 = vst [vmem:[#allocation2 + $0x84] sm:$0xf] (!%p4359_p0), %v965_v26  ;;  %970 = vst [vmem:[#allocation2 + $0x8c] sm:$0x1] (!%p4359_p0), %v969_v27 }
 0x1b3 PF: > { %v1012_v28 = vld [vmem:[#allocation2 + $0xc] sm:$0xf]  ;;  %v6210_v29 = vld [vmem:[#allocation2 + $0x10] sm:$0xf]  ;;  %v972_v31 = vld [vmem:[#allocation2 + $0x4] sm:$0xf] }
 0x1b4   : > { %v6213_v30 = vcombine.low %v1012_v28, %v6210_v29  ;;  %v1001_v32 = vld [vmem:[#allocation2] sm:$0xe]  ;;  %v4920_v33 = vld [vmem:[#allocation2 + $0x8] ss:$0 sps:$4 sm:$0x11]   ;;  %s5465_s19 = smov 12  }
 0x1b5   : > { %v4380_v62 = vcombine.low %v1001_v32, %v972_v31  ;;  %vm1343_vm9 = vcmask 1046528   ;;  %v971_v0 = vld [vmem:[#allocation2] sm:$0xf]  ;;  %v973_v34 = vld [vmem:[#allocation2 + $0xc] sm:$0xf]  ;;  %v1345_v35 = vrot.slane %v4920_v33, 1 }
 0x1b6   : > { %1444 = vrot.lane.b32.xlu0 %v6213_v30, %s5465_s19  ;;  %v6217_v36 = vcombine.low %v971_v0, %v972_v31  ;;  %v974_v37 = vld [vmem:[#allocation2 + $0x10] sm:$0xf]  ;;  %v1181_v38 = vshll.u32 %v4920_v33, 16  ;;  %v1002_v40 = vld [vmem:[#allocation2 + $0xc] sm:$0xe]  ;;  %v1497_v43 = vshll.u32 %v6213_v30, 16 }
 0x1b7   : > { %v1344_v39 = vrot.slane %v4380_v62, 1  ;;  %v6219_v41 = vcombine.low %v973_v34, %v974_v37  ;;  %v4924_v42 = vld [vmem:[#allocation2 + $0x14] ss:$0 sps:$4 sm:$0x11]   ;;  %v4381_v44 = vcombine.low %v1002_v40, %v974_v37  ;;  %v1014_v47 = vld [vmem:[#allocation2 + $0x18] sm:$0xf] }
 0x1b8   : > { %v1174_v45 = vshrl.u32 %v6217_v36, 16  ;;  %v1176_v46 = vshll.u32 %v6217_v36, 16  ;;  %v1348_v49 = vrot.slane %v4924_v42, 1  ;;  %vm1172_vm10 = vsmask.f32 7424  ;;  %s5466_s6 = smov 8  }
 0x1b9   : > { %v1346_v48 = vsel %vm1343_vm9, %v1344_v39, %v1345_v35  ;;  %v1183_v50 = vrot.slane %v1181_v38, 1  ;;  %v1015_v51 = vld [vmem:[#allocation2 + $0x1c] sm:$0xf]  ;;  %v1042_v52 = vld [vmem:[#allocation2 + $0xc] sm:$0xe]  ;;  %v1347_v53 = vrot.slane %v4381_v44, 1 }
 0x1ba   : > { %1374 = vrot.lane.b32.xlu1 %v1346_v48, %s5466_s6  ;;  %v1178_v54 = vrot.slane %v1176_v46, 1  ;;  %v1043_v55 = vld [vmem:[#allocation2 + $0x18] sm:$0xe]  ;;  %v4391_v56 = vcombine.low %v1014_v47, %v1015_v51  ;;  %v1186_v57 = vshrl.u32 %v6219_v41, 16  ;;  %v1188_v58 = vshll.u32 %v6219_v41, 16  ;;  %s5467_s16 = smov 4  }
 0x1bb   : > { %v1193_v59 = vshll.u32 %v4924_v42, 16  ;;  %v4928_v60 = vld [vmem:[#allocation2 + $0x20] ss:$0 sps:$4 sm:$0x11]   ;;  %v1349_v61 = vsel %vm1343_vm9, %v1347_v53, %v1348_v49  ;;  %v1054_v3 = vld [vmem:[#allocation2 + $0x24] sm:$0xf]  ;;  %v4411_v4 = vcombine.low %v1043_v55, %v1015_v51  ;;  %v4410_v15 = vcombine.low %v1042_v52, %v6210_v29 }
 0x1bc   : > { %v1179_v63 = vor.u32 %v1178_v54, %v1174_v45  ;;  %v1509_v1 = vshll.u32 %v4391_v56, 16  ;;  %v1507_v2 = vshrl.u32 %v4391_v56, 16  ;;  %v1190_v6 = vrot.slane %v1188_v58, 1  ;;  %v4929_v9 = vld [vmem:[#allocation2 + $0x14] ss:$0 sps:$4 sm:$0x11]  }
 0x1bd   : > { %v1195_v7 = vrot.slane %v1193_v59, 1  ;;  %v1514_v8 = vshll.u32 %v4928_v60, 16  ;;  %v1495_v12 = vshrl.u32 %v6213_v30, 16  ;;  %v1499_v13 = vrot.slane %v1497_v43, 1  ;;  %v6232_v14 = vld [vmem:[#allocation2 + $0x28] sm:$0xf] }
 0x1be   : > { %1376 = vrot.lane.b32.xlu1 %v1349_v61, %s5466_s6  ;;  %v1184_v10 = vsel %vm1172_vm10, %v1179_v63, %v1183_v50  ;;  %v1511_v11 = vrot.slane %v1509_v1, 1  ;;  %v1191_v16 = vor.u32 %v1190_v6, %v1186_v57  ;;  %v1502_v18 = vshll.u32 %v4929_v9, 16  ;;  %v1052_v21 = vld [vmem:[#allocation2 + $0x18] sm:$0xf]  ;;  %v1053_v22 = vld [vmem:[#allocation2 + $0x1c] sm:$0xf] }
 0x1bf   : > { %1293 = vrot.lane.b32.xlu0 %v1184_v10, %s5467_s16  ;;  %v1516_v17 = vrot.slane %v1514_v8, 1  ;;  %v1500_v20 = vor.u32 %v1499_v13, %v1495_v12  ;;  %v1667_v25 = vrot.slane %v4411_v4, 1  ;;  %v4421_v26 = vcombine.low %v1054_v3, %v6232_v14  ;;  %v6239_v29 = vld [vmem:[#allocation2 + $0x2c] ss:$0 sps:$4 sm:$0x11]   ;;  %s5468_s12 = smov 16  }
 0x1c0   : > { %v1512_v19 = vor.u32 %v1511_v11, %v1507_v2  ;;  %v1196_v23 = vsel %vm1172_vm10, %v1191_v16, %v1195_v7  ;;  %v1504_v24 = vrot.slane %v1502_v18, 1  ;;  %v1668_v27 = vrot.slane %v4928_v60, 1  ;;  %v975_v62 = vld [vmem:[#allocation2 + $0x18] sm:$0xf]  ;;  %v6246_v37 = vld [vmem:[#allocation2 + $0x1c] sm:$0xf] }
 0x1c1   : > { %v4420_v28 = vcombine.low %v1052_v21, %v1053_v22  ;;  %v1664_v31 = vrot.slane %v4410_v15, 1  ;;  %v1665_v32 = vrot.slane %v4929_v9, 1  ;;  %v1829_v33 = vshll.u32 %v4421_v26, 16  ;;  %v6244_v35 = vld [vmem:[#allocation2 + $0x20] ss:$0 sps:$4 sm:$0x11]  }
 0x1c2   : > { %1446 = vrot.lane.b32.xlu1 %v4391_v56, %s5465_s19  ;;  %v1517_v30 = vsel %vm1172_vm10, %v1512_v19, %v1516_v17  ;;  %v1505_v0 = vsel %vm1172_vm10, %v1500_v20, %v1504_v24  ;;  %v1082_v38 = vld [vmem:[#allocation2 + $0x18] sm:$0xe]  ;;  %v6249_v39 = vcombine.low %v975_v62, %v6246_v37  ;;  %v4996_v40 = vld [vmem:[#allocation10] sm:$0xff]   ;;  %v1827_v42 = vshrl.u32 %v4421_v26, 16  ;;  %v977_v49 = vld [vmem:[#allocation2 + $0x24] sm:$0xf] }
 0x1c3   : > { %1295 = vrot.lane.b32.xlu0 %v1196_v23, %s5467_s16  ;;  %v1817_v34 = vshll.u32 %v4420_v28, 16  ;;  %v1831_v43 = vrot.slane %v1829_v33, 1  ;;  %v1834_v44 = vshll.u32 %v6239_v29, 16  ;;  %v6253_v45 = vld [vmem:[#allocation2 + $0x20] ss:$0 sps:$4 sm:$0x11]   ;;  %v1669_v46 = vsel %vm1343_vm9, %v1667_v25, %v1668_v27  ;;  %4669 = vmatprep.subr.bf16.mxu0 %v4996_v40 }
 0x1c4   : > { %v1815_v47 = vshrl.u32 %v4420_v28, 16  ;;  %v1200_v48 = vshll.u32 %v6249_v39, 16  ;;  %v5001_v50 = vld [vmem:[#allocation10 + $0x8] sm:$0xff]   ;;  %v1666_v51 = vsel %vm1343_vm9, %v1664_v31, %v1665_v32  ;;  %v1822_v53 = vshll.u32 %v6244_v35, 16  ;;  %v978_v54 = vld [vmem:[#allocation2 + $0x28] sm:$0xf]  ;;  %4670 = vmatpush3.bf16.msra.mxu0 %v4996_v40 }
 0x1c5   : > { %v1819_v52 = vrot.slane %v1817_v34, 1  ;;  %v6260_v55 = vcombine.low %v977_v49, %v978_v54  ;;  %4671 = vmatprep.subr.bf16.mxu0 %v5001_v50  ;;  %s5469_s13 = smov 20   ;;  %v4440_v56 = vcombine.low %v1082_v38, %v1053_v22  ;;  %v1832_v57 = vor.u32 %v1831_v43, %v1827_v42  ;;  %v4939_v63 = vld [vmem:[#allocation2 + $0x2c] ss:$0 sps:$4 sm:$0x11]   ;;  %s5470_s0 = smov 24  }
 0x1c6   : > { %1616 = vrot.lane.b32.xlu1 %v1517_v30, %s5468_s12  ;;  %v1836_v58 = vrot.slane %v1834_v44, 1  ;;  %v1205_v59 = vshll.u32 %v6253_v45, 16  ;;  %v1198_v60 = vshrl.u32 %v6249_v39, 16  ;;  %v1202_v61 = vrot.slane %v1200_v48, 1  ;;  %v1083_v4 = vld [vmem:[#allocation2 + $0x24] sm:$0xe] }
 0x1c7   : > { %1614 = vrot.lane.b32.xlu0 %v1505_v0, %s5468_s12  ;;  %v1212_v1 = vshll.u32 %v6260_v55, 16  ;;  %v1820_v2 = vor.u32 %v1819_v52, %v1815_v47  ;;  %v1824_v3 = vrot.slane %v1822_v53, 1  ;;  %v1984_v8 = vrot.slane %v4440_v56, 1  ;;  %v1004_v15 = vld [vmem:[#allocation2 + $0x24] sm:$0xe]  ;;  %s5471_s10 = smov 28  }
 0x1c8   : > { %4672 = vmatpush3.bf16.msra.mxu0 %v5001_v50  ;;  %v1837_v6 = vsel %vm1172_vm10, %v1832_v57, %v1836_v58  ;;  %v1207_v7 = vrot.slane %v1205_v59, 1  ;;  %v1985_v9 = vrot.slane %v6244_v35, 1  ;;  %v1203_v10 = vor.u32 %v1202_v61, %v1198_v60  ;;  %v1018_v18 = vld [vmem:[#allocation2 + $0x30] sm:$0xf]  ;;  %v1019_v19 = vld [vmem:[#allocation2 + $0x34] sm:$0xf] }
 0x1c9   : > { %v1210_v11 = vshrl.u32 %v6260_v55, 16  ;;  %v1214_v12 = vrot.slane %v1212_v1, 1  ;;  %v1217_v13 = vshll.u32 %v4939_v63, 16  ;;  %v4441_v16 = vcombine.low %v1083_v4, %v6232_v14  ;;  %v1003_v20 = vld [vmem:[#allocation2 + $0x18] sm:$0xe]  ;;  %s5472_s26 = smov 32  }
 0x1ca   : > { %1696 = vrot.lane.b32.xlu1 %v1669_v46, %s5469_s13  ;;  %v1825_v17 = vsel %vm1172_vm10, %v1820_v2, %v1824_v3  ;;  %v1016_v21 = vld [vmem:[#allocation2 + $0x24] sm:$0xf]  ;;  %v1017_v22 = vld [vmem:[#allocation2 + $0x28] sm:$0xf]  ;;  %v1986_v23 = vsel %vm1343_vm9, %v1984_v8, %v1985_v9  ;;  %v4383_v24 = vcombine.low %v1004_v15, %v978_v54  ;;  %v1208_v25 = vsel %vm1172_vm10, %v1203_v10, %v1207_v7  ;;  %v1056_v56 = vld [vmem:[#allocation2 + $0x30] sm:$0xf] }
 0x1cb   : > { %1694 = vrot.lane.b32.xlu0 %v1666_v51, %s5469_s13  ;;  %v1219_v27 = vrot.slane %v1217_v13, 1  ;;  %v4393_v14 = vcombine.low %v1018_v18, %v1019_v19  ;;  %v1988_v30 = vrot.slane %v6239_v29, 1  ;;  %v4382_v31 = vcombine.low %v1003_v20, %v6246_v37  ;;  %v4946_v35 = vld [vmem:[#allocation2 + $0x38] ss:$0 sps:$4 sm:$0x11]  }
 0x1cc   : > { %v4392_v32 = vcombine.low %v1016_v21, %v1017_v22  ;;  %v1353_v62 = vrot.slane %v4383_v24, 1  ;;  %v1354_v0 = vrot.slane %v4939_v63, 1  ;;  %v1351_v42 = vrot.slane %v6253_v45, 1  ;;  %v4947_v43 = vld [vmem:[#allocation2 + $0x2c] ss:$0 sps:$4 sm:$0x11]  }
 0x1cd   : > { %v1533_v34 = vshll.u32 %v4393_v14, 16  ;;  %v1350_v40 = vrot.slane %v4382_v31, 1  ;;  %v1045_v37 = vld [vmem:[#allocation2 + $0x30] sm:$0xe]  ;;  %v1044_v44 = vld [vmem:[#allocation2 + $0x24] sm:$0xe] }
 0x1ce   : > { %1766 = vrot.lane.b32.xlu1 %v4421_v26, %s5470_s0  ;;  %v1215_v26 = vor.u32 %v1214_v12, %v1210_v11  ;;  %v1521_v29 = vshll.u32 %v4392_v32, 16  ;;  %v1531_v46 = vshrl.u32 %v4393_v14, 16  ;;  %v1355_v47 = vsel %vm1343_vm9, %v1353_v62, %v1354_v0  ;;  %v1058_v51 = vld [vmem:[#allocation2 + $0x3c] sm:$0xf]  ;;  %v6289_v45 = vld [vmem:[#allocation2 + $0x40] sm:$0xf] }
 0x1cf   : > { %1764 = vrot.lane.b32.xlu0 %v4420_v28, %s5470_s0  ;;  %v1987_v28 = vrot.slane %v4441_v16, 1  ;;  %v1535_v48 = vrot.slane %v1533_v34, 1  ;;  %v1538_v49 = vshll.u32 %v4946_v35, 16  ;;  %v1519_v50 = vshrl.u32 %v4392_v32, 16  ;;  %v6291_v57 = vld [vmem:[#allocation2 + $0x34] sm:$0xf] }
 0x1d0   : > { %v1220_v33 = vsel %vm1172_vm10, %v1215_v26, %v1219_v27  ;;  %v1352_v52 = vsel %vm1343_vm9, %v1350_v40, %v1351_v42  ;;  %v1523_v53 = vrot.slane %v1521_v29, 1  ;;  %v1526_v54 = vshll.u32 %v4947_v43, 16  ;;  %v979_v4 = vld [vmem:[#allocation2 + $0x30] sm:$0xf]  ;;  %v982_v20 = vld [vmem:[#allocation2 + $0x40] sm:$0xf] }
 0x1d1   : > { %v1989_v38 = vsel %vm1343_vm9, %v1987_v28, %v1988_v30  ;;  %v4413_v58 = vcombine.low %v1045_v37, %v1019_v19  ;;  %v4412_v59 = vcombine.low %v1044_v44, %v1017_v22  ;;  %v1536_v60 = vor.u32 %v1535_v48, %v1531_v46  ;;  %v6299_v7 = vld [vmem:[#allocation2 + $0x44] ss:$0 sps:$4 sm:$0x11]   ;;  %v4953_v13 = vld [vmem:[#allocation2 + $0x38] ss:$0 sps:$4 sm:$0x11]  }
 0x1d2   : > { %1936 = vrot.lane.b32.xlu1 %v1837_v6, %s5471_s10  ;;  %v1540_v61 = vrot.slane %v1538_v49, 1  ;;  %v4423_v63 = vcombine.low %v1058_v51, %v6289_v45  ;;  %v1524_v1 = vor.u32 %v1523_v53, %v1519_v50  ;;  %v1528_v2 = vrot.slane %v1526_v54, 1  ;;  %v6297_v6 = vld [vmem:[#allocation2 + $0x34] sm:$0xf]  ;;  %v981_v19 = vld [vmem:[#allocation2 + $0x3c] sm:$0xf] }
 0x1d3   : > { %1934 = vrot.lane.b32.xlu0 %v1825_v17, %s5471_s10  ;;  %v4422_v3 = vcombine.low %v1056_v56, %v6291_v57  ;;  %v1673_v8 = vrot.slane %v4413_v58, 1  ;;  %v1674_v9 = vrot.slane %v4946_v35, 1  ;;  %v1670_v11 = vrot.slane %v4412_v59, 1  ;;  %v4957_v40 = vld [vmem:[#allocation2 + $0x44] ss:$0 sps:$4 sm:$0x11]  }
 0x1d4   : > { %v1541_v10 = vsel %vm1172_vm10, %v1536_v60, %v1540_v61  ;;  %v1853_v12 = vshll.u32 %v4423_v63, 16  ;;  %v6305_v15 = vcombine.low %v979_v4, %v6297_v6  ;;  %v1529_v16 = vsel %vm1172_vm10, %v1524_v1, %v1528_v2  ;;  %v1006_v48 = vld [vmem:[#allocation2 + $0x3c] sm:$0xe]  ;;  %v1022_v49 = vld [vmem:[#allocation2 + $0x48] sm:$0xf] }
 0x1d5   : > { %v1671_v17 = vrot.slane %v4947_v43, 1  ;;  %v1841_v18 = vshll.u32 %v4422_v3, 16  ;;  %v1675_v21 = vsel %vm1343_vm9, %v1673_v8, %v1674_v9  ;;  %v1858_v22 = vshll.u32 %v6299_v7, 16  ;;  %v1023_v54 = vld [vmem:[#allocation2 + $0x4c] sm:$0xf] }
 0x1d6   : > { %1297 = vrot.lane.b32.xlu1 %v1208_v25, %s5467_s16  ;;  %v1851_v24 = vshrl.u32 %v4423_v63, 16  ;;  %v1855_v25 = vrot.slane %v1853_v12, 1  ;;  %v1224_v26 = vshll.u32 %v6305_v15, 16  ;;  %v6315_v27 = vcombine.low %v981_v19, %v982_v20  ;;  %v1020_v59 = vld [vmem:[#allocation2 + $0x3c] sm:$0xf] }
 0x1d7   : > { %2014 = vrot.lane.b32.xlu0 %v1986_v23, %s5472_s26  ;;  %v6311_v23 = vld [vmem:[#allocation2 + $0x38] ss:$0 sps:$4 sm:$0x11]   ;;  %v1839_v28 = vshrl.u32 %v4422_v3, 16  ;;  %v1843_v30 = vrot.slane %v1841_v18, 1  ;;  %v1846_v31 = vshll.u32 %v4953_v13, 16  ;;  %v4385_v61 = vcombine.low %v1006_v48, %v982_v20 }
 0x1d8   : > { %v1860_v62 = vrot.slane %v1858_v22, 1  ;;  %v1229_v0 = vshll.u32 %v6311_v23, 16  ;;  %v1856_v34 = vor.u32 %v1855_v25, %v1851_v24  ;;  %v1222_v35 = vshrl.u32 %v6305_v15, 16  ;;  %v1021_v60 = vld [vmem:[#allocation2 + $0x40] sm:$0xf] }
 0x1d9   : > { %v1236_v42 = vshll.u32 %v6315_v27, 16  ;;  %v1844_v43 = vor.u32 %v1843_v30, %v1839_v28  ;;  %v1848_v37 = vrot.slane %v1846_v31, 1  ;;  %v1241_v53 = vshll.u32 %v4957_v40, 16  ;;  %v4964_v18 = vld [vmem:[#allocation2 + $0x50] ss:$0 sps:$4 sm:$0x11]  }
 0x1da   : > { %1299 = vrot.lane.b32.xlu1 %v1220_v33, %s5467_s16  ;;  %v1085_v33 = vld [vmem:[#allocation2 + $0x3c] sm:$0xe]  ;;  %v1231_v46 = vrot.slane %v1229_v0, 1  ;;  %v1861_v50 = vsel %vm1172_vm10, %v1856_v34, %v1860_v62  ;;  %v1991_v58 = vrot.slane %v4953_v13, 1  ;;  %v1994_v9 = vrot.slane %v6299_v7, 1 }
 0x1db   : > { %2016 = vrot.lane.b32.xlu0 %v1989_v38, %s5472_s26  ;;  %v1226_v38 = vrot.slane %v1224_v26, 1  ;;  %v4443_v44 = vcombine.low %v1085_v33, %v6289_v45  ;;  %v1849_v56 = vsel %vm1172_vm10, %v1844_v43, %v1848_v37  ;;  %v1005_v45 = vld [vmem:[#allocation2 + $0x30] sm:$0xe]  ;;  %v1359_v12 = vrot.slane %v4385_v61, 1  ;;  %v1062_v26 = vld [vmem:[#allocation2 + $0x54] sm:$0xf] }
 0x1dc   : > { %v1360_v13 = vrot.slane %v4957_v40, 1  ;;  %v4965_v19 = vld [vmem:[#allocation2 + $0x44] ss:$0 sps:$4 sm:$0x11]   ;;  %v1357_v22 = vrot.slane %v6311_v23, 1  ;;  %v1562_v28 = vshll.u32 %v4964_v18, 16 }
 0x1dd   : > { %v1227_v51 = vor.u32 %v1226_v38, %v1222_v35  ;;  %v1993_v4 = vrot.slane %v4443_v44, 1  ;;  %v1550_v30 = vshll.u32 %v4965_v19, 16  ;;  %v6344_v31 = vld [vmem:[#allocation2 + $0x58] sm:$0xf]  ;;  %v1046_v33 = vld [vmem:[#allocation2 + $0x3c] sm:$0xe] }
 0x1de   : > { %1380 = vrot.lane.b32.xlu1 %v1355_v47, %s5466_s6  ;;  %v1234_v47 = vshrl.u32 %v6315_v27, 16  ;;  %v1060_v0 = vld [vmem:[#allocation2 + $0x48] sm:$0xf]  ;;  %v1061_v34 = vld [vmem:[#allocation2 + $0x4c] sm:$0xf]  ;;  %v4425_v38 = vcombine.low %v1062_v26, %v6344_v31  ;;  %v4414_v40 = vcombine.low %v1046_v33, %v1021_v60  ;;  %vm2243_vm11 = vcmask 1041408  }
 0x1df   : > { %1378 = vrot.lane.b32.xlu0 %v1352_v52, %s5466_s6  ;;  %v1238_v52 = vrot.slane %v1236_v42, 1  ;;  %v1232_v1 = vsel %vm1172_vm10, %v1227_v51, %v1231_v46  ;;  %v1995_v20 = vsel %vm1343_vm9, %v1993_v4, %v1994_v9  ;;  %v1552_v43 = vrot.slane %v1550_v30, 1  ;;  %v983_v46 = vld [vmem:[#allocation2 + $0x48] sm:$0xf] }
 0x1e0   : > { %v4424_v44 = vcombine.low %v1060_v0, %v1061_v34  ;;  %v6352_v48 = vld [vmem:[#allocation2 + $0x5c] ss:$0 sps:$4 sm:$0x11]   ;;  %v1877_v51 = vshll.u32 %v4425_v38, 16  ;;  %v1086_v61 = vld [vmem:[#allocation2 + $0x48] sm:$0xe] }
 0x1e1   : > { %v1239_v2 = vor.u32 %v1238_v52, %v1234_v47  ;;  %v6350_v47 = vld [vmem:[#allocation2 + $0x4c] sm:$0xf]  ;;  %v5004_v33 = vld [vmem:[#allocation10 + $0x10] ss:$0 sps:$4 sm:$0x33]   ;;  %vm2034_vm12 = vcmask 31744  }
 0x1e2   : > { %1450 = vrot.lane.b32.xlu1 %v4393_v14, %s5465_s19  ;;  %v1672_v14 = vsel %vm1343_vm9, %v1670_v11, %v1671_v17  ;;  %v4394_v11 = vcombine.low %v1020_v59, %v1021_v60  ;;  %v985_v59 = vld [vmem:[#allocation2 + $0x54] sm:$0xf]  ;;  %v6361_v60 = vld [vmem:[#allocation2 + $0x58] sm:$0xf]  ;;  %4721 = vmatprep.subr.msk.bf16.mxu0 %vm2243_vm11, %v5004_v33  ;;  %vm2055_vm13 = vcmask 64512   ;;  %vm2076_vm14 = vcmask 97280  }
 0x1e3   : > { %1448 = vrot.lane.b32.xlu0 %v4392_v32, %s5465_s19  ;;  %v1084_v32 = vld [vmem:[#allocation2 + $0x30] sm:$0xe]  ;;  %v6371_v9 = vcombine.low %v985_v59, %v6361_v60  ;;  %vm2097_vm15 = vcmask 130048   ;;  %vm2118_vm0 = vcmask 162816   ;;  %vm2139_vm2 = vcmask 195584  }
 0x1e4   : > { %v4442_v29 = vcombine.low %v1084_v32, %v6291_v57  ;;  %v1545_v7 = vshll.u32 %v4394_v11, 16  ;;  %v1543_v62 = vshrl.u32 %v4394_v11, 16  ;;  %vm2160_vm4 = vcmask 228352  }
 0x1e5   : > { %vm2181_vm5 = vcmask 261120   ;;  %vm2222_vm6 = vcmask 293888   ;;  %vm2430_vm7 = vcmask 57344  }
 0x1e6   : > { %1620 = vrot.lane.b32.xlu1 %v1541_v10, %s5468_s12  ;;  %v1990_v57 = vrot.slane %v4442_v29, 1  ;;  %v4384_v10 = vcombine.low %v1005_v45, %v6297_v6  ;;  %v1047_v6 = vld [vmem:[#allocation2 + $0x48] sm:$0xe]  ;;  %v1547_v23 = vrot.slane %v1545_v7, 1  ;;  %v1564_v29 = vrot.slane %v1562_v28, 1 }
 0x1e7   : > { %1618 = vrot.lane.b32.xlu0 %v1529_v16, %s5468_s12  ;;  %v4415_v35 = vcombine.low %v1047_v6, %v1023_v54  ;;  %v1865_v45 = vshll.u32 %v4424_v44, 16  ;;  %v1260_v7 = vshll.u32 %v6371_v9, 16 }
 0x1e8   : > { %v1992_v8 = vsel %vm1343_vm9, %v1990_v57, %v1991_v58  ;;  %v1548_v37 = vor.u32 %v1547_v23, %v1543_v62  ;;  %v1677_v58 = vrot.slane %v4965_v19, 1 }
 0x1e9   : > { %v1262_v23 = vrot.slane %v1260_v7, 1  ;;  %v1065_v7 = vld [vmem:[#allocation2 + $0x64] sm:$0xf] }
 0x1ea   : > { %1700 = vrot.lane.b32.xlu1 %v1675_v21, %s5469_s13  ;;  %v1356_v21 = vrot.slane %v4384_v10, 1  ;;  %v1553_v57 = vsel %vm1172_vm10, %v1548_v37, %v1552_v43  ;;  %v1024_v43 = vld [vmem:[#allocation2 + $0x54] sm:$0xf]  ;;  %v1025_v37 = vld [vmem:[#allocation2 + $0x58] sm:$0xf] }
 0x1eb   : > { %1698 = vrot.lane.b32.xlu0 %v1672_v14, %s5469_s13  ;;  %v1361_v14 = vsel %vm1343_vm9, %v1359_v12, %v1360_v13  ;;  %v1867_v12 = vrot.slane %v1865_v45, 1 }
 0x1ec   : > { %v1358_v32 = vsel %vm1343_vm9, %v1356_v21, %v1357_v22  ;;  %v4975_v21 = vld [vmem:[#allocation2 + $0x5c] ss:$0 sps:$4 sm:$0x11]  }
 0x1ed   : > { %v1265_v0 = vshll.u32 %v4975_v21, 16 }
 0x1ee   : > { %1770 = vrot.lane.b32.xlu1 %v4423_v63, %s5470_s0  ;;  %v4395_v63 = vcombine.low %v1022_v49, %v1023_v54  ;;  %v1679_v49 = vrot.slane %v4415_v35, 1  ;;  %v4971_v54 = vld [vmem:[#allocation2 + $0x50] ss:$0 sps:$4 sm:$0x11]  }
 0x1ef   : > { %1768 = vrot.lane.b32.xlu0 %v4422_v3, %s5470_s0  ;;  %v1243_v3 = vrot.slane %v1241_v53, 1  ;;  %v1676_v53 = vrot.slane %v4414_v40, 1  ;;  %v1870_v13 = vshll.u32 %v4971_v54, 16  ;;  %v1997_v28 = vrot.slane %v4971_v54, 1 }
 0x1f0   : > { %v1557_v16 = vshll.u32 %v4395_v63, 16  ;;  %v1555_v24 = vshrl.u32 %v4395_v63, 16  ;;  %v2000_v54 = vrot.slane %v6352_v48, 1 }
 0x1f1   : > { %v1244_v17 = vsel %vm1172_vm10, %v1239_v2, %v1243_v3  ;;  %v1875_v2 = vshrl.u32 %v4425_v38, 16  ;;  %v1879_v3 = vrot.slane %v1877_v51, 1  ;;  %v1678_v10 = vsel %vm1343_vm9, %v1676_v53, %v1677_v58 }
 0x1f2   : > { %1940 = vrot.lane.b32.xlu1 %v1861_v50, %s5471_s10  ;;  %v1559_v25 = vrot.slane %v1557_v16, 1  ;;  %v1680_v50 = vrot.slane %v4964_v18, 1  ;;  %v4444_v16 = vcombine.low %v1086_v61, %v1061_v34  ;;  %v1008_v34 = vld [vmem:[#allocation2 + $0x54] sm:$0xe]  ;;  %v1267_v51 = vrot.slane %v1265_v0, 1 }
 0x1f3   : > { %1938 = vrot.lane.b32.xlu0 %v1849_v56, %s5471_s10  ;;  %v6358_v56 = vcombine.low %v983_v46, %v6350_v47  ;;  %v1880_v19 = vor.u32 %v1879_v3, %v1875_v2  ;;  %v4396_v58 = vcombine.low %v1024_v43, %v1025_v37 }
 0x1f4   : > { %v1560_v42 = vor.u32 %v1559_v25, %v1555_v24  ;;  %v1681_v4 = vsel %vm1343_vm9, %v1679_v49, %v1680_v50  ;;  %v1872_v24 = vrot.slane %v1870_v13, 1  ;;  %v1087_v25 = vld [vmem:[#allocation2 + $0x54] sm:$0xe]  ;;  %v2245_v49 = vsel %vm2243_vm11, %v5004_v33, 0  ;;  %v987_v33 = vld [vmem:[#allocation2 + $0x60] sm:$0xf]  ;;  %vm6605_vm11 = vmand %vm2430_vm7, %vm495_vm1 }
 0x1f5   : > { %v4445_v35 = vcombine.low %v1087_v25, %v6344_v31  ;;  %4674 = vmatpush3.bf16.msra.mxu0 %v2245_v49  ;;  %v6417_v49 = vld [vmem:[#allocation2 + $0x70] sm:$0xf]  ;;  %vm6619_vm1 = vmand %vm2430_vm7, %vm533_vm3 }
 0x1f6   : > { %1301 = vrot.lane.b32.xlu1 %v1232_v1, %s5467_s16  ;;  %v1565_v52 = vsel %vm1172_vm10, %v1560_v42, %v1564_v29  ;;  %v6364_v1 = vld [vmem:[#allocation2 + $0x50] ss:$0 sps:$4 sm:$0x11]   ;;  %v1026_v42 = vld [vmem:[#allocation2 + $0x60] sm:$0xf] }
 0x1f7   : > { %2018 = vrot.lane.b32.xlu0 %v1992_v8, %s5472_s26  ;;  %v1248_v8 = vshll.u32 %v6358_v56, 16  ;;  %v1253_v18 = vshll.u32 %v6364_v1, 16  ;;  %v1027_v29 = vld [vmem:[#allocation2 + $0x64] sm:$0xf]  ;;  %v1999_v53 = vrot.slane %v4445_v35, 1 }
 0x1f9   : > { %v1250_v22 = vrot.slane %v1248_v8, 1  ;;  %v1255_v26 = vrot.slane %v1253_v18, 1  ;;  %v2001_v2 = vsel %vm1343_vm9, %v1999_v53, %v2000_v54  ;;  %v1569_v8 = vshll.u32 %v4396_v58, 16  ;;  %v1088_v54 = vld [vmem:[#allocation2 + $0x60] sm:$0xe] }
 0x1fa   : > { %1303 = vrot.lane.b32.xlu1 %v1244_v17, %s5467_s16 }
 0x1fb   : > { %2020 = vrot.lane.b32.xlu0 %v1995_v20, %s5472_s26  ;;  %v1246_v20 = vshrl.u32 %v6358_v56, 16 }
 0x1fd   : > { %v1251_v62 = vor.u32 %v1250_v22, %v1246_v20  ;;  %v1567_v20 = vshrl.u32 %v4396_v58, 16  ;;  %v1064_v22 = vld [vmem:[#allocation2 + $0x60] sm:$0xf] }
 0x1fe   : > { %1384 = vrot.lane.b32.xlu1 %v1361_v14, %s5466_s6  ;;  %v1996_v14 = vrot.slane %v4444_v16, 1 }
 0x1ff   : > { %1382 = vrot.lane.b32.xlu0 %v1358_v32, %s5466_s6  ;;  %v1258_v32 = vshrl.u32 %v6371_v9, 16  ;;  %v1256_v50 = vsel %vm1172_vm10, %v1251_v62, %v1255_v26  ;;  %v6406_v62 = vld [vmem:[#allocation2 + $0x64] sm:$0xf] }
 0x200   : > { %v1998_v46 = vsel %vm1343_vm9, %v1996_v14, %v1997_v28 }
 0x201   : > { %v1263_v31 = vor.u32 %v1262_v23, %v1258_v32  ;;  %v4426_v32 = vcombine.low %v1064_v22, %v1065_v7 }
 0x202   : > { %1454 = vrot.lane.b32.xlu1 %v4395_v63, %s5465_s19  ;;  %v1882_v63 = vshll.u32 %v6352_v48, 16  ;;  %v4983_v48 = vld [vmem:[#allocation2 + $0x5c] ss:$0 sps:$4 sm:$0x11]  }
 0x203   : > { %1452 = vrot.lane.b32.xlu0 %v4394_v11, %s5465_s19  ;;  %v1863_v11 = vshrl.u32 %v4424_v44, 16  ;;  %v1268_v45 = vsel %vm1172_vm10, %v1263_v31, %v1267_v51 }
 0x204   : > { %v1884_v17 = vrot.slane %v1882_v63, 1  ;;  %v4982_v63 = vld [vmem:[#allocation2 + $0x68] ss:$0 sps:$4 sm:$0x11]  }
 0x205   : > { %v1868_v6 = vor.u32 %v1867_v12, %v1863_v11  ;;  %v1586_v16 = vshll.u32 %v4982_v63, 16 }
 0x206   : > { %1624 = vrot.lane.b32.xlu1 %v1565_v52, %s5468_s12  ;;  %v1885_v30 = vsel %vm1172_vm10, %v1880_v19, %v1884_v17  ;;  %v4397_v52 = vcombine.low %v1026_v42, %v1027_v29  ;;  %v6400_v17 = vld [vmem:[#allocation2 + $0x70] sm:$0xf]  ;;  %v1048_v19 = vld [vmem:[#allocation2 + $0x54] sm:$0xe] }
 0x207   : > { %1622 = vrot.lane.b32.xlu0 %v1553_v57, %s5468_s12  ;;  %v1873_v40 = vsel %vm1172_vm10, %v1868_v6, %v1872_v24  ;;  %v4416_v25 = vcombine.low %v1048_v19, %v1025_v37  ;;  %v1588_v14 = vrot.slane %v1586_v16, 1  ;;  %v1683_v37 = vrot.slane %v4983_v48, 1 }
 0x208   : > { %v1581_v61 = vshll.u32 %v4397_v52, 16  ;;  %v1579_v12 = vshrl.u32 %v4397_v52, 16 }
 0x209   : > { %v1682_v42 = vrot.slane %v4416_v25, 1 }
 0x20a   : > { %1704 = vrot.lane.b32.xlu1 %v1681_v4, %s5469_s13  ;;  %v1363_v4 = vrot.slane %v6364_v1, 1  ;;  %v1583_v13 = vrot.slane %v1581_v61, 1  ;;  %v1571_v1 = vrot.slane %v1569_v8, 1 }
 0x20b   : > { %1702 = vrot.lane.b32.xlu0 %v1678_v10, %s5469_s13  ;;  %v1066_v10 = vld [vmem:[#allocation2 + $0x6c] sm:$0xf] }
 0x20c   : > { %v4427_v24 = vcombine.low %v1066_v10, %v6400_v17  ;;  %v1584_v26 = vor.u32 %v1583_v13, %v1579_v12  ;;  %v1572_v28 = vor.u32 %v1571_v1, %v1567_v20  ;;  %v4993_v10 = vld [vmem:[#allocation2 + $0x74] ss:$0 sps:$4 sm:$0x11]  }
 0x20d   : > { %v1289_v25 = vshll.u32 %v4993_v10, 16 }
 0x20e   : > { %1774 = vrot.lane.b32.xlu1 %v4425_v38, %s5470_s0  ;;  %v1007_v38 = vld [vmem:[#allocation2 + $0x48] sm:$0xe]  ;;  %v1901_v0 = vshll.u32 %v4427_v24, 16  ;;  %v1589_v35 = vsel %vm1172_vm10, %v1584_v26, %v1588_v14  ;;  %v1010_v26 = vld [vmem:[#allocation2 + $0x6c] sm:$0xe] }
 0x20f   : > { %1772 = vrot.lane.b32.xlu0 %v4424_v44, %s5470_s0  ;;  %v4387_v44 = vcombine.low %v1008_v34, %v6361_v60  ;;  %v4386_v57 = vcombine.low %v1007_v38, %v6350_v47  ;;  %v1366_v60 = vrot.slane %v4975_v21, 1  ;;  %v1049_v47 = vld [vmem:[#allocation2 + $0x60] sm:$0xe]  ;;  %v1574_v21 = vshll.u32 %v4983_v48, 16 }
 0x210   : > { %v4417_v6 = vcombine.low %v1049_v47, %v1027_v29  ;;  %v6409_v34 = vld [vmem:[#allocation2 + $0x74] ss:$0 sps:$4 sm:$0x11]   ;;  %v4989_v29 = vld [vmem:[#allocation2 + $0x68] ss:$0 sps:$4 sm:$0x11]   ;;  %v6414_v38 = vcombine.low %v987_v33, %v6406_v62 }
 0x211   : > { %v1365_v59 = vrot.slane %v4387_v44, 1  ;;  %v1362_v3 = vrot.slane %v4386_v57, 1  ;;  %v989_v44 = vld [vmem:[#allocation2 + $0x6c] sm:$0xf]  ;;  %v1903_v31 = vrot.slane %v1901_v0, 1  ;;  %v1906_v51 = vshll.u32 %v6409_v34, 16 }
 0x212   : > { %1944 = vrot.lane.b32.xlu1 %v1885_v30, %s5471_s10  ;;  %v1576_v30 = vrot.slane %v1574_v21, 1  ;;  %v1685_v23 = vrot.slane %v4417_v6, 1  ;;  %v1272_v57 = vshll.u32 %v6414_v38, 16  ;;  %v1894_v61 = vshll.u32 %v4989_v29, 16  ;;  %v6447_v33 = vld [vmem:[#allocation2 + $0x7c] sm:$0xf] }
 0x213   : > { %1942 = vrot.lane.b32.xlu0 %v1873_v40, %s5471_s10  ;;  %v1367_v11 = vsel %vm1343_vm9, %v1365_v59, %v1366_v60  ;;  %v1364_v18 = vsel %vm1343_vm9, %v1362_v3, %v1363_v4  ;;  %v1686_v40 = vrot.slane %v4982_v63, 1  ;;  %v1887_v59 = vshrl.u32 %v4426_v32, 16  ;;  %v1009_v0 = vld [vmem:[#allocation2 + $0x60] sm:$0xe] }
 0x214   : > { %v1577_v43 = vsel %vm1172_vm10, %v1572_v28, %v1576_v30  ;;  %v4446_v63 = vcombine.low %v1088_v54, %v1065_v7  ;;  %v1908_v3 = vrot.slane %v1906_v51, 1  ;;  %v1270_v48 = vshrl.u32 %v6414_v38, 16 }
 0x215   : > { %v1687_v53 = vsel %vm1343_vm9, %v1685_v23, %v1686_v40  ;;  %v1274_v47 = vrot.slane %v1272_v57, 1  ;;  %v1896_v16 = vrot.slane %v1894_v61, 1  ;;  %v2003_v21 = vrot.slane %v4989_v29, 1  ;;  %v6449_v40 = vld [vmem:[#allocation2 + $0x70] sm:$0xf] }
 0x216   : > { %1305 = vrot.lane.b32.xlu1 %v1256_v50, %s5467_s16  ;;  %v1899_v50 = vshrl.u32 %v4427_v24, 16  ;;  %v2002_v1 = vrot.slane %v4446_v63, 1  ;;  %v1372_v54 = vrot.slane %v4993_v10, 1 }
 0x217   : > { %2022 = vrot.lane.b32.xlu0 %v1998_v46, %s5472_s26  ;;  %v1889_v46 = vshll.u32 %v4426_v32, 16  ;;  %v1275_v22 = vor.u32 %v1274_v47, %v1270_v48  ;;  %v1051_v48 = vld [vmem:[#allocation2 + $0x78] sm:$0xe]  ;;  %v1050_v47 = vld [vmem:[#allocation2 + $0x6c] sm:$0xe] }
 0x219   : > { %v1891_v60 = vrot.slane %v1889_v46, 1 }
 0x21a   : > { %1307 = vrot.lane.b32.xlu1 %v1268_v45, %s5467_s16  ;;  %v1684_v45 = vsel %vm1343_vm9, %v1682_v42, %v1683_v37  ;;  %v4389_v42 = vcombine.low %v1010_v26, %v6417_v49  ;;  %v4418_v26 = vcombine.low %v1050_v47, %v6449_v40 }
 0x21b   : > { %2024 = vrot.lane.b32.xlu0 %v2001_v2, %s5472_s26  ;;  %v1904_v2 = vor.u32 %v1903_v31, %v1899_v50  ;;  %v1892_v13 = vor.u32 %v1891_v60, %v1887_v59  ;;  %v2006_v50 = vrot.slane %v6409_v34, 1  ;;  %v4388_v31 = vcombine.low %v1009_v0, %v6406_v62  ;;  %v6465_v59 = vld [vmem:[#allocation2 + $0x80] ss:$0 sps:$4 sm:$0x11]  }
 0x21d   : > { %v1909_v19 = vsel %vm1172_vm10, %v1904_v2, %v1908_v3  ;;  %v1897_v30 = vsel %vm1172_vm10, %v1892_v13, %v1896_v16  ;;  %v1368_v61 = vrot.slane %v4388_v31, 1  ;;  %v6471_v2 = vld [vmem:[#allocation2 + $0x74] ss:$0 sps:$4 sm:$0x11]   ;;  %v1610_v13 = vshll.u32 %v6465_v59, 16 }
 0x21e   : > { %1388 = vrot.lane.b32.xlu1 %v1367_v11, %s5466_s6  ;;  %v6507_v31 = vld [vmem:[#allocation2 + $0x8c] ss:$0 sps:$4 sm:$0x11]  }
 0x21f   : > { %1386 = vrot.lane.b32.xlu0 %v1364_v18, %s5466_s6  ;;  %v1089_v18 = vld [vmem:[#allocation2 + $0x6c] sm:$0xe] }
 0x220   : > { %v4447_v14 = vcombine.low %v1089_v18, %v6400_v17 }
 0x222   : > { %1458 = vrot.lane.b32.xlu1 %v4397_v52, %s5465_s19  ;;  %v6421_v52 = vld [vmem:[#allocation2 + $0x68] ss:$0 sps:$4 sm:$0x11]  }
 0x223   : > { %1456 = vrot.lane.b32.xlu0 %v4396_v58, %s5465_s19  ;;  %v6427_v58 = vcombine.low %v989_v44, %v6417_v49  ;;  %v1277_v4 = vshll.u32 %v6421_v52, 16  ;;  %v2005_v44 = vrot.slane %v4447_v14, 1  ;;  %v1371_v49 = vrot.slane %v4389_v42, 1 }
 0x224   : > { %v1369_v62 = vrot.slane %v6421_v52, 1 }
 0x225   : > { %v1284_v11 = vshll.u32 %v6427_v58, 16  ;;  %v1279_v20 = vrot.slane %v1277_v4, 1  ;;  %v1282_v7 = vshrl.u32 %v6427_v58, 16  ;;  %v2007_v34 = vsel %vm1343_vm9, %v2005_v44, %v2006_v50 }
 0x226   : > { %1628 = vrot.lane.b32.xlu1 %v1589_v35, %s5468_s12  ;;  %v1028_v35 = vld [vmem:[#allocation2 + $0x6c] sm:$0xf]  ;;  %v1373_v4 = vsel %vm1343_vm9, %v1371_v49, %v1372_v54  ;;  %v1370_v52 = vsel %vm1343_vm9, %v1368_v61, %v1369_v62  ;;  %v1689_v44 = vrot.slane %v6471_v2, 1  ;;  %v5010_v54 = vld [vmem:[#allocation2 + $0x80] ss:$0 sps:$4 sm:$0x11]  }
 0x227   : > { %1626 = vrot.lane.b32.xlu0 %v1577_v43, %s5468_s12  ;;  %v1286_v6 = vrot.slane %v1284_v11, 1  ;;  %v1280_v17 = vsel %vm1172_vm10, %v1275_v22, %v1279_v20  ;;  %v1291_v43 = vrot.slane %v1289_v25, 1  ;;  %v4398_v51 = vcombine.low %v1028_v35, %v6449_v40  ;;  %v6484_v25 = vld [vmem:[#allocation2 + $0x7c] sm:$0xf] }
 0x228   : > { %v6433_v8 = vpop.permute.xlu0 %1444  ;;  %v1598_v20 = vshll.u32 %v6471_v2, 16 }
 0x229   : > { %v1287_v29 = vor.u32 %v1286_v6, %v1282_v7  ;;  %v1593_v63 = vshll.u32 %v4398_v51, 16  ;;  %v1591_v16 = vshrl.u32 %v4398_v51, 16  ;;  %v4419_v7 = vcombine.low %v1051_v48, %v6447_v33  ;;  %v1068_v6 = vld [vmem:[#allocation2 + $0x78] sm:$0xf] }
 0x22a   : > { %1708 = vrot.lane.b32.xlu1 %v1687_v53, %s5469_s13  ;;  %v6495_v42 = vcombine.low %v1068_v6, %v6484_v25 }
 0x22b   : > { %1706 = vrot.lane.b32.xlu0 %v1684_v45, %s5469_s13  ;;  %v1292_v57 = vsel %vm1172_vm10, %v1287_v29, %v1291_v43  ;;  %v1691_v29 = vrot.slane %v4419_v7, 1  ;;  %v1688_v43 = vrot.slane %v4418_v26, 1 }
 0x22c   : > { %v6437_v12 = vpop.permute.xlu1 %1374  ;;  %v1913_v49 = vshll.u32 %v6495_v42, 16  ;;  %v1911_v48 = vshrl.u32 %v6495_v42, 16 }
 0x22e   : > { %1778 = vrot.lane.b32.xlu1 %v4427_v24, %s5470_s0  ;;  %v1030_v24 = vld [vmem:[#allocation2 + $0x78] sm:$0xf]  ;;  %v1915_v47 = vrot.slane %v1913_v49, 1 }
 0x22f   : > { %1776 = vrot.lane.b32.xlu0 %v4426_v32, %s5470_s0  ;;  %v2004_v32 = vsel %vm1343_vm9, %v2002_v1, %v2003_v21  ;;  %v4399_v37 = vcombine.low %v1030_v24, %v6447_v33  ;;  %v1070_v1 = vld [vmem:[#allocation2 + $0x84] sm:$0xf]  ;;  %v6481_v21 = vld [vmem:[#allocation2 + $0x88] sm:$0xf]  ;;  %v1612_v24 = vrot.slane %v1610_v13, 1 }
 0x230   : > { %v6444_v28 = vpop.permute.xlu1 %1376  ;;  %v6492_v0 = vcombine.low %v1070_v1, %v6481_v21  ;;  %v1916_v26 = vor.u32 %v1915_v47, %v1911_v48 }
 0x231   : > { %v1294_v23 = vpop.permute.xlu0 %1293  ;;  %v1605_v45 = vshll.u32 %v4399_v37, 16  ;;  %v1603_v10 = vshrl.u32 %v4399_v37, 16 }
 0x232   : > { %1948 = vrot.lane.b32.xlu1 %v1909_v19, %s5471_s10  ;;  %v1595_v19 = vrot.slane %v1593_v63, 1  ;;  %v2036_v14 = vsel %vm2034_vm12, %v6217_v36, %v1294_v23  ;;  %v1692_v36 = vrot.slane %v6465_v59, 1  ;;  %v1930_v63 = vshll.u32 %v6507_v31, 16 }
 0x233   : > { %1946 = vrot.lane.b32.xlu0 %v1897_v30, %s5471_s10  ;;  %v1607_v11 = vrot.slane %v1605_v45, 1  ;;  %v2057_v23 = vsel %vm2055_vm13, %v2036_v14, %v6437_v12 }
 0x234   : > { %v6457_v46 = vpop.permute.xlu1 %1446  ;;  %v1596_v33 = vor.u32 %v1595_v19, %v1591_v16  ;;  %v1693_v45 = vsel %vm1343_vm9, %v1691_v29, %v1692_v36  ;;  %v1090_v16 = vld [vmem:[#allocation2 + $0x78] sm:$0xe] }
 0x235   : > { %v1296_v53 = vpop.permute.xlu0 %1295  ;;  %v1608_v30 = vor.u32 %v1607_v11, %v1603_v10  ;;  %v1918_v10 = vshll.u32 %v5010_v54, 16 }
 0x236   : > { %1309 = vrot.lane.b32.xlu1 %v1280_v17, %s5467_s16  ;;  %v2038_v17 = vsel %vm2034_vm12, %v6219_v41, %v1296_v53  ;;  %v1925_v41 = vshll.u32 %v6492_v0, 16 }
 0x237   : > { %2026 = vrot.lane.b32.xlu0 %v2004_v32, %s5472_s26  ;;  %v1600_v32 = vrot.slane %v1598_v20, 1  ;;  %v1613_v50 = vsel %vm1172_vm10, %v1608_v30, %v1612_v24  ;;  %v2059_v53 = vsel %vm2055_vm13, %v2038_v17, %v6444_v28  ;;  %v1690_v28 = vsel %vm1343_vm9, %v1688_v43, %v1689_v44 }
 0x238   : > { %v6467_v60 = vpop.permute.xlu1 %1616  ;;  %v2080_v61 = vsel %vm2076_vm14, %v2059_v53, %v6457_v46  ;;  %v1920_v14 = vrot.slane %v1918_v10, 1 }
 0x239   : > { %v1615_v3 = vpop.permute.xlu0 %1614  ;;  %v2101_v46 = vsel %vm2097_vm15, %v2080_v61, %v6467_v60  ;;  %v4448_v60 = vcombine.low %v1090_v16, %v6484_v25  ;;  %v2012_v25 = vrot.slane %v6507_v31, 1 }
 0x23a   : > { %1311 = vrot.lane.b32.xlu1 %v1292_v57, %s5467_s16  ;;  %v2078_v57 = vsel %vm2076_vm14, %v2057_v23, %v6433_v8  ;;  %v1927_v8 = vrot.slane %v1925_v41, 1 }
 0x23b   : > { %2028 = vrot.lane.b32.xlu0 %v2007_v34, %s5472_s26  ;;  %v2099_v59 = vsel %vm2097_vm15, %v2078_v57, %v1615_v3  ;;  %v1923_v34 = vshrl.u32 %v6492_v0, 16  ;;  %v2008_v17 = vrot.slane %v4448_v60, 1 }
 0x23c   : > { %v6477_v18 = vpop.permute.xlu1 %1696 }
 0x23d   : > { %v1695_v22 = vpop.permute.xlu0 %1694  ;;  %v2122_v19 = vsel %vm2118_vm0, %v2101_v46, %v6477_v18  ;;  %v1928_v1 = vor.u32 %v1927_v8, %v1923_v34 }
 0x23e   : > { %1392 = vrot.lane.b32.xlu1 %v1373_v4, %s5466_s6  ;;  %v2120_v62 = vsel %vm2118_vm0, %v2099_v59, %v1695_v22  ;;  %v1091_v4 = vld [vmem:[#allocation2 + $0x84] sm:$0xe]  ;;  %v1932_v22 = vrot.slane %v1930_v63, 1 }
 0x23f   : > { %1390 = vrot.lane.b32.xlu0 %v1370_v52, %s5466_s6  ;;  %v4449_v20 = vcombine.low %v1091_v4, %v6481_v21 }
 0x240   : > { %v1767_v35 = vpop.permute.xlu1 %1766  ;;  %v1933_v21 = vsel %vm1172_vm10, %v1928_v1, %v1932_v22 }
 0x241   : > { %v1765_v40 = vpop.permute.xlu0 %1764  ;;  %v2143_v7 = vsel %vm2139_vm2, %v2122_v19, %v1767_v35  ;;  %v2011_v35 = vrot.slane %v4449_v20, 1 }
 0x242   : > { %1462 = vrot.lane.b32.xlu1 %v4399_v37, %s5465_s19  ;;  %v1601_v37 = vsel %vm1172_vm10, %v1596_v33, %v1600_v32  ;;  %v2141_v2 = vsel %vm2139_vm2, %v2120_v62, %v1765_v40  ;;  %v1921_v32 = vsel %vm1172_vm10, %v1916_v26, %v1920_v14  ;;  %v2009_v40 = vrot.slane %v5010_v54, 1 }
 0x243   : > { %1460 = vrot.lane.b32.xlu0 %v4398_v51, %s5465_s19 }
 0x244   : > { %v1937_v12 = vpop.permute.xlu1 %1936  ;;  %v2010_v36 = vsel %vm1343_vm9, %v2008_v17, %v2009_v40 }
 0x245   : > { %v1935_v51 = vpop.permute.xlu0 %1934  ;;  %v2164_v30 = vsel %vm2160_vm4, %v2143_v7, %v1937_v12 }
 0x246   : > { %1632 = vrot.lane.b32.xlu1 %v1613_v50, %s5468_s12  ;;  %v2162_v11 = vsel %vm2160_vm4, %v2141_v2, %v1935_v51 }
 0x247   : > { %1630 = vrot.lane.b32.xlu0 %v1601_v37, %s5468_s12 }
 0x248   : > { %v1298_v3 = vpop.permute.xlu1 %1297 }
 0x249   : > { %v2015_v13 = vpop.permute.xlu0 %2014  ;;  %v2040_v12 = vsel %vm2034_vm12, %v6249_v39, %v1298_v3 }
 0x24a   : > { %1712 = vrot.lane.b32.xlu1 %v1693_v45, %s5469_s13  ;;  %v2183_v52 = vsel %vm2181_vm5, %v2162_v11, %v2015_v13 }
 0x24b   : > { %1710 = vrot.lane.b32.xlu0 %v1690_v28, %s5469_s13  ;;  %4675 = vmatprep.mubr.msk.bf16.mxu0 %vm2222_vm6, %v2183_v52 }
 0x24c   : > { %v1300_v6 = vpop.permute.xlu1 %1299 }
 0x24d   : > { %v2017_v24 = vpop.permute.xlu0 %2016  ;;  %v2042_v45 = vsel %vm2034_vm12, %v6260_v55, %v1300_v6 }
 0x24e   : > { %v2185_v18 = vsel %vm2181_vm5, %v2164_v30, %v2017_v24  ;;  %1782 = vrot.lane.b32.xlu1 %v6492_v0, %s5470_s0  ;;  %v2013_v0 = vsel %vm1343_vm9, %v2011_v35, %v2012_v25 }
 0x24f   : > { %1780 = vrot.lane.b32.xlu0 %v6495_v42, %s5470_s0  ;;  %4676 = vmatmul.mubr.msk.bf16.vlgmr.msra.gmra.mrb[0].mxu0 %vm2222_vm6, %v2185_v18 }
 0x250   : > { %v1381_v33 = vpop.permute.xlu1 %1380 }
 0x251   : > { %v1379_v29 = vpop.permute.xlu0 %1378  ;;  %v2063_v28 = vsel %vm2055_vm13, %v2042_v45, %v1381_v33 }
 0x252   : > { %1952 = vrot.lane.b32.xlu1 %v1933_v21, %s5471_s10  ;;  %v2061_v37 = vsel %vm2055_vm13, %v2040_v12, %v1379_v29 }
 0x253   : > { %1950 = vrot.lane.b32.xlu0 %v1921_v32, %s5471_s10 }
 0x254   : > { %v1451_v42 = vpop.permute.xlu1 %1450 }
 0x255   : > { %v1449_v23 = vpop.permute.xlu0 %1448  ;;  %v2084_v39 = vsel %vm2076_vm14, %v2063_v28, %v1451_v42 }
 0x256   : > { %2032 = vrot.lane.b32.xlu1 %v2013_v0, %s5472_s26  ;;  %v2082_v54 = vsel %vm2076_vm14, %v2061_v37, %v1449_v23 }
 0x257   : > { %2030 = vrot.lane.b32.xlu0 %v2010_v36, %s5472_s26 }
 0x258   : > { %v1621_v43 = vpop.permute.xlu1 %1620 }
 0x259   : > { %v1619_v44 = vpop.permute.xlu0 %1618  ;;  %v2105_v63 = vsel %vm2097_vm15, %v2084_v39, %v1621_v43 }
 0x25a   : > { %v2103_v51 = vsel %vm2097_vm15, %v2082_v54, %v1619_v44 }
 0x25c   : > { %v1701_v50 = vpop.permute.xlu1 %1700 }
 0x25d   : > { %v1699_v41 = vpop.permute.xlu0 %1698  ;;  %v2126_v3 = vsel %vm2118_vm0, %v2105_v63, %v1701_v50 }
 0x25e   : > { %v2124_v59 = vsel %vm2118_vm0, %v2103_v51, %v1699_v41 }
 0x260   : > { %v1771_v31 = vpop.permute.xlu1 %1770 }
 0x261   : > { %v1769_v53 = vpop.permute.xlu0 %1768  ;;  %v2147_v55 = vsel %vm2139_vm2, %v2126_v3, %v1771_v31 }
 0x262   : > { %v2145_v34 = vsel %vm2139_vm2, %v2124_v59, %v1769_v53 }
 0x264   : > { %v1941_v49 = vpop.permute.xlu1 %1940 }
 0x265   : > { %v1939_v57 = vpop.permute.xlu0 %1938  ;;  %v2168_v48 = vsel %vm2160_vm4, %v2147_v55, %v1941_v49 }
 0x266   : > { %v2166_v62 = vsel %vm2160_vm4, %v2145_v34, %v1939_v57 }
 0x268   : > { %v1302_v61 = vpop.permute.xlu1 %1301 }
 0x269   : > { %v2019_v8 = vpop.permute.xlu0 %2018  ;;  %v2044_v6 = vsel %vm2034_vm12, %v6305_v15, %v1302_v61 }
 0x26a   : > { %v2187_v2 = vsel %vm2181_vm5, %v2166_v62, %v2019_v8 }
 0x26b   : > { %4679 = vmatprep.mubr.msk.bf16.mxu0 %vm2222_vm6, %v2187_v2 }
 0x26c   : > { %v1304_v4 = vpop.permute.xlu1 %1303 }
 0x26d   : > { %v2021_v47 = vpop.permute.xlu0 %2020  ;;  %v2046_v18 = vsel %vm2034_vm12, %v6315_v27, %v1304_v4  ;;  %v2432_v4 = vld [vmem:[#allocation3] sm:$0x1] }
 0x26e   : > { %v2189_v10 = vsel %vm2181_vm5, %v2168_v48, %v2021_v47 }
 0x26f   : > { %4680 = vmatmul.mubr.msk.bf16.gmra.mrb[4].mxu0 %vm2222_vm6, %v2189_v10  ;;  %v2433_v10 = vsel %vm6605_vm11, 0, %v2432_v4  ;;  %v2475_v4 = vld [vmem:[#allocation3 + $0x38] sm:$0x1] }
 0x270   : > { %v1385_v11 = vpop.permute.xlu1 %1384  ;;  %2434 = vst [vmem:[#allocation3] sm:$0x1] %v2433_v10  ;;  %v2450_v10 = vld [vmem:[#allocation3 + $0x48] sm:$0x1] }
 0x271   : > { %v1383_v13 = vpop.permute.xlu0 %1382  ;;  %v2067_v35 = vsel %vm2055_vm13, %v2046_v18, %v1385_v11 }
 0x272   : > { %v2065_v60 = vsel %vm2055_vm13, %v2044_v6, %v1383_v13  ;;  %v2466_v13 = vld [vmem:[#allocation3 + $0x14] sm:$0x1] }
 0x274   : > { %v1455_v16 = vpop.permute.xlu1 %1454 }
 0x275   : > { %v1453_v46 = vpop.permute.xlu0 %1452  ;;  %v2088_v15 = vsel %vm2076_vm14, %v2067_v35, %v1455_v16 }
 0x276   : > { %v2086_v14 = vsel %vm2076_vm14, %v2065_v60, %v1453_v46 }
 0x278   : > { %v1625_v52 = vpop.permute.xlu1 %1624 }
 0x279   : > { %v1623_v19 = vpop.permute.xlu0 %1622  ;;  %v2109_v40 = vsel %vm2097_vm15, %v2088_v15, %v1625_v52  ;;  %v2467_v52 = vsel %vm6619_vm1, 0, %v2466_v13  ;;  %v2451_v13 = vsel %vm6605_vm11, 0, %v2450_v10 }
 0x27a   : > { %v2107_v24 = vsel %vm2097_vm15, %v2086_v14, %v1623_v19  ;;  %v2463_v19 = vld [vmem:[#allocation3 + $0x8] sm:$0x1]  ;;  %2468 = vst [vmem:[#allocation3 + $0x14] sm:$0x1] %v2467_v52  ;;  %2452 = vst [vmem:[#allocation3 + $0x48] sm:$0x1] %v2451_v13 }
 0x27b   : > { %v2481_v52 = vld [vmem:[#allocation3 + $0x50] sm:$0x1] }
 0x27c   : > { %v1705_v20 = vpop.permute.xlu1 %1704 }
 0x27d   : > { %v1703_v1 = vpop.permute.xlu0 %1702  ;;  %v2130_v0 = vsel %vm2118_vm0, %v2109_v40, %v1705_v20 }
 0x27e   : > { %v2128_v21 = vsel %vm2118_vm0, %v2107_v24, %v1703_v1  ;;  %v2464_v1 = vsel %vm6619_vm1, 0, %v2463_v19  ;;  %v2482_v19 = vsel %vm6619_vm1, 0, %v2481_v52 }
 0x27f   : > { %2465 = vst [vmem:[#allocation3 + $0x8] sm:$0x1] %v2464_v1  ;;  %2483 = vst [vmem:[#allocation3 + $0x50] sm:$0x1] %v2482_v19 }
 0x280   : > { %v1775_v22 = vpop.permute.xlu1 %1774 }
 0x281   : > { %v1773_v7 = vpop.permute.xlu0 %1772  ;;  %v2151_v27 = vsel %vm2139_vm2, %v2130_v0, %v1775_v22 }
 0x282   : > { %v2149_v25 = vsel %vm2139_vm2, %v2128_v21, %v1773_v7 }
 0x284   : > { %v1945_v26 = vpop.permute.xlu1 %1944 }
 0x285   : > { %v1943_v30 = vpop.permute.xlu0 %1942  ;;  %v2172_v36 = vsel %vm2160_vm4, %v2151_v27, %v1945_v26 }
 0x286   : > { %v2170_v32 = vsel %vm2160_vm4, %v2149_v25, %v1943_v30 }
 0x288   : > { %v1306_v33 = vpop.permute.xlu1 %1305 }
 0x289   : > { %v2023_v17 = vpop.permute.xlu0 %2022  ;;  %v2048_v51 = vsel %vm2034_vm12, %v6358_v56, %v1306_v33  ;;  %v2435_v56 = vld [vmem:[#allocation3 + $0xc] sm:$0x1] }
 0x28a   : > { %v2191_v29 = vsel %vm2181_vm5, %v2170_v32, %v2023_v17  ;;  %v2436_v55 = vsel %vm6605_vm11, 0, %v2435_v56 }
 0x28b   : > { %4683 = vmatprep.mubr.msk.bf16.mxu0 %vm2222_vm6, %v2191_v29  ;;  %2437 = vst [vmem:[#allocation3 + $0xc] sm:$0x1] %v2436_v55 }
 0x28c   : > { %v1308_v42 = vpop.permute.xlu1 %1307 }
 0x28d   : > { %v2025_v23 = vpop.permute.xlu0 %2024  ;;  %v2050_v39 = vsel %vm2034_vm12, %v6371_v9, %v1308_v42 }
 0x28e   : > { %v2193_v43 = vsel %vm2181_vm5, %v2172_v36, %v2025_v23 }
 0x28f   : > { %4684 = vmatmul.mubr.msk.bf16.gmra.mrb[8].mxu0 %vm2222_vm6, %v2193_v43 }
 0x290   : > { %v1389_v44 = vpop.permute.xlu1 %1388 }
 0x291   : > { %v1387_v50 = vpop.permute.xlu0 %1386  ;;  %v2071_v63 = vsel %vm2055_vm13, %v2050_v39, %v1389_v44 }
 0x292   : > { %v2069_v45 = vsel %vm2055_vm13, %v2048_v51, %v1387_v50  ;;  %v2763_v11 = vld [vmem:[#allocation3 + $0xc] sm:$0xf] }
 0x294   : > { %v1459_v41 = vpop.permute.xlu1 %1458 }
 0x295   : > { %v1457_v31 = vpop.permute.xlu0 %1456  ;;  %v2092_v9 = vsel %vm2076_vm14, %v2071_v63, %v1459_v41  ;;  %v2441_v41 = vld [vmem:[#allocation3 + $0x24] sm:$0x1]  ;;  %v2444_v63 = vld [vmem:[#allocation3 + $0x30] sm:$0x1] }
 0x296   : > { %v2090_v28 = vsel %vm2076_vm14, %v2069_v45, %v1457_v31 }
 0x298   : > { %v1629_v53 = vpop.permute.xlu1 %1628 }
 0x299   : > { %v1627_v12 = vpop.permute.xlu0 %1626  ;;  %v2113_v16 = vsel %vm2097_vm15, %v2092_v9, %v1629_v53  ;;  %v2476_v9 = vsel %vm6619_vm1, 0, %v2475_v4  ;;  %v2760_v4 = vld [vmem:[#allocation3 + $0x8] sm:$0x1] }
 0x29a   : > { %v2111_v61 = vsel %vm2097_vm15, %v2090_v28, %v1627_v12  ;;  %2477 = vst [vmem:[#allocation3 + $0x38] sm:$0x1] %v2476_v9 }
 0x29c   : > { %v1709_v37 = vpop.permute.xlu1 %1708 }
 0x29d   : > { %v1707_v49 = vpop.permute.xlu0 %1706  ;;  %v2134_v20 = vsel %vm2118_vm0, %v2113_v16, %v1709_v37  ;;  %v2442_v37 = vsel %vm6605_vm11, 0, %v2441_v41  ;;  %v2484_v16 = vld [vmem:[#allocation3 + $0x5c] sm:$0x1] }
 0x29e   : > { %v2132_v62 = vsel %vm2118_vm0, %v2111_v61, %v1707_v49  ;;  %v2438_v49 = vld [vmem:[#allocation3 + $0x18] sm:$0x1]  ;;  %2443 = vst [vmem:[#allocation3 + $0x24] sm:$0x1] %v2442_v37  ;;  %v2469_v61 = vld [vmem:[#allocation3 + $0x20] sm:$0x1] }
 0x29f   : > { %v2439_v45 = vsel %vm6605_vm11, 0, %v2438_v49  ;;  %v2470_v39 = vsel %vm6619_vm1, 0, %v2469_v61 }
 0x2a0   : > { %v1779_v54 = vpop.permute.xlu1 %1778  ;;  %2440 = vst [vmem:[#allocation3 + $0x18] sm:$0x1] %v2439_v45  ;;  %2471 = vst [vmem:[#allocation3 + $0x20] sm:$0x1] %v2470_v39  ;;  %v2767_v39 = vld [vmem:[#allocation3 + $0x14] sm:$0x1] }
 0x2a1   : > { %v1777_v57 = vpop.permute.xlu0 %1776  ;;  %v2155_v22 = vsel %vm2139_vm2, %v2134_v20, %v1779_v54  ;;  %v6679_v20 = vld [vmem:[#allocation12] ss:$0 sm:$0xff] }
 0x2a2   : > { %v2153_v2 = vsel %vm2139_vm2, %v2132_v62, %v1777_v57  ;;  %v2447_v62 = vld [vmem:[#allocation3 + $0x3c] sm:$0x1] }
 0x2a3   : > { %v2448_v56 = vsel %vm6605_vm11, 0, %v2447_v62 }
 0x2a4   : > { %v1949_v59 = vpop.permute.xlu1 %1948  ;;  %2449 = vst [vmem:[#allocation3 + $0x3c] sm:$0x1] %v2448_v56 }
 0x2a5   : > { %v1947_v34 = vpop.permute.xlu0 %1946  ;;  %v2176_v6 = vsel %vm2160_vm4, %v2155_v22, %v1949_v59  ;;  %v2472_v59 = vld [vmem:[#allocation3 + $0x2c] sm:$0x1]  ;;  %v6681_v22 = vld [vmem:[#allocation12 + $0x1] ss:$0 sm:$0xff] }
 0x2a6   : > { %v2174_v48 = vsel %vm2160_vm4, %v2153_v2, %v1947_v34  ;;  %v2473_v34 = vsel %vm6619_vm1, 0, %v2472_v59  ;;  %v2445_v2 = vsel %vm6605_vm11, 0, %v2444_v63  ;;  %v2755_v59 = vld [vmem:[#allocation3] sm:$0xf] }
 0x2a7   : > { %2474 = vst [vmem:[#allocation3 + $0x2c] sm:$0x1] %v2473_v34  ;;  %2446 = vst [vmem:[#allocation3 + $0x30] sm:$0x1] %v2445_v2 }
 0x2a8   : > { %v1310_v3 = vpop.permute.xlu1 %1309 }
 0x2a9   : > { %v2027_v47 = vpop.permute.xlu0 %2026  ;;  %v2052_v40 = vsel %vm2034_vm12, %v6414_v38, %v1310_v3  ;;  %v2478_v3 = vld [vmem:[#allocation3 + $0x44] sm:$0x1] }
 0x2aa   : > { %v2195_v46 = vsel %vm2181_vm5, %v2174_v48, %v2027_v47  ;;  %v2479_v55 = vsel %vm6619_vm1, 0, %v2478_v3  ;;  %v2453_v48 = vld [vmem:[#allocation3 + $0x54] sm:$0x1] }
 0x2ab   : > { %4687 = vmatprep.mubr.msk.bf16.mxu0 %vm2222_vm6, %v2195_v46  ;;  %2480 = vst [vmem:[#allocation3 + $0x44] sm:$0x1] %v2479_v55  ;;  %v2454_v47 = vsel %vm6605_vm11, 0, %v2453_v48  ;;  %v2485_v46 = vsel %vm6619_vm1, 0, %v2484_v16 }
 0x2ac   : > { %v1312_v7 = vpop.permute.xlu1 %1311  ;;  %2455 = vst [vmem:[#allocation3 + $0x54] sm:$0x1] %v2454_v47  ;;  %2486 = vst [vmem:[#allocation3 + $0x5c] sm:$0x1] %v2485_v46 }
 0x2ad   : > { %v2029_v60 = vpop.permute.xlu0 %2028  ;;  %v2054_v17 = vsel %vm2034_vm12, %v6427_v58, %v1312_v7  ;;  %vm2753_vm12 = vcmask 60416  }
 0x2ae   : > { %v2197_v26 = vsel %vm2181_vm5, %v2176_v6, %v2029_v60 }
 0x2af   : > { %4688 = vmatmul.mubr.msk.bf16.gmra.mrb[12].mxu0 %vm2222_vm6, %v2197_v26 }
 0x2b0   : > { %v1393_v14 = vpop.permute.xlu1 %1392 }
 0x2b1   : > { %v1391_v30 = vpop.permute.xlu0 %1390  ;;  %v2075_v29 = vsel %vm2055_vm13, %v2054_v17, %v1393_v14  ;;  %v2459_v14 = vld [vmem:[#allocation3 + $0x6c] sm:$0x1] }
 0x2b2   : > { %v2073_v0 = vsel %vm2055_vm13, %v2052_v40, %v1391_v30 }
 0x2b4   : > { %v1463_v24 = vpop.permute.xlu1 %1462 }
 0x2b5   : > { %v1461_v18 = vpop.permute.xlu0 %1460  ;;  %v2096_v27 = vsel %vm2076_vm14, %v2075_v29, %v1463_v24 }
 0x2b6   : > { %v2094_v36 = vsel %vm2076_vm14, %v2073_v0, %v1461_v18  ;;  %v2487_v0 = vld [vmem:[#allocation3 + $0x68] sm:$0x1]  ;;  %vm6701_vm14 = vmand %vm2753_vm12, %vm533_vm3 }
 0x2b8   : > { %v1633_v21 = vpop.permute.xlu1 %1632 }
 0x2b9   : > { %v1631_v35 = vpop.permute.xlu0 %1630  ;;  %v2117_v23 = vsel %vm2097_vm15, %v2096_v27, %v1633_v21  ;;  %v2460_v21 = vsel %vm6605_vm11, 0, %v2459_v14 }
 0x2ba   : > { %v2115_v44 = vsel %vm2097_vm15, %v2094_v36, %v1631_v35  ;;  %v2456_v35 = vld [vmem:[#allocation3 + $0x60] sm:$0x1]  ;;  %2461 = vst [vmem:[#allocation3 + $0x6c] sm:$0x1] %v2460_v21  ;;  %v2488_v36 = vsel %vm6619_vm1, 0, %v2487_v0 }
 0x2bb   : > { %2489 = vst [vmem:[#allocation3 + $0x68] sm:$0x1] %v2488_v36 }
 0x2bc   : > { %v1713_v25 = vpop.permute.xlu1 %1712 }
 0x2bd   : > { %v1711_v33 = vpop.permute.xlu0 %1710  ;;  %v2138_v50 = vsel %vm2118_vm0, %v2117_v23, %v1713_v25 }
 0x2be   : > { %v2136_v58 = vsel %vm2118_vm0, %v2115_v44, %v1711_v33 }
 0x2c0   : > { %v1783_v15 = vpop.permute.xlu1 %1782 }
 0x2c1   : > { %v1781_v32 = vpop.permute.xlu0 %1780  ;;  %v2159_v38 = vsel %vm2139_vm2, %v2138_v50, %v1783_v15  ;;  %v2457_v15 = vsel %vm6605_vm11, 0, %v2456_v35 }
 0x2c2   : > { %v2157_v31 = vsel %vm2139_vm2, %v2136_v58, %v1781_v32  ;;  %v2490_v32 = vld [vmem:[#allocation3 + $0x74] sm:$0x1]  ;;  %2458 = vst [vmem:[#allocation3 + $0x60] sm:$0x1] %v2457_v15 }
 0x2c3   : > { %v2491_v29 = vsel %vm6619_vm1, 0, %v2490_v32 }
 0x2c4   : > { %v1953_v42 = vpop.permute.xlu1 %1952  ;;  %2492 = vst [vmem:[#allocation3 + $0x74] sm:$0x1] %v2491_v29 }
 0x2c5   : > { %v1951_v43 = vpop.permute.xlu0 %1950  ;;  %v2180_v53 = vsel %vm2160_vm4, %v2159_v38, %v1953_v42 }
 0x2c6   : > { %v2178_v54 = vsel %vm2160_vm4, %v2157_v31, %v1951_v43 }
 0x2c8   : > { %v2033_v12 = vpop.permute.xlu1 %2032 }
 0x2c9   : > { %v2201_v57 = vsel %vm2181_vm5, %v2180_v53, %v2033_v12  ;;  %v2031_v51 = vpop.permute.xlu0 %2030 }
 0x2ca   : > { %v2199_v28 = vsel %vm2181_vm5, %v2178_v54, %v2031_v51 }
 0x2cb   : > { %4691 = vmatprep.mubr.msk.bf16.mxu0 %vm2222_vm6, %v2199_v28 }
 0x2cc   : > { %4692 = vmatmul.mubr.msk.bf16.gmra.mrb[16].mxu0 %vm2222_vm6, %v2201_v57 }
 0x322   : > { %v4677_v1 = vpop.f32.mrb[0].mxu0 }
 0x323   : > { %v2367_v7 = vmul.f32 %v4677_v1, %v6679_v20  ;;  %v2281_v6 = vpop.f32.mrb[1].mxu0 }
 0x324   : > { %v2365_v60 = vmul.f32 %v6679_v20, %v2281_v6  ;;  %v4678_v26 = vpop.f32.mrb[2].mxu0 }
 0x325   : > { %v2392_v30 = vadd.f32 %v6681_v22, %v2367_v7  ;;  %v2368_v24 = vmul.f32 %v4678_v26, %v6679_v20  ;;  %v2284_v18 = vpop.f32.mrb[3].mxu0 }
 0x326   : > { %v2390_v25 = vadd.f32 %v6681_v22, %v2365_v60  ;;  %v2366_v33 = vmul.f32 %v6679_v20, %v2284_v18 }
 0x327   : > { %v2412_v17 = vmax.f32 %v2392_v30, 0.0  ;;  %v2393_v40 = vadd.f32 %v6681_v22, %v2368_v24 }
 0x328   : > { %v2410_v27 = vmax.f32 %v2390_v25, 0.0  ;;  %v2391_v42 = vadd.f32 %v6681_v22, %v2366_v33 }
 0x329   : > { %v4608_v23 = vpack.c.bf16 %v2412_v17, %v2412_v17  ;;  %v2413_v43 = vmax.f32 %v2393_v40, 0.0 }
 0x32a   : > { %v4606_v44 = vpack.c.bf16 %v2410_v27, %v2410_v27  ;;  %v2411_v50 = vmax.f32 %v2391_v42, 0.0 }
 0x32b   : > { %v2571_v58 = vshrl.u32 %v4608_v23, 16  ;;  %v4609_v38 = vpack.c.bf16 %v2413_v43, %v2413_v43  ;;  %v2574_v12 = vshll.u32 %v4608_v23, 16 }
 0x32c   : > { %v2554_v41 = vshrl.u32 %v4606_v44, 16  ;;  %v4607_v31 = vpack.c.bf16 %v2411_v50, %v2411_v50  ;;  %v2557_v57 = vshll.u32 %v4606_v44, 16  ;;  %v2777_v44 = vld [vmem:[#allocation3 + $0x24] sm:$0xf] }
 0x32d   : > { %v2573_v53 = vrot.slane %v2571_v58, 7  ;;  %v2579_v37 = vshrl.u32 %v4609_v38, 16  ;;  %v2582_v34 = vshll.u32 %v4609_v38, 16 }
 0x32e   : > { %v2556_v54 = vrot.slane %v2554_v41, 7  ;;  %v2562_v51 = vshrl.u32 %v4607_v31, 16  ;;  %v2565_v56 = vshll.u32 %v4607_v31, 16  ;;  %v2770_v31 = vld [vmem:[#allocation3 + $0x18] sm:$0xf] }
 0x32f   : > { %v2576_v45 = vor.u32 %v2574_v12, %v2573_v53  ;;  %v2581_v28 = vrot.slane %v2579_v37, 7  ;;  %v2577_v63 = vrot.slane %v2573_v53, 4 }
 0x330   : > { %v2559_v61 = vor.u32 %v2557_v57, %v2556_v54  ;;  %v2564_v62 = vrot.slane %v2562_v51, 7  ;;  %v2560_v9 = vrot.slane %v2556_v54, 4 }
 0x331   : > { %v2764_v2 = vsel %vm6701_vm14, %v2576_v45, %v2763_v11  ;;  %v2584_v3 = vor.u32 %v2582_v34, %v2581_v28  ;;  %v2586_v55 = vrot.slane %v2581_v28, 4  ;;  %v2781_v11 = vld [vmem:[#allocation3 + $0x2c] sm:$0x1]  ;;  %v2774_v34 = vld [vmem:[#allocation3 + $0x20] sm:$0x1] }
 0x332   : > { %2765 = vst [vmem:[#allocation3 + $0xc] sm:$0xf] %v2764_v2  ;;  %v2756_v48 = vsel %vm6701_vm14, %v2559_v61, %v2755_v59  ;;  %v2567_v47 = vor.u32 %v2565_v56, %v2564_v62  ;;  %v2569_v10 = vrot.slane %v2564_v62, 4 }
 0x333   : > { %2757 = vst [vmem:[#allocation3] sm:$0xf] %v2756_v48  ;;  %v2585_v13 = vsel %vm6070_vm8, %v2577_v63, %v2584_v3  ;;  %v2768_v16 = vsel %vm6605_vm11, %v2586_v55, %v2767_v39 }
 0x334   : > { %2766 = vst.msk [vmem:[#allocation3 + $0x10] sm:$0xf] %vm2753_vm12, %v2585_v13  ;;  %2769 = vst [vmem:[#allocation3 + $0x14] sm:$0x1] %v2768_v16  ;;  %v2568_v46 = vsel %vm6070_vm8, %v2560_v9, %v2567_v47  ;;  %v2761_v52 = vsel %vm6605_vm11, %v2569_v10, %v2760_v4 }
 0x335   : > { %2759 = vst.msk [vmem:[#allocation3 + $0x4] sm:$0xf] %vm2753_vm12, %v2568_v46  ;;  %2762 = vst [vmem:[#allocation3 + $0x8] sm:$0x1] %v2761_v52 }
 0x342   : > { %v4681_v19 = vpop.f32.mrb[4].mxu0 }
 0x343   : > { %v2371_v1 = vmul.f32 %v4681_v19, %v6679_v20  ;;  %v2297_v7 = vpop.f32.mrb[5].mxu0 }
 0x344   : > { %v2369_v6 = vmul.f32 %v6679_v20, %v2297_v7  ;;  %v4682_v60 = vpop.f32.mrb[6].mxu0 }
 0x345   : > { %v2396_v26 = vadd.f32 %v6681_v22, %v2371_v1  ;;  %v2372_v14 = vmul.f32 %v4682_v60, %v6679_v20  ;;  %v2300_v30 = vpop.f32.mrb[7].mxu0 }
 0x346   : > { %v2394_v24 = vadd.f32 %v6681_v22, %v2369_v6  ;;  %v2370_v18 = vmul.f32 %v6679_v20, %v2300_v30 }
 0x347   : > { %v2416_v21 = vmax.f32 %v2396_v26, 0.0  ;;  %v2397_v35 = vadd.f32 %v6681_v22, %v2372_v14 }
 0x348   : > { %v2414_v25 = vmax.f32 %v2394_v24, 0.0  ;;  %v2395_v33 = vadd.f32 %v6681_v22, %v2370_v18 }
 0x349   : > { %v4612_v15 = vpack.c.bf16 %v2416_v21, %v2416_v21  ;;  %v2417_v32 = vmax.f32 %v2397_v35, 0.0 }
 0x34a   : > { %v4610_v17 = vpack.c.bf16 %v2414_v25, %v2414_v25  ;;  %v2415_v40 = vmax.f32 %v2395_v33, 0.0 }
 0x34b   : > { %v2605_v29 = vshrl.u32 %v4612_v15, 16  ;;  %v4613_v0 = vpack.c.bf16 %v2417_v32, %v2417_v32  ;;  %v2608_v23 = vshll.u32 %v4612_v15, 16 }
 0x34c   : > { %v2588_v27 = vshrl.u32 %v4610_v17, 16  ;;  %v4611_v42 = vpack.c.bf16 %v2415_v40, %v2415_v40  ;;  %v2591_v58 = vshll.u32 %v4610_v17, 16  ;;  %v2791_v17 = vld [vmem:[#allocation3 + $0x3c] sm:$0xf] }
 0x34d   : > { %v2607_v36 = vrot.slane %v2605_v29, 7  ;;  %v2613_v43 = vshrl.u32 %v4613_v0, 16  ;;  %v2616_v12 = vshll.u32 %v4613_v0, 16 }
 0x34e   : > { %v2590_v50 = vrot.slane %v2588_v27, 7  ;;  %v2596_v38 = vshrl.u32 %v4611_v42, 16  ;;  %v2599_v57 = vshll.u32 %v4611_v42, 16  ;;  %v2784_v42 = vld [vmem:[#allocation3 + $0x30] sm:$0xf] }
 0x34f   : > { %v2610_v41 = vor.u32 %v2608_v23, %v2607_v36  ;;  %v2615_v53 = vrot.slane %v2613_v43, 7  ;;  %v2611_v51 = vrot.slane %v2607_v36, 4 }
 0x350   : > { %v2593_v37 = vor.u32 %v2591_v58, %v2590_v50  ;;  %v2598_v54 = vrot.slane %v2596_v38, 7  ;;  %v2594_v61 = vrot.slane %v2590_v50, 4 }
 0x351   : > { %v2778_v45 = vsel %vm6701_vm14, %v2610_v41, %v2777_v44  ;;  %v2618_v59 = vor.u32 %v2616_v12, %v2615_v53  ;;  %v2620_v28 = vrot.slane %v2615_v53, 4  ;;  %v2795_v44 = vld [vmem:[#allocation3 + $0x44] sm:$0x1]  ;;  %v2788_v12 = vld [vmem:[#allocation3 + $0x38] sm:$0x1] }
 0x352   : > { %2779 = vst [vmem:[#allocation3 + $0x24] sm:$0xf] %v2778_v45  ;;  %v2771_v39 = vsel %vm6701_vm14, %v2593_v37, %v2770_v31  ;;  %v2601_v62 = vor.u32 %v2599_v57, %v2598_v54  ;;  %v2603_v56 = vrot.slane %v2598_v54, 4 }
 0x353   : > { %2772 = vst [vmem:[#allocation3 + $0x18] sm:$0xf] %v2771_v39  ;;  %v2619_v63 = vsel %vm6070_vm8, %v2611_v51, %v2618_v59  ;;  %v2782_v2 = vsel %vm6605_vm11, %v2620_v28, %v2781_v11 }
 0x354   : > { %2780 = vst.msk [vmem:[#allocation3 + $0x28] sm:$0xf] %vm2753_vm12, %v2619_v63  ;;  %2783 = vst [vmem:[#allocation3 + $0x2c] sm:$0x1] %v2782_v2  ;;  %v2602_v3 = vsel %vm6070_vm8, %v2594_v61, %v2601_v62  ;;  %v2775_v55 = vsel %vm6605_vm11, %v2603_v56, %v2774_v34 }
 0x355   : > { %2773 = vst.msk [vmem:[#allocation3 + $0x1c] sm:$0xf] %vm2753_vm12, %v2602_v3  ;;  %2776 = vst [vmem:[#allocation3 + $0x20] sm:$0x1] %v2775_v55 }
 0x362   : > { %v4685_v4 = vpop.f32.mrb[8].mxu0 }
 0x363   : > { %v2375_v9 = vmul.f32 %v4685_v4, %v6679_v20  ;;  %v2313_v48 = vpop.f32.mrb[9].mxu0 }
 0x364   : > { %v2373_v47 = vmul.f32 %v6679_v20, %v2313_v48  ;;  %v4686_v10 = vpop.f32.mrb[10].mxu0 }
 0x365   : > { %v2400_v13 = vadd.f32 %v6681_v22, %v2375_v9  ;;  %v2376_v16 = vmul.f32 %v4686_v10, %v6679_v20  ;;  %v2316_v46 = vpop.f32.mrb[11].mxu0 }
 0x366   : > { %v2398_v52 = vadd.f32 %v6681_v22, %v2373_v47  ;;  %v2374_v19 = vmul.f32 %v6679_v20, %v2316_v46 }
 0x367   : > { %v2420_v1 = vmax.f32 %v2400_v13, 0.0  ;;  %v2401_v7 = vadd.f32 %v6681_v22, %v2376_v16 }
 0x368   : > { %v2418_v6 = vmax.f32 %v2398_v52, 0.0  ;;  %v2399_v60 = vadd.f32 %v6681_v22, %v2374_v19 }
 0x369   : > { %v4616_v26 = vpack.c.bf16 %v2420_v1, %v2420_v1  ;;  %v2421_v14 = vmax.f32 %v2401_v7, 0.0 }
 0x36a   : > { %v4614_v30 = vpack.c.bf16 %v2418_v6, %v2418_v6  ;;  %v2419_v24 = vmax.f32 %v2399_v60, 0.0 }
 0x36b   : > { %v2639_v18 = vshrl.u32 %v4616_v26, 16  ;;  %v4617_v21 = vpack.c.bf16 %v2421_v14, %v2421_v14  ;;  %v2642_v15 = vshll.u32 %v4616_v26, 16 }
 0x36c   : > { %v2622_v35 = vshrl.u32 %v4614_v30, 16  ;;  %v4615_v25 = vpack.c.bf16 %v2419_v24, %v2419_v24  ;;  %v2625_v29 = vshll.u32 %v4614_v30, 16  ;;  %v2805_v30 = vld [vmem:[#allocation3 + $0x54] sm:$0xf] }
 0x36d   : > { %v2641_v33 = vrot.slane %v2639_v18, 7  ;;  %v2647_v32 = vshrl.u32 %v4617_v21, 16  ;;  %v2650_v23 = vshll.u32 %v4617_v21, 16 }
 0x36e   : > { %v2624_v40 = vrot.slane %v2622_v35, 7  ;;  %v2630_v0 = vshrl.u32 %v4615_v25, 16  ;;  %v2633_v58 = vshll.u32 %v4615_v25, 16  ;;  %v2798_v25 = vld [vmem:[#allocation3 + $0x48] sm:$0xf] }
 0x36f   : > { %v2644_v27 = vor.u32 %v2642_v15, %v2641_v33  ;;  %v2649_v36 = vrot.slane %v2647_v32, 7  ;;  %v2645_v38 = vrot.slane %v2641_v33, 4 }
 0x370   : > { %v2627_v43 = vor.u32 %v2625_v29, %v2624_v40  ;;  %v2632_v50 = vrot.slane %v2630_v0, 7  ;;  %v2628_v37 = vrot.slane %v2624_v40, 4 }
 0x371   : > { %v2792_v41 = vsel %vm6701_vm14, %v2644_v27, %v2791_v17  ;;  %v2652_v31 = vor.u32 %v2650_v23, %v2649_v36  ;;  %v2654_v53 = vrot.slane %v2649_v36, 4  ;;  %v2809_v17 = vld [vmem:[#allocation3 + $0x5c] sm:$0x1]  ;;  %v2802_v23 = vld [vmem:[#allocation3 + $0x50] sm:$0x1] }
 0x372   : > { %2793 = vst [vmem:[#allocation3 + $0x3c] sm:$0xf] %v2792_v41  ;;  %v2785_v11 = vsel %vm6701_vm14, %v2627_v43, %v2784_v42  ;;  %v2635_v54 = vor.u32 %v2633_v58, %v2632_v50  ;;  %v2637_v57 = vrot.slane %v2632_v50, 4 }
 0x373   : > { %2786 = vst [vmem:[#allocation3 + $0x30] sm:$0xf] %v2785_v11  ;;  %v2653_v51 = vsel %vm6070_vm8, %v2645_v38, %v2652_v31  ;;  %v2796_v45 = vsel %vm6605_vm11, %v2654_v53, %v2795_v44 }
 0x374   : > { %2794 = vst.msk [vmem:[#allocation3 + $0x40] sm:$0xf] %vm2753_vm12, %v2653_v51  ;;  %2797 = vst [vmem:[#allocation3 + $0x44] sm:$0x1] %v2796_v45  ;;  %v2636_v59 = vsel %vm6070_vm8, %v2628_v37, %v2635_v54  ;;  %v2789_v28 = vsel %vm6605_vm11, %v2637_v57, %v2788_v12 }
 0x375   : > { %2787 = vst.msk [vmem:[#allocation3 + $0x34] sm:$0xf] %vm2753_vm12, %v2636_v59  ;;  %2790 = vst [vmem:[#allocation3 + $0x38] sm:$0x1] %v2789_v28 }
 0x382   : > { %v4689_v34 = vpop.f32.mrb[12].mxu0 }
 0x383   : > { %v2379_v61 = vmul.f32 %v4689_v34, %v6679_v20  ;;  %v2329_v39 = vpop.f32.mrb[13].mxu0 }
 0x384   : > { %v2377_v62 = vmul.f32 %v6679_v20, %v2329_v39  ;;  %v4690_v56 = vpop.f32.mrb[14].mxu0 }
 0x385   : > { %v2404_v63 = vadd.f32 %v6681_v22, %v2379_v61  ;;  %v2380_v2 = vmul.f32 %v4690_v56, %v6679_v20  ;;  %v2332_v3 = vpop.f32.mrb[15].mxu0 }
 0x386   : > { %v2402_v55 = vadd.f32 %v6681_v22, %v2377_v62  ;;  %v2378_v4 = vmul.f32 %v6679_v20, %v2332_v3 }
 0x387   : > { %v2424_v9 = vmax.f32 %v2404_v63, 0.0  ;;  %v2405_v48 = vadd.f32 %v6681_v22, %v2380_v2 }
 0x388   : > { %v2422_v47 = vmax.f32 %v2402_v55, 0.0  ;;  %v2403_v10 = vadd.f32 %v6681_v22, %v2378_v4 }
 0x389   : > { %v4620_v13 = vpack.c.bf16 %v2424_v9, %v2424_v9  ;;  %v2425_v16 = vmax.f32 %v2405_v48, 0.0 }
 0x38a   : > { %v4618_v46 = vpack.c.bf16 %v2422_v47, %v2422_v47  ;;  %v2423_v52 = vmax.f32 %v2403_v10, 0.0 }
 0x38b   : > { %v2673_v19 = vshrl.u32 %v4620_v13, 16  ;;  %v4621_v1 = vpack.c.bf16 %v2425_v16, %v2425_v16  ;;  %v2676_v26 = vshll.u32 %v4620_v13, 16 }
 0x38c   : > { %v2656_v7 = vshrl.u32 %v4618_v46, 16  ;;  %v4619_v6 = vpack.c.bf16 %v2423_v52, %v2423_v52  ;;  %v2659_v18 = vshll.u32 %v4618_v46, 16  ;;  %v2819_v46 = vld [vmem:[#allocation3 + $0x6c] sm:$0xf] }
 0x38d   : > { %v2675_v60 = vrot.slane %v2673_v19, 7  ;;  %v2681_v14 = vshrl.u32 %v4621_v1, 16  ;;  %v2684_v15 = vshll.u32 %v4621_v1, 16 }
 0x38e   : > { %v2658_v24 = vrot.slane %v2656_v7, 7  ;;  %v2664_v21 = vshrl.u32 %v4619_v6, 16  ;;  %v2667_v29 = vshll.u32 %v4619_v6, 16  ;;  %v2812_v7 = vld [vmem:[#allocation3 + $0x60] sm:$0xf] }
 0x38f   : > { %v2678_v35 = vor.u32 %v2676_v26, %v2675_v60  ;;  %v2683_v33 = vrot.slane %v2681_v14, 7  ;;  %v2679_v0 = vrot.slane %v2675_v60, 4  ;;  %v2823_v26 = vld [vmem:[#allocation3 + $0x74] sm:$0x1] }
 0x390   : > { %v2661_v32 = vor.u32 %v2659_v18, %v2658_v24  ;;  %v2666_v40 = vrot.slane %v2664_v21, 7  ;;  %v2662_v43 = vrot.slane %v2658_v24, 4 }
 0x391   : > { %v2806_v27 = vsel %vm6701_vm14, %v2678_v35, %v2805_v30  ;;  %v2686_v42 = vor.u32 %v2684_v15, %v2683_v33  ;;  %v2688_v36 = vrot.slane %v2683_v33, 4 }
 0x392   : > { %2807 = vst [vmem:[#allocation3 + $0x54] sm:$0xf] %v2806_v27  ;;  %v2799_v44 = vsel %vm6701_vm14, %v2661_v32, %v2798_v25  ;;  %v2669_v50 = vor.u32 %v2667_v29, %v2666_v40  ;;  %v2671_v58 = vrot.slane %v2666_v40, 4  ;;  %v2816_v25 = vld [vmem:[#allocation3 + $0x68] sm:$0x1] }
 0x393   : > { %2800 = vst [vmem:[#allocation3 + $0x48] sm:$0xf] %v2799_v44  ;;  %v2687_v38 = vsel %vm6070_vm8, %v2679_v0, %v2686_v42  ;;  %v2810_v41 = vsel %vm6605_vm11, %v2688_v36, %v2809_v17  ;;  %v2829_v42 = vld [vmem:[#allocation3] sm:$0xf] (!%p4357_p6)  ;;  %v2833_v36 = vld [vmem:[#allocation3 + $0x8] sm:$0x1] (!%p4357_p6) }
 0x394   : > { %2808 = vst.msk [vmem:[#allocation3 + $0x58] sm:$0xf] %vm2753_vm12, %v2687_v38  ;;  %2811 = vst [vmem:[#allocation3 + $0x5c] sm:$0x1] %v2810_v41  ;;  %v2670_v31 = vsel %vm6070_vm8, %v2662_v43, %v2669_v50  ;;  %v2803_v53 = vsel %vm6605_vm11, %v2671_v58, %v2802_v23  ;;  %v2830_v23 = vsel (!%p4357_p6), %vm6701_vm14, 0, %v2829_v42  ;;  %v5473_v43 = vmov (!%p4357_p6), 0  }
 0x395   : > { %2801 = vst.msk [vmem:[#allocation3 + $0x4c] sm:$0xf] %vm2753_vm12, %v2670_v31  ;;  %2804 = vst [vmem:[#allocation3 + $0x50] sm:$0x1] %v2803_v53  ;;  %v2834_v5 = vsel (!%p4357_p6), %vm6605_vm11, 0, %v2833_v36 }
 0x396   : > { %2832 = vst.msk [vmem:[#allocation3 + $0x4] sm:$0xf] (!%p4357_p6), %vm2753_vm12, %v5473_v43  ;;  %2831 = vst [vmem:[#allocation3] sm:$0xf] (!%p4357_p6), %v2830_v23 }
 0x397   : > { %2835 = vst [vmem:[#allocation3 + $0x8] sm:$0x1] (!%p4357_p6), %v2834_v5 }
 0x39f   : > { %v4693_v12 = vpop.f32.mrb[16].mxu0 }
 0x3a0   : > { %v2383_v37 = vmul.f32 %v4693_v12, %v6679_v20  ;;  %v2345_v11 = vpop.f32.mrb[17].mxu0 }
 0x3a1   : > { %v2381_v54 = vmul.f32 %v6679_v20, %v2345_v11  ;;  %v4694_v57 = vpop.f32.mrb[18].mxu0 }
 0x3a2   : > { %v2408_v51 = vadd.f32 %v6681_v22, %v2383_v37  ;;  %v2384_v45 = vmul.f32 %v4694_v57, %v6679_v20  ;;  %v2348_v59 = vpop.f32.mrb[19].mxu0 }
 0x3a3   : > { %v2406_v28 = vadd.f32 %v6681_v22, %v2381_v54  ;;  %v2382_v34 = vmul.f32 %v6679_v20, %v2348_v59 }
 0x3a4   : > { %v2428_v61 = vmax.f32 %v2408_v51, 0.0  ;;  %v2409_v39 = vadd.f32 %v6681_v22, %v2384_v45 }
 0x3a5   : > { %v2426_v62 = vmax.f32 %v2406_v28, 0.0  ;;  %v2407_v56 = vadd.f32 %v6681_v22, %v2382_v34 }
 0x3a6   : > { %v4624_v63 = vpack.c.bf16 %v2428_v61, %v2428_v61  ;;  %v2429_v2 = vmax.f32 %v2409_v39, 0.0 }
 0x3a7   : > { %v4622_v3 = vpack.c.bf16 %v2426_v62, %v2426_v62  ;;  %v2427_v55 = vmax.f32 %v2407_v56, 0.0 }
 0x3a8   : > { %v2707_v4 = vshrl.u32 %v4624_v63, 16  ;;  %v4625_v9 = vpack.c.bf16 %v2429_v2, %v2429_v2  ;;  %v2710_v13 = vshll.u32 %v4624_v63, 16 }
 0x3a9   : > { %v2690_v48 = vshrl.u32 %v4622_v3, 16  ;;  %v4623_v47 = vpack.c.bf16 %v2427_v55, %v2427_v55  ;;  %v2693_v20 = vshll.u32 %v4622_v3, 16 }
 0x3aa   : > { %v2709_v10 = vrot.slane %v2707_v4, 7  ;;  %v2715_v16 = vshrl.u32 %v4625_v9, 16  ;;  %v2718_v60 = vshll.u32 %v4625_v9, 16 }
 0x3ab   : > { %v2692_v52 = vrot.slane %v2690_v48, 7  ;;  %v2698_v19 = vshrl.u32 %v4623_v47, 16  ;;  %v2701_v30 = vshll.u32 %v4623_v47, 16 }
 0x3ac   : > { %v2712_v1 = vor.u32 %v2710_v13, %v2709_v10  ;;  %v2717_v6 = vrot.slane %v2715_v16, 7  ;;  %v2713_v24 = vrot.slane %v2709_v10, 4  ;;  %2828 = sbr.rel (%p4357_p6) target bundleno = 947 (0x3b3), region = 96 }
 0x3ad   : > { %v2695_v22 = vor.u32 %v2693_v20, %v2692_v52  ;;  %v2700_v14 = vrot.slane %v2698_v19, 7  ;;  %v2696_v33 = vrot.slane %v2692_v52, 4 }
 0x3ae   : > { %v2820_v18 = vsel %vm6701_vm14, %v2712_v1, %v2819_v46  ;;  %v2720_v21 = vor.u32 %v2718_v60, %v2717_v6  ;;  %v2722_v35 = vrot.slane %v2717_v6, 4 }
 0x3af   : > { %2821 = vst [vmem:[#allocation3 + $0x6c] sm:$0xf] %v2820_v18  ;;  %v2813_v15 = vsel %vm6701_vm14, %v2695_v22, %v2812_v7  ;;  %v2703_v32 = vor.u32 %v2701_v30, %v2700_v14  ;;  %v2705_v17 = vrot.slane %v2700_v14, 4 }
 0x3b0   : > { %2814 = vst [vmem:[#allocation3 + $0x60] sm:$0xf] %v2813_v15  ;;  %v2721_v40 = vsel %vm6070_vm8, %v2713_v24, %v2720_v21  ;;  %v2824_v29 = vsel %vm6605_vm11, %v2722_v35, %v2823_v26 }
 0x3b1   : > { %2822 = vst.msk [vmem:[#allocation3 + $0x70] sm:$0xf] %vm2753_vm12, %v2721_v40  ;;  %2825 = vst [vmem:[#allocation3 + $0x74] sm:$0x1] %v2824_v29  ;;  %v2704_v0 = vsel %vm6070_vm8, %v2696_v33, %v2703_v32  ;;  %v2817_v27 = vsel %vm6605_vm11, %v2705_v17, %v2816_v25 }
 0x3b2   : > { %2815 = vst.msk [vmem:[#allocation3 + $0x64] sm:$0xf] %vm2753_vm12, %v2704_v0  ;;  %2818 = vst [vmem:[#allocation3 + $0x68] sm:$0x1] %v2817_v27 }
 0x3b3 PF: > { %2838 = sbr.rel (%p4359_p0) target bundleno = 955 (0x3bb), region = 100  ;;  %v5474_v38 = vmov (!%p4359_p0), 0  }
 0x3b4   : > { %2843 = vst.msk [vmem:[#allocation3 + $0x70] sm:$0xf] (!%p4359_p0), %vm2753_vm12, %v5474_v38 }
 0x3b6   : > { %v2840_v44 = vld [vmem:[#allocation3 + $0x6c] sm:$0xf] (!%p4359_p0) }
 0x3b7   : > { %v2841_v58 = vsel (!%p4359_p0), %vm6701_vm14, 0, %v2840_v44 }
 0x3b8   : > { %v2844_v50 = vld [vmem:[#allocation3 + $0x74] sm:$0x1] (!%p4359_p0)  ;;  %2842 = vst [vmem:[#allocation3 + $0x6c] sm:$0xf] (!%p4359_p0), %v2841_v58 }
 0x3b9   : > { %v2845_v41 = vsel (!%p4359_p0), %vm6605_vm11, 0, %v2844_v50 }
 0x3ba   : > { %2846 = vst [vmem:[#allocation3 + $0x74] sm:$0x1] %v2845_v41 }
 0x3bb PF: > { %v2880_v31 = vld [vmem:[#allocation3 + $0xc] sm:$0xf]  ;;  %v6821_v53 = vld [vmem:[#allocation3 + $0x10] sm:$0xf]  ;;  %v2848_v12 = vld [vmem:[#allocation3 + $0x4] sm:$0xf] }
 0x3bc   : > { %v4511_v37 = vcombine.low %v2880_v31, %v6821_v53  ;;  %v2871_v11 = vld [vmem:[#allocation3] sm:$0xe]  ;;  %v5012_v57 = vld [vmem:[#allocation3 + $0x8] ss:$0 sps:$4 sm:$0x11]   ;;  %v5083_v41 = vld [vmem:[#allocation13] sm:$0xff]  }
 0x3bd   : > { %v2847_v54 = vld [vmem:[#allocation3] sm:$0xf]  ;;  %v4503_v49 = vcombine.low %v2871_v11, %v2848_v12  ;;  %v2849_v45 = vld [vmem:[#allocation3 + $0xc] sm:$0xf]  ;;  %v2850_v8 = vld [vmem:[#allocation3 + $0x10] sm:$0xf]  ;;  %4695 = vmatprep.subr.bf16.mxu1 %v5083_v41 }
 0x3be   : > { %v6824_v51 = vcombine.low %v2847_v54, %v2848_v12  ;;  %3225 = vrot.lane.b32.xlu0 %v4511_v37, %s5470_s0  ;;  %v2872_v59 = vld [vmem:[#allocation3 + $0xc] sm:$0xe]  ;;  %v3146_v34 = vrot.slane %v5012_v57, 1  ;;  %v6827_v61 = vcombine.low %v2849_v45, %v2850_v8  ;;  %v5016_v39 = vld [vmem:[#allocation3 + $0x14] ss:$0 sps:$4 sm:$0x11]   ;;  %4696 = vmatpush3.bf16.msra.mxu1 %v5083_v41 }
 0x3bf   : > { %v3145_v28 = vrot.slane %v4503_v49, 1  ;;  %v4504_v62 = vcombine.low %v2872_v59, %v2850_v8  ;;  %v3017_v2 = vshll.u32 %v5012_v57, 16  ;;  %v2882_v3 = vld [vmem:[#allocation3 + $0x18] sm:$0xf]  ;;  %v3149_v9 = vrot.slane %v5016_v39, 1  ;;  %s5475_s3 = smov 40  }
 0x3c0   : > { %v3010_v56 = vshrl.u32 %v6824_v51, 16  ;;  %v3012_v63 = vshll.u32 %v6824_v51, 16  ;;  %v2883_v48 = vld [vmem:[#allocation3 + $0x1c] sm:$0xf]  ;;  %v3022_v47 = vshrl.u32 %v6827_v61, 16  ;;  %v3024_v46 = vshll.u32 %v6827_v61, 16 }
 0x3c1   : > { %v3147_v55 = vsel %vm1343_vm9, %v3145_v28, %v3146_v34  ;;  %v3148_v4 = vrot.slane %v4504_v62, 1  ;;  %v3019_v13 = vrot.slane %v3017_v2, 1  ;;  %v4512_v16 = vcombine.low %v2882_v3, %v2883_v48  ;;  %v5019_v19 = vld [vmem:[#allocation3 + $0x20] ss:$0 sps:$4 sm:$0x11]   ;;  %v5084_v49 = vld [vmem:[#allocation13 + $0x8] sm:$0xff]  }
 0x3c2   : > { %3169 = vrot.lane.b32.xlu1 %v3147_v55, %s5468_s12  ;;  %v3014_v10 = vrot.slane %v3012_v63, 1  ;;  %v3029_v20 = vshll.u32 %v5016_v39, 16  ;;  %v3026_v7 = vrot.slane %v3024_v46, 1  ;;  %v5020_v22 = vld [vmem:[#allocation3 + $0x14] ss:$0 sps:$4 sm:$0x11]   ;;  %4697 = vmatprep.subr.bf16.mxu1 %v5084_v49 }
 0x3c3   : > { %v3150_v52 = vsel %vm1343_vm9, %v3148_v4, %v3149_v9  ;;  %v3278_v6 = vshrl.u32 %v4512_v16, 16  ;;  %v3280_v60 = vshll.u32 %v4512_v16, 16  ;;  %v3285_v14 = vshll.u32 %v5019_v19, 16  ;;  %v2905_v18 = vld [vmem:[#allocation3 + $0x18] sm:$0xe]  ;;  %v5085_v3 = vld [vmem:[#allocation13 + $0x10] sm:$0xff]   ;;  %4698 = vmatpush3.bf16.msra.mxu1 %v5084_v49 }
 0x3c4   : > { %v3015_v1 = vor.u32 %v3014_v10, %v3010_v56  ;;  %v3031_v26 = vrot.slane %v3029_v20, 1  ;;  %v3266_v30 = vshrl.u32 %v4511_v37, 16  ;;  %v3268_v24 = vshll.u32 %v4511_v37, 16  ;;  %v2904_v15 = vld [vmem:[#allocation3 + $0xc] sm:$0xe]  ;;  %4699 = vmatprep.subr.bf16.mxu1 %v5085_v3  ;;  %s5476_s5 = smov 48  }
 0x3c5   : > { %v3027_v35 = vor.u32 %v3026_v7, %v3022_v47  ;;  %v3282_v25 = vrot.slane %v3280_v60, 1  ;;  %v3273_v33 = vshll.u32 %v5020_v22, 16  ;;  %v2915_v32 = vld [vmem:[#allocation3 + $0x24] sm:$0xf]  ;;  %v3287_v17 = vrot.slane %v3285_v14, 1  ;;  %s5477_s28 = smov 56  }
 0x3c6   : > { %3171 = vrot.lane.b32.xlu1 %v3150_v52, %s5468_s12  ;;  %v3020_v21 = vsel %vm1172_vm10, %v3015_v1, %v3019_v13  ;;  %v3270_v40 = vrot.slane %v3268_v24, 1  ;;  %v4528_v29 = vcombine.low %v2905_v18, %v2883_v48  ;;  %v6839_v0 = vld [vmem:[#allocation3 + $0x28] sm:$0xf]  ;;  %v2913_v27 = vld [vmem:[#allocation3 + $0x18] sm:$0xf]  ;;  %v4527_v43 = vcombine.low %v2904_v15, %v6821_v53  ;;  %s5478_s24 = smov 64  }
 0x3c7   : > { %3105 = vrot.lane.b32.xlu0 %v3020_v21, %s5466_s6  ;;  %v3032_v42 = vsel %vm1172_vm10, %v3027_v35, %v3031_v26  ;;  %v3283_v36 = vor.u32 %v3282_v25, %v3278_v6  ;;  %v3275_v23 = vrot.slane %v3273_v33, 1  ;;  %v6843_v5 = vld [vmem:[#allocation3 + $0x1c] sm:$0xf]  ;;  %v3405_v50 = vrot.slane %v5019_v19, 1  ;;  %v2851_v54 = vld [vmem:[#allocation3 + $0x18] sm:$0xf]  ;;  %4700 = vmatpush3.bf16.msra.mxu1 %v5085_v3 }
 0x3c8   : > { %v3271_v44 = vor.u32 %v3270_v40, %v3266_v30  ;;  %v4536_v58 = vcombine.low %v2915_v32, %v6839_v0  ;;  %v6846_v38 = vld [vmem:[#allocation3 + $0x2c] ss:$0 sps:$4 sm:$0x11]   ;;  %v3402_v31 = vrot.slane %v5020_v22, 1  ;;  %v4535_v12 = vcombine.low %v2913_v27, %v6843_v5  ;;  %v6854_v57 = vld [vmem:[#allocation3 + $0x1c] sm:$0xf] }
 0x3c9   : > { %v6850_v37 = vld [vmem:[#allocation3 + $0x20] ss:$0 sps:$4 sm:$0x11]   ;;  %v3288_v53 = vsel %vm1172_vm10, %v3283_v36, %v3287_v17  ;;  %v3404_v11 = vrot.slane %v4528_v29, 1  ;;  %v3401_v8 = vrot.slane %v4527_v43, 1  ;;  %v6858_v34 = vcombine.low %v2851_v54, %v6854_v57  ;;  %v5086_v20 = vld [vmem:[#allocation13 + $0x18] sm:$0xff]  }
 0x3ca   : > { %3227 = vrot.lane.b32.xlu1 %v4512_v16, %s5470_s0  ;;  %v3276_v45 = vsel %vm1172_vm10, %v3271_v44, %v3275_v23  ;;  %v3536_v59 = vshll.u32 %v4536_v58, 16  ;;  %v3524_v28 = vshll.u32 %v4535_v12, 16  ;;  %v6860_v39 = vld [vmem:[#allocation3 + $0x20] ss:$0 sps:$4 sm:$0x11]   ;;  %v3534_v62 = vshrl.u32 %v4536_v58, 16  ;;  %4701 = vmatprep.subr.bf16.mxu1 %v5086_v20 }
 0x3cb   : > { %3107 = vrot.lane.b32.xlu0 %v3032_v42, %s5466_s6  ;;  %v3541_v63 = vshll.u32 %v6846_v38, 16  ;;  %v2853_v2 = vld [vmem:[#allocation3 + $0x24] sm:$0xf]  ;;  %v3406_v55 = vsel %vm1343_vm9, %v3404_v11, %v3405_v50  ;;  %v3036_v4 = vshll.u32 %v6858_v34, 16  ;;  %v2854_v9 = vld [vmem:[#allocation3 + $0x28] sm:$0xf]  ;;  %v3403_v48 = vsel %vm1343_vm9, %v3401_v8, %v3402_v31  ;;  %4702 = vmatpush3.bf16.msra.mxu1 %v5086_v20 }
 0x3cc   : > { %v3538_v56 = vrot.slane %v3536_v59, 1  ;;  %v3522_v47 = vshrl.u32 %v4535_v12, 16  ;;  %v3526_v10 = vrot.slane %v3524_v28, 1  ;;  %v3529_v13 = vshll.u32 %v6850_v37, 16  ;;  %v2937_v46 = vld [vmem:[#allocation3 + $0x18] sm:$0xe] }
 0x3cd   : > { %v3041_v16 = vshll.u32 %v6860_v39, 16  ;;  %v6870_v52 = vcombine.low %v2853_v2, %v2854_v9  ;;  %v3543_v1 = vrot.slane %v3541_v63, 1  ;;  %v3034_v7 = vshrl.u32 %v6858_v34, 16  ;;  %v5031_v60 = vld [vmem:[#allocation3 + $0x2c] ss:$0 sps:$4 sm:$0x11]  }
 0x3ce   : > { %3363 = vrot.lane.b32.xlu1 %v3288_v53, %s5472_s26  ;;  %v3539_v19 = vor.u32 %v3538_v56, %v3534_v62  ;;  %v3038_v6 = vrot.slane %v3036_v4, 1  ;;  %v3527_v26 = vor.u32 %v3526_v10, %v3522_v47  ;;  %v3531_v14 = vrot.slane %v3529_v13, 1  ;;  %v2938_v18 = vld [vmem:[#allocation3 + $0x24] sm:$0xe]  ;;  %v2873_v17 = vld [vmem:[#allocation3 + $0x18] sm:$0xe] }
 0x3cf   : > { %3361 = vrot.lane.b32.xlu0 %v3276_v45, %s5472_s26  ;;  %v3048_v22 = vshll.u32 %v6870_v52, 16  ;;  %v4551_v30 = vcombine.low %v2937_v46, %v6843_v5  ;;  %v3043_v24 = vrot.slane %v3041_v16, 1  ;;  %v2874_v35 = vld [vmem:[#allocation3 + $0x24] sm:$0xe]  ;;  %v3046_v33 = vshrl.u32 %v6870_v52, 16  ;;  %s7418_s4 = sld [smem:[#allocation27_spill]] }
 0x3d0   : > { %v3544_v21 = vsel %vm1172_vm10, %v3539_v19, %v3543_v1  ;;  %v3039_v25 = vor.u32 %v3038_v6, %v3034_v7  ;;  %v3053_v32 = vshll.u32 %v5031_v60, 16  ;;  %v3532_v40 = vsel %vm1172_vm10, %v3527_v26, %v3531_v14  ;;  %v2886_v36 = vld [vmem:[#allocation3 + $0x30] sm:$0xf]  ;;  %v2887_v23 = vld [vmem:[#allocation3 + $0x34] sm:$0xf]  ;;  %s7419_s25 = sld [smem:[#allocation28_spill]] }
 0x3d1   : > { %v3050_v15 = vrot.slane %v3048_v22, 1  ;;  %v3657_v29 = vrot.slane %v4551_v30, 1  ;;  %v3658_v27 = vrot.slane %v6850_v37, 1  ;;  %v4552_v42 = vcombine.low %v2938_v18, %v6839_v0  ;;  %v2884_v43 = vld [vmem:[#allocation3 + $0x24] sm:$0xf]  ;;  %s7420_s10 = sld [smem:[#allocation44_spill]] }
 0x3d2   : > { %3427 = vrot.lane.b32.xlu1 %v3406_v55, %s5475_s3  ;;  %v6884_v5 = vld [vmem:[#allocation3 + $0x28] sm:$0xf]  ;;  %v4506_v44 = vcombine.low %v2874_v35, %v2854_v9  ;;  %v4505_v50 = vcombine.low %v2873_v17, %v6854_v57  ;;  %v3055_v31 = vrot.slane %v3053_v32, 1  ;;  %v3661_v53 = vrot.slane %v6846_v38, 1  ;;  %v2907_v2 = vld [vmem:[#allocation3 + $0x30] sm:$0xe] }
 0x3d3   : > { %3425 = vrot.lane.b32.xlu0 %v3403_v48, %s5475_s3  ;;  %v3051_v41 = vor.u32 %v3050_v15, %v3046_v33  ;;  %v3659_v0 = vsel %vm1343_vm9, %v3657_v29, %v3658_v27  ;;  %v3660_v37 = vrot.slane %v4552_v42, 1  ;;  %v4513_v11 = vcombine.low %v2884_v43, %v6884_v5  ;;  %v5037_v59 = vld [vmem:[#allocation3 + $0x38] ss:$0 sps:$4 sm:$0x11]   ;;  %v2919_v48 = vld [vmem:[#allocation3 + $0x3c] sm:$0xf] }
 0x3d4   : > { %v3154_v54 = vrot.slane %v4506_v44, 1  ;;  %v3155_v49 = vrot.slane %v5031_v60, 1  ;;  %v3151_v45 = vrot.slane %v4505_v50, 1  ;;  %v3152_v8 = vrot.slane %v6860_v39, 1  ;;  %v6902_v13 = vld [vmem:[#allocation3 + $0x40] sm:$0xf] }
 0x3d5   : > { %v3056_v57 = vsel %vm1172_vm10, %v3051_v41, %v3055_v31  ;;  %v3662_v62 = vsel %vm1343_vm9, %v3660_v37, %v3661_v53  ;;  %v5038_v56 = vld [vmem:[#allocation3 + $0x2c] ss:$0 sps:$4 sm:$0x11]   ;;  %v3292_v38 = vshll.u32 %v4513_v11, 16  ;;  %v3309_v4 = vshll.u32 %v5037_v59, 16  ;;  %s4642_s11 = sshll.u32 %s7418_s4, 4 }
 0x3d6   : > { %3483 = vrot.lane.b32.xlu1 %v4536_v58, %s5476_s5  ;;  %v3044_v58 = vsel %vm1172_vm10, %v3039_v25, %v3043_v24  ;;  %v3156_v63 = vsel %vm1343_vm9, %v3154_v54, %v3155_v49  ;;  %v3290_v9 = vshrl.u32 %v4513_v11, 16  ;;  %v3153_v39 = vsel %vm1343_vm9, %v3151_v45, %v3152_v8  ;;  %v2906_v16 = vld [vmem:[#allocation3 + $0x24] sm:$0xe]  ;;  %v2917_v46 = vld [vmem:[#allocation3 + $0x30] sm:$0xf]  ;;  %s4593_s18 = sshll.u32 %s7419_s25, 5 }
 0x3d7   : > { %3481 = vrot.lane.b32.xlu0 %v4535_v12, %s5476_s5  ;;  %v4514_v12 = vcombine.low %v2886_v36, %v2887_v23  ;;  %v3294_v47 = vrot.slane %v3292_v38, 1  ;;  %v3297_v10 = vshll.u32 %v5038_v56, 16  ;;  %v2918_v20 = vld [vmem:[#allocation3 + $0x34] sm:$0xf]  ;;  %v4530_v19 = vcombine.low %v2907_v2, %v2887_v23  ;;  %v2855_v30 = vld [vmem:[#allocation3 + $0x30] sm:$0xf]  ;;  %s4135_s19 = sadd.s32 %s4642_s11, %s4593_s18  ;;  %s7421_s21 = smov %s7420_s10 }
 0x3d8   : > { %v3311_v7 = vrot.slane %v3309_v4, 1  ;;  %v4538_v6 = vcombine.low %v2919_v48, %v6902_v13  ;;  %v4529_v26 = vcombine.low %v2906_v16, %v6884_v5  ;;  %v4537_v14 = vcombine.low %v2917_v46, %v2918_v20  ;;  %v6908_v24 = vld [vmem:[#allocation3 + $0x34] sm:$0xf]  ;;  %v6911_v35 = vld [vmem:[#allocation3 + $0x44] ss:$0 sps:$4 sm:$0x11]  }
 0x3d9   : > { %v3304_v28 = vshll.u32 %v4514_v12, 16  ;;  %v3302_v3 = vshrl.u32 %v4514_v12, 16  ;;  %v3295_v60 = vor.u32 %v3294_v47, %v3290_v9  ;;  %v3299_v22 = vrot.slane %v3297_v10, 1  ;;  %v5044_v32 = vld [vmem:[#allocation3 + $0x38] ss:$0 sps:$4 sm:$0x11]  }
 0x3da   : > { %3619 = vrot.lane.b32.xlu1 %v3544_v21, %s5477_s28  ;;  %v3411_v18 = vrot.slane %v5037_v59, 1  ;;  %v3410_v21 = vrot.slane %v4530_v19, 1  ;;  %v3408_v33 = vrot.slane %v5038_v56, 1  ;;  %v3560_v15 = vshll.u32 %v4538_v6, 16  ;;  %v2857_v42 = vld [vmem:[#allocation3 + $0x3c] sm:$0xf] }
 0x3db   : > { %3617 = vrot.lane.b32.xlu0 %v3532_v40, %s5477_s28  ;;  %v3306_v55 = vrot.slane %v3304_v28, 1  ;;  %v6916_v17 = vcombine.low %v2855_v30, %v6908_v24  ;;  %v3300_v40 = vsel %vm1172_vm10, %v3295_v60, %v3299_v22  ;;  %v3407_v29 = vrot.slane %v4529_v26, 1  ;;  %v2858_v36 = vld [vmem:[#allocation3 + $0x40] sm:$0xf]  ;;  %v2939_v41 = vld [vmem:[#allocation3 + $0x30] sm:$0xe] }
 0x3dc   : > { %v3548_v27 = vshll.u32 %v4537_v14, 16  ;;  %v3412_v23 = vsel %vm1343_vm9, %v3410_v21, %v3411_v18  ;;  %v3565_v43 = vshll.u32 %v6911_v35, 16  ;;  %v6922_v5 = vld [vmem:[#allocation3 + $0x38] ss:$0 sps:$4 sm:$0x11]   ;;  %v3558_v44 = vshrl.u32 %v4538_v6, 16 }
 0x3dd   : > { %v3307_v1 = vor.u32 %v3306_v55, %v3302_v3  ;;  %v3562_v50 = vrot.slane %v3560_v15, 1  ;;  %v6926_v31 = vcombine.low %v2857_v42, %v2858_v36  ;;  %v3553_v53 = vshll.u32 %v5044_v32, 16  ;;  %v5049_v59 = vld [vmem:[#allocation3 + $0x44] ss:$0 sps:$4 sm:$0x11]   ;;  %s4122_s23 = scalar_lea.sflag [#allocation6], %s5963_s7 }
 0x3de   : > { %3109 = vrot.lane.b32.xlu1 %v3044_v58, %s5466_s6  ;;  %v3060_v58 = vshll.u32 %v6916_v17, 16  ;;  %v3550_v37 = vrot.slane %v3548_v27, 1  ;;  %v3065_v54 = vshll.u32 %v6922_v5, 16  ;;  %v4553_v49 = vcombine.low %v2939_v41, %v2918_v20  ;;  %v2940_v38 = vld [vmem:[#allocation3 + $0x3c] sm:$0xe]  ;;  %p7422_p3 = scmp.ne.s32.totalorder %s7368_s2, 0 }
 0x3df   : > { %3681 = vrot.lane.b32.xlu0 %v3659_v0, %s5478_s24  ;;  %v3312_v25 = vsel %vm1172_vm10, %v3307_v1, %v3311_v7  ;;  %v3546_v0 = vshrl.u32 %v4537_v14, 16  ;;  %v3058_v45 = vshrl.u32 %v6916_v17, 16  ;;  %v3072_v28 = vshll.u32 %v6926_v31, 16  ;;  %v2876_v4 = vld [vmem:[#allocation3 + $0x3c] sm:$0xe] }
 0x3e0   : > { %v3062_v8 = vrot.slane %v3060_v58, 1  ;;  %v3555_v56 = vrot.slane %v3553_v53, 1  ;;  %v3663_v2 = vrot.slane %v4553_v49, 1  ;;  %v3664_v3 = vrot.slane %v5044_v32, 1  ;;  %v2890_v10 = vld [vmem:[#allocation3 + $0x48] sm:$0xf] }
 0x3e1   : > { %v3070_v55 = vshrl.u32 %v6926_v31, 16  ;;  %v3077_v47 = vshll.u32 %v5049_v59, 16  ;;  %v2891_v16 = vld [vmem:[#allocation3 + $0x4c] sm:$0xf]  ;;  %v4554_v20 = vcombine.low %v2940_v38, %v6902_v13  ;;  %v2888_v19 = vld [vmem:[#allocation3 + $0x3c] sm:$0xf] }
 0x3e2   : > { %3111 = vrot.lane.b32.xlu1 %v3056_v57, %s5466_s6  ;;  %v3563_v57 = vor.u32 %v3562_v50, %v3558_v44  ;;  %v3063_v48 = vor.u32 %v3062_v8, %v3058_v45  ;;  %v2889_v1 = vld [vmem:[#allocation3 + $0x40] sm:$0xf]  ;;  %v2875_v7 = vld [vmem:[#allocation3 + $0x30] sm:$0xe]  ;;  %v4516_v60 = vcombine.low %v2890_v10, %v2891_v16  ;;  %v3665_v18 = vsel %vm1343_vm9, %v3663_v2, %v3664_v3  ;;  %v6963_v45 = vld [vmem:[#allocation3 + $0x4c] sm:$0xf] }
 0x3e3   : > { %3683 = vrot.lane.b32.xlu0 %v3662_v62, %s5478_s24  ;;  %v3551_v62 = vor.u32 %v3550_v37, %v3546_v0  ;;  %v4515_v30 = vcombine.low %v2888_v19, %v2889_v1  ;;  %v3666_v21 = vrot.slane %v4554_v20, 1  ;;  %v4507_v13 = vcombine.low %v2875_v7, %v6908_v24  ;;  %v6951_v27 = vld [vmem:[#allocation3 + $0x44] ss:$0 sps:$4 sm:$0x11]   ;;  %v2909_v24 = vld [vmem:[#allocation3 + $0x48] sm:$0xe] }
 0x3e4   : > { %v3161_v32 = vrot.slane %v5049_v59, 1  ;;  %v3326_v44 = vshrl.u32 %v4516_v60, 16  ;;  %v2923_v0 = vld [vmem:[#allocation3 + $0x54] sm:$0xf]  ;;  %v6958_v37 = vld [vmem:[#allocation3 + $0x58] sm:$0xf] }
 0x3e5   : > { %v3556_v46 = vsel %vm1172_vm10, %v3551_v62, %v3555_v56  ;;  %v3316_v42 = vshll.u32 %v4515_v30, 16  ;;  %v4540_v8 = vcombine.low %v2923_v0, %v6958_v37  ;;  %v3414_v56 = vrot.slane %v6951_v27, 1  ;;  %v2861_v10 = vld [vmem:[#allocation3 + $0x54] sm:$0xf]  ;;  %v5087_v7 = vld [vmem:[#allocation13 + $0x20] ss:$0 sps:$4 sm:$0xff]  }
 0x3e6   : > { %3175 = vrot.lane.b32.xlu1 %v3156_v63, %s5468_s12  ;;  %v3067_v63 = vrot.slane %v3065_v54, 1  ;;  %vm3882_vm3 = vcmask 1043456   ;;  %vm3761_vm8 = vcmask 326656   ;;  %vm3812_vm0 = vcmask 523264  }
 0x3e7   : > { %3173 = vrot.lane.b32.xlu0 %v3153_v39, %s5468_s12  ;;  %v3074_v39 = vrot.slane %v3072_v28, 1  ;;  %v3318_v53 = vrot.slane %v3316_v42, 1  ;;  %4722 = vmatprep.subr.msk.bf16.mxu1 %vm3882_vm3, %v5087_v7  ;;  %vm3865_vm4 = vcmask 588800  }
 0x3e8   : > { %v3068_v22 = vsel %vm1172_vm10, %v3063_v48, %v3067_v63  ;;  %v6973_v48 = vld [vmem:[#allocation3 + $0x5c] ss:$0 sps:$4 sm:$0x11]  }
 0x3e9   : > { %v3075_v26 = vor.u32 %v3074_v39, %v3070_v55  ;;  %v3584_v39 = vshll.u32 %v4540_v8, 16 }
 0x3ea   : > { %3231 = vrot.lane.b32.xlu1 %v4514_v12, %s5470_s0  ;;  %v3409_v12 = vsel %vm1343_vm9, %v3407_v29, %v3408_v33  ;;  %v6946_v33 = vld [vmem:[#allocation3 + $0x50] ss:$0 sps:$4 sm:$0x11]  }
 0x3eb   : > { %3229 = vrot.lane.b32.xlu0 %v4513_v11, %s5470_s0  ;;  %v3567_v11 = vrot.slane %v3565_v43, 1  ;;  %v2908_v43 = vld [vmem:[#allocation3 + $0x3c] sm:$0xe]  ;;  %v3333_v50 = vshll.u32 %v6946_v33, 16  ;;  %v3417_v62 = vrot.slane %v6946_v33, 1 }
 0x3ec   : > { %v4531_v54 = vcombine.low %v2908_v43, %v2889_v1 }
 0x3ed   : > { %v3568_v9 = vsel %vm1172_vm10, %v3563_v57, %v3567_v11  ;;  %v3321_v11 = vshll.u32 %v6951_v27, 16  ;;  %v2921_v57 = vld [vmem:[#allocation3 + $0x48] sm:$0xf]  ;;  %v3335_v28 = vrot.slane %v3333_v50, 1  ;;  %v2942_v50 = vld [vmem:[#allocation3 + $0x54] sm:$0xe] }
 0x3ee   : > { %3367 = vrot.lane.b32.xlu1 %v3312_v25, %s5472_s26  ;;  %v3667_v25 = vrot.slane %v6911_v35, 1  ;;  %v3158_v35 = vrot.slane %v6922_v5, 1  ;;  %v4532_v5 = vcombine.low %v2909_v24, %v2891_v16  ;;  %v3413_v2 = vrot.slane %v4531_v54, 1  ;;  %v6978_v16 = vld [vmem:[#allocation3 + $0x58] sm:$0xf] }
 0x3ef   : > { %3365 = vrot.lane.b32.xlu0 %v3300_v40, %s5472_s26  ;;  %v3328_v40 = vshll.u32 %v4516_v60, 16  ;;  %v3323_v38 = vrot.slane %v3321_v11, 1  ;;  %v4539_v3 = vcombine.low %v2921_v57, %v6963_v45 }
 0x3f0   : > { %v3416_v63 = vrot.slane %v4532_v5, 1  ;;  %v2878_v5 = vld [vmem:[#allocation3 + $0x54] sm:$0xe] }
 0x3f1   : > { %v3330_v41 = vrot.slane %v3328_v40, 1  ;;  %v3572_v20 = vshll.u32 %v4539_v3, 16 }
 0x3f2   : > { %3431 = vrot.lane.b32.xlu1 %v3412_v23, %s5475_s3  ;;  %v3157_v23 = vrot.slane %v4507_v13, 1  ;;  %v3570_v13 = vshrl.u32 %v4539_v3, 16 }
 0x3f3   : > { %3429 = vrot.lane.b32.xlu0 %v3409_v12, %s5475_s3  ;;  %v3314_v12 = vshrl.u32 %v4515_v30, 16  ;;  %v3331_v59 = vor.u32 %v3330_v41, %v3326_v44  ;;  %v3574_v33 = vrot.slane %v3572_v20, 1 }
 0x3f4   : > { %v3159_v49 = vsel %vm1343_vm9, %v3157_v23, %v3158_v35  ;;  %v5067_v23 = vld [vmem:[#allocation3 + $0x5c] ss:$0 sps:$4 sm:$0x11]  }
 0x3f5   : > { %v3319_v55 = vor.u32 %v3318_v53, %v3314_v12  ;;  %v3575_v24 = vor.u32 %v3574_v33, %v3570_v13  ;;  %v3101_v11 = vshll.u32 %v5067_v23, 16  ;;  %v3167_v20 = vrot.slane %v5067_v23, 1  ;;  %v2911_v33 = vld [vmem:[#allocation3 + $0x60] sm:$0xe] }
 0x3f6   : > { %3487 = vrot.lane.b32.xlu1 %v4538_v6, %s5476_s5  ;;  %v4508_v6 = vcombine.low %v2876_v4, %v2858_v36  ;;  %v3668_v36 = vsel %vm1343_vm9, %v3666_v21, %v3667_v25  ;;  %v2859_v4 = vld [vmem:[#allocation3 + $0x48] sm:$0xf]  ;;  %v3884_v21 = vsel %vm3882_vm3, %v5087_v7, 0  ;;  %v3415_v25 = vsel %vm1343_vm9, %v3413_v2, %v3414_v56  ;;  %v2893_v56 = vld [vmem:[#allocation3 + $0x58] sm:$0xf] }
 0x3f7   : > { %3485 = vrot.lane.b32.xlu0 %v4537_v14, %s5476_s5  ;;  %v3079_v14 = vrot.slane %v3077_v47, 1  ;;  %v6976_v47 = vld [vmem:[#allocation3 + $0x50] ss:$0 sps:$4 sm:$0x11]   ;;  %v3324_v1 = vsel %vm1172_vm10, %v3319_v55, %v3323_v38  ;;  %4704 = vmatpush3.bf16.msra.mxu1 %v3884_v21  ;;  %v3673_v38 = vrot.slane %v6973_v48, 1  ;;  %v3103_v55 = vrot.slane %v3101_v11, 1 }
 0x3f8   : > { %v3160_v15 = vrot.slane %v4508_v6, 1  ;;  %v3582_v6 = vshrl.u32 %v4540_v8, 16  ;;  %v3670_v57 = vrot.slane %v6976_v47, 1  ;;  %v5079_v11 = vld [vmem:[#allocation3 + $0x74] ss:$0 sps:$4 sm:$0x11]  }
 0x3f9   : > { %v3080_v29 = vsel %vm1172_vm10, %v3075_v26, %v3079_v14  ;;  %v6988_v26 = vld [vmem:[#allocation3 + $0x50] ss:$0 sps:$4 sm:$0x11]   ;;  %v3418_v14 = vsel %vm1343_vm9, %v3416_v63, %v3417_v62  ;;  %v2892_v62 = vld [vmem:[#allocation3 + $0x54] sm:$0xf]  ;;  %v4510_v63 = vcombine.low %v2878_v5, %v6978_v16 }
 0x3fa   : > { %3623 = vrot.lane.b32.xlu1 %v3568_v9, %s5477_s28  ;;  %v3162_v58 = vsel %vm1343_vm9, %v3160_v15, %v3161_v32  ;;  %v6971_v9 = vld [vmem:[#allocation3 + $0x4c] sm:$0xf]  ;;  %v3577_v15 = vshll.u32 %v6976_v47, 16  ;;  %v2941_v32 = vld [vmem:[#allocation3 + $0x48] sm:$0xe]  ;;  %v3089_v27 = vshll.u32 %v6988_v26, 16 }
 0x3fb   : > { %3621 = vrot.lane.b32.xlu0 %v3556_v46, %s5477_s28  ;;  %v3336_v46 = vsel %vm1172_vm10, %v3331_v59, %v3335_v28  ;;  %v6983_v19 = vcombine.low %v2859_v4, %v6971_v9  ;;  %v4555_v44 = vcombine.low %v2941_v32, %v6963_v45  ;;  %v4556_v45 = vcombine.low %v2942_v50, %v6958_v37  ;;  %v2894_v59 = vld [vmem:[#allocation3 + $0x60] sm:$0xf]  ;;  %v2877_v28 = vld [vmem:[#allocation3 + $0x48] sm:$0xe] }
 0x3fc   : > { %v3579_v43 = vrot.slane %v3577_v15, 1  ;;  %v3091_v41 = vrot.slane %v3089_v27, 1  ;;  %v4509_v47 = vcombine.low %v2877_v28, %v6971_v9  ;;  %v2928_v27 = vld [vmem:[#allocation3 + $0x70] sm:$0xf] }
 0x3fd   : > { %v3082_v42 = vshrl.u32 %v6983_v19, 16 }
 0x3fe   : > { %3113 = vrot.lane.b32.xlu1 %v3068_v22, %s5466_s6  ;;  %v3589_v22 = vshll.u32 %v6973_v48, 16  ;;  %v3580_v54 = vsel %vm1172_vm10, %v3575_v24, %v3579_v43 }
 0x3ff   : > { %3685 = vrot.lane.b32.xlu0 %v3665_v18, %s5478_s24  ;;  %v6994_v18 = vcombine.low %v2861_v10, %v6978_v16  ;;  %v4517_v10 = vcombine.low %v2892_v62, %v2893_v56  ;;  %v5073_v16 = vld [vmem:[#allocation3 + $0x68] ss:$0 sps:$4 sm:$0x11]  }
 0x401   : > { %v3096_v35 = vshll.u32 %v6994_v18, 16  ;;  %v3094_v0 = vshrl.u32 %v6994_v18, 16  ;;  %v3338_v13 = vshrl.u32 %v4517_v10, 16 }
 0x402   : > { %3115 = vrot.lane.b32.xlu1 %v3080_v29, %s5466_s6  ;;  %v3591_v29 = vrot.slane %v3589_v22, 1  ;;  %v5074_v22 = vld [vmem:[#allocation3 + $0x5c] ss:$0 sps:$4 sm:$0x11]  }
 0x403   : > { %3687 = vrot.lane.b32.xlu0 %v3668_v36, %s5478_s24  ;;  %v3098_v53 = vrot.slane %v3096_v35, 1 }
 0x406   : > { %3179 = vrot.lane.b32.xlu1 %v3162_v58, %s5468_s12 }
 0x407   : > { %3177 = vrot.lane.b32.xlu0 %v3159_v49, %s5468_s12  ;;  %v3669_v49 = vrot.slane %v4555_v44, 1 }
 0x409   : > { %v3671_v37 = vsel %vm1343_vm9, %v3669_v49, %v3670_v57  ;;  %v3420_v57 = vrot.slane %v5074_v22, 1 }
 0x40a   : > { %3235 = vrot.lane.b32.xlu1 %v4516_v60, %s5470_s0  ;;  %v3586_v60 = vrot.slane %v3584_v39, 1  ;;  %v3672_v39 = vrot.slane %v4556_v45, 1  ;;  %v5080_v45 = vld [vmem:[#allocation3 + $0x68] ss:$0 sps:$4 sm:$0x11]  }
 0x40b   : > { %3233 = vrot.lane.b32.xlu0 %v4515_v30, %s5470_s0  ;;  %v3084_v30 = vshll.u32 %v6983_v19, 16 }
 0x40c   : > { %v3587_v40 = vor.u32 %v3586_v60, %v3582_v6  ;;  %v3674_v7 = vsel %vm1343_vm9, %v3672_v39, %v3673_v38  ;;  %v3163_v6 = vrot.slane %v4509_v47, 1  ;;  %v3164_v60 = vrot.slane %v6988_v26, 1  ;;  %v2910_v26 = vld [vmem:[#allocation3 + $0x54] sm:$0xe] }
 0x40d   : > { %v3086_v36 = vrot.slane %v3084_v30, 1 }
 0x40e   : > { %3371 = vrot.lane.b32.xlu1 %v3336_v46, %s5472_s26  ;;  %v3592_v58 = vsel %vm1172_vm10, %v3587_v40, %v3591_v29  ;;  %v3166_v46 = vrot.slane %v4510_v63, 1  ;;  %v3165_v15 = vsel %vm1343_vm9, %v3163_v6, %v3164_v60  ;;  %v3345_v40 = vshll.u32 %v5074_v22, 16  ;;  %v2927_v29 = vld [vmem:[#allocation3 + $0x6c] sm:$0xf] }
 0x40f   : > { %3369 = vrot.lane.b32.xlu0 %v3324_v1, %s5472_s26  ;;  %v3087_v12 = vor.u32 %v3086_v36, %v3082_v42  ;;  %v2925_v42 = vld [vmem:[#allocation3 + $0x60] sm:$0xf]  ;;  %v2926_v36 = vld [vmem:[#allocation3 + $0x64] sm:$0xf]  ;;  %v4542_v43 = vcombine.low %v2927_v29, %v2928_v27  ;;  %v3679_v6 = vrot.slane %v5079_v11, 1 }
 0x410   : > { %v3168_v9 = vsel %vm1343_vm9, %v3166_v46, %v3167_v20  ;;  %v3347_v50 = vrot.slane %v3345_v40, 1 }
 0x411   : > { %v3092_v2 = vsel %vm1172_vm10, %v3087_v12, %v3091_v41  ;;  %v4541_v41 = vcombine.low %v2925_v42, %v2926_v36  ;;  %v3608_v5 = vshll.u32 %v4542_v43, 16  ;;  %v3606_v28 = vshrl.u32 %v4542_v43, 16 }
 0x412   : > { %3435 = vrot.lane.b32.xlu1 %v3418_v14, %s5475_s3  ;;  %v3340_v14 = vshll.u32 %v4517_v10, 16 }
 0x413   : > { %3433 = vrot.lane.b32.xlu0 %v3415_v25, %s5475_s3  ;;  %v3357_v25 = vshll.u32 %v5073_v16, 16  ;;  %v3610_v62 = vrot.slane %v3608_v5, 1  ;;  %v3594_v63 = vshrl.u32 %v4541_v41, 16 }
 0x414   : > { %v3342_v32 = vrot.slane %v3340_v14, 1 }
 0x415   : > { %v3359_v35 = vrot.slane %v3357_v25, 1  ;;  %v3611_v39 = vor.u32 %v3610_v62, %v3606_v28 }
 0x416   : > { %3491 = vrot.lane.b32.xlu1 %v4540_v8, %s5476_s5  ;;  %v2895_v8 = vld [vmem:[#allocation3 + $0x64] sm:$0xf]  ;;  %v3343_v44 = vor.u32 %v3342_v32, %v3338_v13 }
 0x417   : > { %3489 = vrot.lane.b32.xlu0 %v4539_v3, %s5476_s5  ;;  %v3099_v3 = vor.u32 %v3098_v53, %v3094_v0  ;;  %v4518_v4 = vcombine.low %v2894_v59, %v2895_v8  ;;  %v4534_v24 = vcombine.low %v2911_v33, %v2895_v8  ;;  %v3423_v53 = vrot.slane %v5073_v16, 1 }
 0x418   : > { %v3596_v59 = vshll.u32 %v4541_v41, 16 }
 0x419   : > { %v3104_v48 = vsel %vm1172_vm10, %v3099_v3, %v3103_v55  ;;  %v3352_v1 = vshll.u32 %v4518_v4, 16  ;;  %v3350_v30 = vshrl.u32 %v4518_v4, 16  ;;  %v3422_v0 = vrot.slane %v4534_v24, 1  ;;  %v2944_v55 = vld [vmem:[#allocation3 + $0x6c] sm:$0xe] }
 0x41a   : > { %3627 = vrot.lane.b32.xlu1 %v3592_v58, %s5477_s28  ;;  %v4533_v58 = vcombine.low %v2910_v26, %v2893_v56  ;;  %v3613_v56 = vshll.u32 %v5079_v11, 16  ;;  %v3601_v3 = vshll.u32 %v5080_v45, 16 }
 0x41b   : > { %3625 = vrot.lane.b32.xlu0 %v3580_v54, %s5477_s28  ;;  %v3354_v21 = vrot.slane %v3352_v1, 1  ;;  %v3348_v54 = vsel %vm1172_vm10, %v3343_v44, %v3347_v50  ;;  %v3424_v8 = vsel %vm1343_vm9, %v3422_v0, %v3423_v53 }
 0x41c   : > { %v3419_v49 = vrot.slane %v4533_v58, 1  ;;  %v3615_v47 = vrot.slane %v3613_v56, 1 }
 0x41d   : > { %v3355_v23 = vor.u32 %v3354_v21, %v3350_v30 }
 0x41e   : > { %3117 = vrot.lane.b32.xlu1 %v3092_v2, %s5466_s6  ;;  %v3421_v38 = vsel %vm1343_vm9, %v3419_v49, %v3420_v57  ;;  %v3598_v2 = vrot.slane %v3596_v59, 1  ;;  %v3616_v1 = vsel %vm1172_vm10, %v3611_v39, %v3615_v47 }
 0x41f   : > { %3689 = vrot.lane.b32.xlu0 %v3671_v37, %s5478_s24  ;;  %v3360_v12 = vsel %vm1172_vm10, %v3355_v23, %v3359_v35 }
 0x420   : > { %v3599_v20 = vor.u32 %v3598_v2, %v3594_v63 }
 0x422   : > { %3119 = vrot.lane.b32.xlu1 %v3104_v48, %s5466_s6  ;;  %v3603_v48 = vrot.slane %v3601_v3, 1  ;;  %s4594_s6 = sshll.u32 %s4135_s19, 6 }
 0x423   : > { %3691 = vrot.lane.b32.xlu0 %v3674_v7, %s5478_s24 }
 0x424   : > { %v3604_v22 = vsel %vm1172_vm10, %v3599_v20, %v3603_v48  ;;  %vm3795_vm10 = vcmask 457728  }
 0x426   : > { %3183 = vrot.lane.b32.xlu1 %v3168_v9, %s5468_s12  ;;  %v3676_v9 = vrot.slane %v5080_v45, 1 }
 0x427   : > { %3181 = vrot.lane.b32.xlu0 %v3165_v15, %s5468_s12  ;;  %s4138_s12 = sshll.u32 %s6144_s15, 4  ;;  %s7201_s12 = int_to_ptr.vmem [resolvable:$true] %s4138_s12 }
 0x42a   : > { %3239 = vrot.lane.b32.xlu1 %v4518_v4, %s5470_s0  ;;  %v2943_v4 = vld [vmem:[#allocation3 + $0x60] sm:$0xe] }
 0x42b   : > { %3237 = vrot.lane.b32.xlu0 %v4517_v10, %s5470_s0  ;;  %v4558_v10 = vcombine.low %v2944_v55, %v2928_v27  ;;  %v4557_v16 = vcombine.low %v2943_v4, %v2926_v36 }
 0x42d   : > { %v3678_v7 = vrot.slane %v4558_v10, 1  ;;  %v3675_v14 = vrot.slane %v4557_v16, 1 }
 0x42e   : > { %3375 = vrot.lane.b32.xlu1 %v3360_v12, %s5472_s26 }
 0x42f   : > { %3373 = vrot.lane.b32.xlu0 %v3348_v54, %s5472_s26  ;;  %v3680_v21 = vsel %vm1343_vm9, %v3678_v7, %v3679_v6  ;;  %v3677_v13 = vsel %vm1343_vm9, %v3675_v14, %v3676_v9  ;;  %vm3778_vm9 = vcmask 392192   ;;  %s7199_s26 = scalar_lea.hbm %s7420_s10, %s4594_s6 }
 0x430   : > { %v3226_v37 = vpop.permute.xlu0 %3225 }
 0x432   : > { %3439 = vrot.lane.b32.xlu1 %v3424_v8, %s5475_s3 }
 0x433   : > { %3437 = vrot.lane.b32.xlu0 %v3421_v38, %s5475_s3  ;;  %s5290_s3 = scalar_lea.vmem %s7201_s12, 1024 }
 0x434   : > { %v3170_v46 = vpop.permute.xlu1 %3169  ;;  %p5291_p7 = scmp.ne.s32.totalorder %s7201_s12, %s5290_s3 }
 0x436   : > { %3495 = vrot.lane.b32.xlu1 %v4542_v43, %s5476_s5  ;;  %p5292_p9 = pnand %p5291_p7, %p7422_p3 }
 0x437   : > { %3493 = vrot.lane.b32.xlu0 %v4541_v41, %s5476_s5  ;;  %s5479_s5 = smov [#allocation16]  }
 0x438   : > { %v3172_v60 = vpop.permute.xlu1 %3171  ;;  %p5293_p8 = pneg %p5292_p9 }
 0x439   : > { %v3106_v30 = vpop.permute.xlu0 %3105 }
 0x43a   : > { %3631 = vrot.lane.b32.xlu1 %v3616_v1, %s5477_s28  ;;  %v3698_v27 = vsel %vm2055_vm13, %v6824_v51, %v3106_v30 }
 0x43b   : > { %3629 = vrot.lane.b32.xlu0 %v3604_v22, %s5477_s28  ;;  %v3714_v23 = vsel %vm2097_vm15, %v3698_v27, %v3170_v46  ;;  %s5294_s28 = sshll.u32 %s5479_s5, 4  ;;  %s5295_s28 = int_to_ptr.vmem [resolvable:$false] %s5294_s28 }
 0x43c   : > { %v3228_v25 = vpop.permute.xlu1 %3227  ;;  %v3730_v43 = vsel %vm2139_vm2, %v3714_v23, %v3226_v37  ;;  %s5296_s4 = scalar_lea.vmem %s5295_s28, 2048  ;;  %p5297_p5 = scmp.lt.s32.totalorder %s7201_s12, %s5295_s28 }
 0x43d   : > { %v3108_v33 = vpop.permute.xlu0 %3107  ;;  %p5298_p1 = scmp.lt.s32.totalorder %s5296_s4, %s5290_s3 }
 0x43e   : > { %3695 = vrot.lane.b32.xlu1 %v3680_v21, %s5478_s24  ;;  %v3700_v42 = vsel %vm2055_vm13, %v6827_v61, %v3108_v33 }
 0x43f   : > { %3693 = vrot.lane.b32.xlu0 %v3677_v13, %s5478_s24  ;;  %v3716_v35 = vsel %vm2097_vm15, %v3700_v42, %v3172_v60  ;;  %p5299_p11 = por %p5298_p1, %p5297_p5 }
 0x440   : > { %v3364_v15 = vpop.permute.xlu1 %3363  ;;  %v3732_v51 = vsel %vm2139_vm2, %v3716_v35, %v3228_v25 }
 0x441   : > { %v3362_v32 = vpop.permute.xlu0 %3361  ;;  %v3748_v53 = vsel %vm2181_vm5, %v3732_v51, %v3364_v15  ;;  %p5300_p10 = pnand %p5299_p11, %p5293_p8 }
 0x442   : > { %v3746_v50 = vsel %vm2181_vm5, %v3730_v43, %v3362_v32 }
 0x444   : > { %v3428_v40 = vpop.permute.xlu1 %3427 }
 0x445   : > { %v3426_v29 = vpop.permute.xlu0 %3425  ;;  %v3765_v5 = vsel %vm3761_vm8, %v3748_v53, %v3428_v40 }
 0x446   : > { %v3763_v58 = vsel %vm3761_vm8, %v3746_v50, %v3426_v29 }
 0x448   : > { %v3484_v26 = vpop.permute.xlu1 %3483 }
 0x449   : > { %v3482_v36 = vpop.permute.xlu0 %3481  ;;  %v3782_v54 = vsel %vm3778_vm9, %v3765_v5, %v3484_v26 }
 0x44a   : > { %v3780_v61 = vsel %vm3778_vm9, %v3763_v58, %v3482_v36 }
 0x44c   : > { %v3620_v24 = vpop.permute.xlu1 %3619 }
 0x44d   : > { %v3618_v44 = vpop.permute.xlu0 %3617  ;;  %v3799_v57 = vsel %vm3795_vm10, %v3782_v54, %v3620_v24 }
 0x44e   : > { %v3797_v12 = vsel %vm3795_vm10, %v3780_v61, %v3618_v44 }
 0x450   : > { %v3110_v41 = vpop.permute.xlu1 %3109 }
 0x451   : > { %v3682_v0 = vpop.permute.xlu0 %3681  ;;  %v3702_v37 = vsel %vm2055_vm13, %v6858_v34, %v3110_v41 }
 0x452   : > { %v3814_v11 = vsel %vm3812_vm0, %v3797_v12, %v3682_v0 }
 0x453   : > { %4705 = vmatprep.mubr.msk.bf16.mxu1 %vm3865_vm4, %v3814_v11 }
 0x454   : > { %v3112_v49 = vpop.permute.xlu1 %3111 }
 0x455   : > { %v3684_v45 = vpop.permute.xlu0 %3683  ;;  %v3704_v48 = vsel %vm2055_vm13, %v6870_v52, %v3112_v49 }
 0x456   : > { %v3816_v59 = vsel %vm3812_vm0, %v3799_v57, %v3684_v45 }
 0x457   : > { %4706 = vmatmul.mubr.msk.bf16.vlgmr.msra.gmra.mrb[0].mxu1 %vm3865_vm4, %v3816_v59 }
 0x458   : > { %v3176_v8 = vpop.permute.xlu1 %3175 }
 0x459   : > { %v3174_v28 = vpop.permute.xlu0 %3173  ;;  %v3720_v1 = vsel %vm2097_vm15, %v3704_v48, %v3176_v8 }
 0x45a   : > { %v3718_v39 = vsel %vm2097_vm15, %v3702_v37, %v3174_v28 }
 0x45c   : > { %v3232_v62 = vpop.permute.xlu1 %3231 }
 0x45d   : > { %v3230_v56 = vpop.permute.xlu0 %3229  ;;  %v3736_v34 = vsel %vm2139_vm2, %v3720_v1, %v3232_v62 }
 0x45e   : > { %v3734_v10 = vsel %vm2139_vm2, %v3718_v39, %v3230_v56 }
 0x460   : > { %v3368_v38 = vpop.permute.xlu1 %3367 }
 0x461   : > { %v3366_v63 = vpop.permute.xlu0 %3365  ;;  %v3752_v14 = vsel %vm2181_vm5, %v3736_v34, %v3368_v38 }
 0x462   : > { %v3750_v20 = vsel %vm2181_vm5, %v3734_v10, %v3366_v63 }
 0x464   : > { %v3432_v2 = vpop.permute.xlu1 %3431 }
 0x465   : > { %v3430_v3 = vpop.permute.xlu0 %3429  ;;  %v3769_v30 = vsel %vm3761_vm8, %v3752_v14, %v3432_v2 }
 0x466   : > { %v3767_v16 = vsel %vm3761_vm8, %v3750_v20, %v3430_v3 }
 0x468   : > { %v3488_v55 = vpop.permute.xlu1 %3487 }
 0x469   : > { %v3486_v4 = vpop.permute.xlu0 %3485  ;;  %v3786_v52 = vsel %vm3778_vm9, %v3769_v30, %v3488_v55 }
 0x46a   : > { %v3784_v7 = vsel %vm3778_vm9, %v3767_v16, %v3486_v4 }
 0x46c   : > { %v3624_v47 = vpop.permute.xlu1 %3623 }
 0x46d   : > { %v3622_v46 = vpop.permute.xlu0 %3621  ;;  %v3803_v25 = vsel %vm3795_vm10, %v3786_v52, %v3624_v47 }
 0x46e   : > { %v3801_v60 = vsel %vm3795_vm10, %v3784_v7, %v3622_v46 }
 0x470   : > { %v3114_v6 = vpop.permute.xlu1 %3113 }
 0x471   : > { %v3686_v22 = vpop.permute.xlu0 %3685  ;;  %v3706_v24 = vsel %vm2055_vm13, %v6916_v17, %v3114_v6 }
 0x472   : > { %v3818_v9 = vsel %vm3812_vm0, %v3801_v60, %v3686_v22 }
 0x473   : > { %4709 = vmatprep.mubr.msk.bf16.mxu1 %vm3865_vm4, %v3818_v9 }
 0x474   : > { %v3116_v21 = vpop.permute.xlu1 %3115 }
 0x475   : > { %v3688_v13 = vpop.permute.xlu0 %3687  ;;  %v3708_v61 = vsel %vm2055_vm13, %v6926_v31, %v3116_v21 }
 0x476   : > { %v3820_v33 = vsel %vm3812_vm0, %v3803_v25, %v3688_v13  ;;  %v7129_v13 = vld [vmem:[#allocation15] ss:$0 sm:$0xff] }
 0x477   : > { %4710 = vmatmul.mubr.msk.bf16.gmra.mrb[4].mxu1 %vm3865_vm4, %v3820_v33 }
 0x478   : > { %v3180_v15 = vpop.permute.xlu1 %3179 }
 0x479   : > { %v3178_v32 = vpop.permute.xlu0 %3177  ;;  %v3724_v12 = vsel %vm2097_vm15, %v3708_v61, %v3180_v15  ;;  %v7131_v15 = vld [vmem:[#allocation15 + $0x1] ss:$0 sm:$0xff] }
 0x47a   : > { %v3722_v43 = vsel %vm2097_vm15, %v3706_v24, %v3178_v32 }
 0x47c   : > { %v3236_v40 = vpop.permute.xlu1 %3235 }
 0x47d   : > { %v3234_v29 = vpop.permute.xlu0 %3233  ;;  %v3740_v17 = vsel %vm2139_vm2, %v3724_v12, %v3236_v40 }
 0x47e   : > { %v3738_v50 = vsel %vm2139_vm2, %v3722_v43, %v3234_v29 }
 0x480   : > { %v3372_v27 = vpop.permute.xlu1 %3371 }
 0x481   : > { %v3370_v26 = vpop.permute.xlu0 %3369  ;;  %v3756_v54 = vsel %vm2181_vm5, %v3740_v17, %v3372_v27 }
 0x482   : > { %v3754_v58 = vsel %vm2181_vm5, %v3738_v50, %v3370_v26 }
 0x484   : > { %v3436_v42 = vpop.permute.xlu1 %3435 }
 0x485   : > { %v3434_v36 = vpop.permute.xlu0 %3433  ;;  %v3773_v57 = vsel %vm3761_vm8, %v3756_v54, %v3436_v42 }
 0x486   : > { %v3771_v41 = vsel %vm3761_vm8, %v3754_v58, %v3434_v36 }
 0x488   : > { %v3492_v23 = vpop.permute.xlu1 %3491 }
 0x489   : > { %v3490_v35 = vpop.permute.xlu0 %3489  ;;  %v3790_v31 = vsel %vm3778_vm9, %v3773_v57, %v3492_v23 }
 0x48a   : > { %v3788_v0 = vsel %vm3778_vm9, %v3771_v41, %v3490_v35 }
 0x48c   : > { %v3628_v44 = vpop.permute.xlu1 %3627 }
 0x48d   : > { %v3626_v51 = vpop.permute.xlu0 %3625  ;;  %v3807_v59 = vsel %vm3795_vm10, %v3790_v31, %v3628_v44 }
 0x48e   : > { %v3805_v11 = vsel %vm3795_vm10, %v3788_v0, %v3626_v51 }
 0x490   : > { %v3118_v53 = vpop.permute.xlu1 %3117 }
 0x491   : > { %v3690_v5 = vpop.permute.xlu0 %3689  ;;  %v3710_v10 = vsel %vm2055_vm13, %v6983_v19, %v3118_v53 }
 0x492   : > { %v3822_v49 = vsel %vm3812_vm0, %v3805_v11, %v3690_v5 }
 0x493   : > { %4713 = vmatprep.mubr.msk.bf16.mxu1 %vm3865_vm4, %v3822_v49 }
 0x494   : > { %v3120_v45 = vpop.permute.xlu1 %3119 }
 0x495   : > { %v3692_v8 = vpop.permute.xlu0 %3691  ;;  %v3712_v47 = vsel %vm2055_vm13, %v6994_v18, %v3120_v45 }
 0x496   : > { %v3824_v28 = vsel %vm3812_vm0, %v3807_v59, %v3692_v8 }
 0x497   : > { %4714 = vmatmul.mubr.msk.bf16.gmra.mrb[8].mxu1 %vm3865_vm4, %v3824_v28 }
 0x498   : > { %v3184_v62 = vpop.permute.xlu1 %3183 }
 0x499   : > { %v3182_v56 = vpop.permute.xlu0 %3181  ;;  %v3728_v46 = vsel %vm2097_vm15, %v3712_v47, %v3184_v62 }
 0x49a   : > { %v3726_v20 = vsel %vm2097_vm15, %v3710_v10, %v3182_v56 }
 0x49c   : > { %v3240_v38 = vpop.permute.xlu1 %3239 }
 0x49d   : > { %v3238_v63 = vpop.permute.xlu0 %3237  ;;  %v3744_v48 = vsel %vm2139_vm2, %v3728_v46, %v3240_v38 }
 0x49e   : > { %v3742_v1 = vsel %vm2139_vm2, %v3726_v20, %v3238_v63 }
 0x4a0   : > { %v3376_v2 = vpop.permute.xlu1 %3375 }
 0x4a1   : > { %v3374_v3 = vpop.permute.xlu0 %3373  ;;  %v3760_v7 = vsel %vm2181_vm5, %v3744_v48, %v3376_v2 }
 0x4a2   : > { %v3758_v34 = vsel %vm2181_vm5, %v3742_v1, %v3374_v3 }
 0x4a4   : > { %v3440_v55 = vpop.permute.xlu1 %3439 }
 0x4a5   : > { %v3438_v4 = vpop.permute.xlu0 %3437  ;;  %v3777_v60 = vsel %vm3761_vm8, %v3760_v7, %v3440_v55 }
 0x4a6   : > { %v3775_v18 = vsel %vm3761_vm8, %v3758_v34, %v3438_v4 }
 0x4a8   : > { %v3496_v37 = vpop.permute.xlu1 %3495 }
 0x4a9   : > { %v3494_v39 = vpop.permute.xlu0 %3493  ;;  %v3794_v19 = vsel %vm3778_vm9, %v3777_v60, %v3496_v37 }
 0x4aa   : > { %v3792_v22 = vsel %vm3778_vm9, %v3775_v18, %v3494_v39 }
 0x4ac   : > { %v3632_v16 = vpop.permute.xlu1 %3631 }
 0x4ad   : > { %v3630_v6 = vpop.permute.xlu0 %3629  ;;  %v3811_v14 = vsel %vm3795_vm10, %v3794_v19, %v3632_v16 }
 0x4ae   : > { %v3809_v30 = vsel %vm3795_vm10, %v3792_v22, %v3630_v6 }
 0x4b0   : > { %v3696_v9 = vpop.permute.xlu1 %3695 }
 0x4b1   : > { %v3828_v52 = vsel %vm3812_vm0, %v3811_v14, %v3696_v9  ;;  %v3694_v21 = vpop.permute.xlu0 %3693 }
 0x4b2   : > { %v3826_v25 = vsel %vm3812_vm0, %v3809_v30, %v3694_v21 }
 0x4b3   : > { %4717 = vmatprep.mubr.msk.bf16.mxu1 %vm3865_vm4, %v3826_v25 }
 0x4b4   : > { %4718 = vmatmul.mubr.msk.bf16.gmra.mrb[12].mxu1 %vm3865_vm4, %v3828_v52 }
 0x52a   : > { %v4707_v33 = vpop.f32.mrb[0].mxu1 }
 0x52b   : > { %v3990_v32 = vmul.f32 %v4707_v33, %v7129_v13  ;;  %v3920_v40 = vpop.f32.mrb[1].mxu1 }
 0x52c   : > { %v3988_v29 = vmul.f32 %v7129_v13, %v3920_v40  ;;  %v4708_v27 = vpop.f32.mrb[2].mxu1 }
 0x52d   : > { %v4011_v26 = vadd.f32 %v7131_v15, %v3990_v32  ;;  %v3991_v42 = vmul.f32 %v4708_v27, %v7129_v13  ;;  %v3923_v36 = vpop.f32.mrb[3].mxu1 }
 0x52e   : > { %v4009_v23 = vadd.f32 %v7131_v15, %v3988_v29  ;;  %v3989_v35 = vmul.f32 %v7129_v13, %v3923_v36 }
 0x52f   : > { %v4027_v24 = vmax.f32 %v4011_v26, 0.0  ;;  %v4012_v43 = vadd.f32 %v7131_v15, %v3991_v42 }
 0x530   : > { %v4025_v44 = vmax.f32 %v4009_v23, 0.0  ;;  %v4010_v50 = vadd.f32 %v7131_v15, %v3989_v35 }
 0x531   : > { %v4628_v51 = vpack.c.bf16 %v4027_v24, %v4027_v24  ;;  %v4028_v58 = vmax.f32 %v4012_v43, 0.0 }
 0x532   : > { %v4626_v61 = vpack.c.bf16 %v4025_v44, %v4025_v44  ;;  %v4026_v41 = vmax.f32 %v4010_v50, 0.0 }
 0x533   : > { %4107 = vst.msk [vmem:[%s6144_s15 + $0x8] sm:$0xf] %vm2753_vm12, %v4628_v51  ;;  %v4629_v12 = vpack.c.bf16 %v4028_v58, %v4028_v58 }
 0x534   : > { %4105 = vst.msk [vmem:[%s6144_s15] sm:$0xf] %vm2753_vm12, %v4626_v61  ;;  %v4627_v0 = vpack.c.bf16 %v4026_v41, %v4026_v41 }
 0x535   : > { %4108 = vst.msk [vmem:[%s6144_s15 + $0xc] sm:$0xf] %vm2753_vm12, %v4629_v12 }
 0x536   : > { %4106 = vst.msk [vmem:[%s6144_s15 + $0x4] sm:$0xf] %vm2753_vm12, %v4627_v0 }
 0x54a   : > { %v4711_v53 = vpop.f32.mrb[4].mxu1 }
 0x54b   : > { %v3994_v17 = vmul.f32 %v4711_v53, %v7129_v13  ;;  %v3936_v11 = vpop.f32.mrb[5].mxu1 }
 0x54c   : > { %v3992_v5 = vmul.f32 %v7129_v13, %v3936_v11  ;;  %v4712_v54 = vpop.f32.mrb[6].mxu1 }
 0x54d   : > { %v4015_v49 = vadd.f32 %v7131_v15, %v3994_v17  ;;  %v3995_v57 = vmul.f32 %v4712_v54, %v7129_v13  ;;  %v3939_v31 = vpop.f32.mrb[7].mxu1 }
 0x54e   : > { %v4013_v45 = vadd.f32 %v7131_v15, %v3992_v5  ;;  %v3993_v59 = vmul.f32 %v7129_v13, %v3939_v31 }
 0x54f   : > { %v4031_v8 = vmax.f32 %v4015_v49, 0.0  ;;  %v4016_v28 = vadd.f32 %v7131_v15, %v3995_v57 }
 0x550   : > { %v4029_v62 = vmax.f32 %v4013_v45, 0.0  ;;  %v4014_v56 = vadd.f32 %v7131_v15, %v3993_v59 }
 0x551   : > { %v4632_v38 = vpack.c.bf16 %v4031_v8, %v4031_v8  ;;  %v4032_v63 = vmax.f32 %v4016_v28, 0.0 }
 0x552   : > { %v4630_v2 = vpack.c.bf16 %v4029_v62, %v4029_v62  ;;  %v4030_v3 = vmax.f32 %v4014_v56, 0.0 }
 0x553   : > { %4111 = vst.msk [vmem:[%s6144_s15 + $0x18] sm:$0xf] %vm2753_vm12, %v4632_v38  ;;  %v4633_v55 = vpack.c.bf16 %v4032_v63, %v4032_v63 }
 0x554   : > { %4109 = vst.msk [vmem:[%s6144_s15 + $0x10] sm:$0xf] %vm2753_vm12, %v4630_v2  ;;  %v4631_v4 = vpack.c.bf16 %v4030_v3, %v4030_v3 }
 0x555   : > { %4112 = vst.msk [vmem:[%s6144_s15 + $0x1c] sm:$0xf] %vm2753_vm12, %v4633_v55 }
 0x556   : > { %4110 = vst.msk [vmem:[%s6144_s15 + $0x14] sm:$0xf] %vm2753_vm12, %v4631_v4 }
 0x56a   : > { %v4715_v37 = vpop.f32.mrb[8].mxu1 }
 0x56b   : > { %v3998_v39 = vmul.f32 %v4715_v37, %v7129_v13  ;;  %v3952_v47 = vpop.f32.mrb[9].mxu1 }
 0x56c   : > { %v3996_v10 = vmul.f32 %v7129_v13, %v3952_v47  ;;  %v4716_v46 = vpop.f32.mrb[10].mxu1 }
 0x56d   : > { %v4019_v20 = vadd.f32 %v7131_v15, %v3998_v39  ;;  %v3999_v48 = vmul.f32 %v4716_v46, %v7129_v13  ;;  %v3955_v16 = vpop.f32.mrb[11].mxu1 }
 0x56e   : > { %v4017_v1 = vadd.f32 %v7131_v15, %v3996_v10  ;;  %v3997_v7 = vmul.f32 %v7129_v13, %v3955_v16 }
 0x56f   : > { %v4035_v6 = vmax.f32 %v4019_v20, 0.0  ;;  %v4020_v34 = vadd.f32 %v7131_v15, %v3999_v48 }
 0x570   : > { %v4033_v60 = vmax.f32 %v4017_v1, 0.0  ;;  %v4018_v18 = vadd.f32 %v7131_v15, %v3997_v7 }
 0x571   : > { %v4636_v19 = vpack.c.bf16 %v4035_v6, %v4035_v6  ;;  %v4036_v22 = vmax.f32 %v4020_v34, 0.0 }
 0x572   : > { %v4634_v14 = vpack.c.bf16 %v4033_v60, %v4033_v60  ;;  %v4034_v9 = vmax.f32 %v4018_v18, 0.0 }
 0x573   : > { %4115 = vst.msk [vmem:[%s6144_s15 + $0x28] sm:$0xf] %vm2753_vm12, %v4636_v19  ;;  %v4637_v30 = vpack.c.bf16 %v4036_v22, %v4036_v22 }
 0x574   : > { %4113 = vst.msk [vmem:[%s6144_s15 + $0x20] sm:$0xf] %vm2753_vm12, %v4634_v14  ;;  %v4635_v52 = vpack.c.bf16 %v4034_v9, %v4034_v9 }
 0x575   : > { %4116 = vst.msk [vmem:[%s6144_s15 + $0x2c] sm:$0xf] %vm2753_vm12, %v4637_v30 }
 0x576   : > { %4114 = vst.msk [vmem:[%s6144_s15 + $0x24] sm:$0xf] %vm2753_vm12, %v4635_v52 }
 0x587   : > { %v4719_v21 = vpop.f32.mrb[12].mxu1 }
 0x588   : > { %v4002_v25 = vmul.f32 %v4719_v21, %v7129_v13  ;;  %v3968_v33 = vpop.f32.mrb[13].mxu1 }
 0x589   : > { %v4000_v32 = vmul.f32 %v7129_v13, %v3968_v33  ;;  %v4720_v40 = vpop.f32.mrb[14].mxu1 }
 0x58a   : > { %v4023_v29 = vadd.f32 %v7131_v15, %v4002_v25  ;;  %v4003_v27 = vmul.f32 %v4720_v40, %v7129_v13  ;;  %v3971_v26 = vpop.f32.mrb[15].mxu1 }
 0x58b   : > { %v4021_v42 = vadd.f32 %v7131_v15, %v4000_v32  ;;  %v4001_v36 = vmul.f32 %v7129_v13, %v3971_v26 }
 0x58c   : > { %v4039_v23 = vmax.f32 %v4023_v29, 0.0  ;;  %v4024_v35 = vadd.f32 %v7131_v15, %v4003_v27 }
 0x58d   : > { %v4037_v24 = vmax.f32 %v4021_v42, 0.0  ;;  %v4022_v43 = vadd.f32 %v7131_v15, %v4001_v36 }
 0x58e   : > { %v4640_v44 = vpack.c.bf16 %v4039_v23, %v4039_v23  ;;  %v4040_v50 = vmax.f32 %v4024_v35, 0.0 }
 0x58f   : > { %v4638_v51 = vpack.c.bf16 %v4037_v24, %v4037_v24  ;;  %v4038_v58 = vmax.f32 %v4022_v43, 0.0 }
 0x590   : > { %4119 = vst.msk [vmem:[%s6144_s15 + $0x38] sm:$0xf] %vm2753_vm12, %v4640_v44  ;;  %v4641_v13 = vpack.c.bf16 %v4040_v50, %v4040_v50 }
 0x591   : > { %4117 = vst.msk [vmem:[%s6144_s15 + $0x30] sm:$0xf] %vm2753_vm12, %v4638_v51  ;;  %v4639_v61 = vpack.c.bf16 %v4038_v58, %v4038_v58 }
 0x592   : > { %4120 = vst.msk [vmem:[%s6144_s15 + $0x3c] sm:$0xf] %vm2753_vm12, %v4641_v13 }
 0x593   : > { %4118 = vst.msk [vmem:[%s6144_s15 + $0x34] sm:$0xf] %vm2753_vm12, %v4639_v61 }
 0x594   : > { %5303 = shalt.err (!%p5300_p10)
}
 0x595   : > { %s5304_s15 = scalar_lea.hbm %s7199_s26, 1024  ;;  %s5308_s18 = scalar_lea.hbm %s7421_s21, 4096 }
 0x596   : > { %p5305_p13 = scmp.ne.s32.totalorder %s7199_s26, %s5304_s15  ;;  %p5309_p6 = scmp.lt.u32.totalorder %s7199_s26, %s7421_s21 }
 0x597   : > { %p5310_p4 = scmp.lt.u32.totalorder %s5308_s18, %s5304_s15  ;;  %p5312_p7 = scmp.lt.u32.totalorder %s5304_s15, %s7199_s26 }
 0x598   : > { %p5306_p2 = pnand %p5305_p13, %p7422_p3 }
 0x599   : > { %p5311_p0 = por %p5310_p4, %p5309_p6 }
 0x59a   : > { %p5307_p12 = pneg %p5306_p2 }
 0x59b   : > { %p5313_p9 = por %p5312_p7, %p5311_p0 }
 0x59d   : > { %p5314_p8 = pnand %p5313_p9, %p5307_p12 }
 0x59f   : > { %5317 = shalt.err (!%p5314_p8)
}
 0x5a0   : > { %4745 = dma.vmem_to_hbm [thread:$0]  (%p7422_p3), %s7201_s12, 1024, %s7199_s26, %s4122_s23, %s5478_s24, %s5478_s24, %s5467_s16  }
 0x5a1 PF: > { %p4783_p5 = scmp.ge.s32.totalorder %s5452_s14, 2  ;;  %s4153_s13 = sand.u32 1, %s5424_s30  }
 0x5a2   : > { %p7423_p1 = scmp.ne.s32.totalorder %s7369_s22, 0  ;;  %s4154_s0 = scalar_lea.sflag [#allocation6], %s4153_s13 }
 0x5a4   : > { %p4771_p11 = pnand %p4783_p5, %p7423_p1 }
 0x5a6   : > { %5395 = dma.done.wait (!%p4771_p11), %s4154_s0, 1024  }
 0x5a7   : > { %5397 = vsyncadd (!%p4771_p11), %s4154_s0, 4294966272  ;;  %s28_s14 = sadd.s32 1, %s5452_s14   ;;  %s7425_s24 = sld [smem:[#allocation24_spill]] }
 0x5a8   : > { %p7239_p10 = scmp.ge.s32.totalorder %s28_s14, 6   ;;  %s7426_s25 = sld [smem:[#allocation25_spill]] }
 0x5a9   : > { %s7427_s7 = sld [smem:[#allocation26_spill]]  ;;  %s7428_s16 = smov %s5709_s27 }
 0x5aa   : > { %s7429_s10 = sld [smem:[#allocation29_spill]]  ;;  %s7430_s11 = sld [smem:[#allocation30_spill]] }
 0x5ab   : > { %s7431_s12 = sld [smem:[#allocation32_spill]]  ;;  %s7432_s13 = sld [smem:[#allocation33_spill]] }
 0x5ac   : > { %s7433_s26 = smov %s7455_s20  ;;  %s7435_s28 = smov %s5420_s29 }
 0x5ad   : > { %s7436_s29 = smov %s7428_s16  ;;  %s7437_s30 = smov %s5428_s8 }
 0x5ae   : > { %s7438_s8 = smov %s5432_s9  ;;  %s7439_s9 = smov %s5811_s17 }
 0x5af   : > { %s7434_s27 = smov %s7427_s7  ;;  %27 = sbr.rel (!%p7239_p10) target bundleno = 23 (0x17), region = 164 }
 0x5b6   :  { %4159 = vsyncpa [#allocation5], 1 }
 0x5b7   :  { %4161 = vsyncpa [#allocation5 + $0x1], 1 }
 0x5b8   :  { %4162 = vsyncpa [#allocation8], 1 }
 0x5b9   :  { %4164 = vsyncpa [#allocation8 + $0x1], 1 }
 0x5ba   :  { %4165 = vsyncpa [#allocation11], 1 }
 0x5bb   :  { %4166 = vsyncpa [#allocation14], 1 }
 0x5bc   :  { %4167 = vsyncpa [#allocation6], 1 }
 0x5bd   :  { %4169 = vsyncpa [#allocation6 + $0x1], 1 }

</bundles_post_ra>
